<compile_context>
chip_gen: v6e
topology: v6e:2x2x1
jax: 0.10.0
libtpu: 0.0.40
codegen_flags: <defaults>
</compile_context>

<pallas_src>
import functools
import math

import jax
import jax.numpy as jnp
from jax.experimental import pallas as pl
from jax.experimental.pallas import tpu as pltpu


def _qkv_attention_kernel(q_ref, k_ref, v_ref, o_ref,
                          qt_scr, m_scr, l_scr, acc_scr,
                          *, scale, kv_len, block_kv, mask_kv, op_dtype):
    """One (batch, head-block, q-tile, kv-tile) step of online-softmax attention.

    q_ref:   (bh, C, tq)   input dtype (native layout, no wrapper transpose)
    k_ref:   (bh, C, tk)   input dtype
    v_ref:   (bh, C, tk)   input dtype
    o_ref:   (bh, C, tq)   input dtype (lane-dense store, written on last kv step)
    qt_scr:  (bh, tq, C)   op_dtype  -- scaled/transposed q, cached across kv steps
    m_scr, l_scr: (bh, tq, 1) f32    -- running max / running sum
    acc_scr: (bh, tq, C)   f32       -- output accumulator
    """
    kv_i = pl.program_id(3)
    prec = (jax.lax.Precision.HIGHEST
            if jnp.dtype(op_dtype) == jnp.float32 else None)

    @pl.when(kv_i == 0)
    def _init():
        # One XLU transpose + one scale multiply per q tile, amortized over all
        # kv steps.  Transpose in f32 (robust native path), then cast to the
        # MXU operand dtype.
        q32 = q_ref[...].astype(jnp.float32)
        qt_scr[...] = (jnp.swapaxes(q32, 1, 2) * scale).astype(qt_scr.dtype)
        m_scr[...] = jnp.full_like(m_scr, -jnp.inf)
        l_scr[...] = jnp.zeros_like(l_scr)
        acc_scr[...] = jnp.zeros_like(acc_scr)

    q_t = qt_scr[...]                        # (bh, tq, C)  op_dtype
    k = k_ref[...].astype(op_dtype)          # (bh, C, tk)  (no-op cast normally)
    v = v_ref[...].astype(op_dtype)          # (bh, C, tk)

    # s[b, t, s'] = sum_c q_t[b, t, c] * k[b, c, s']  -- canonical NN matmul.
    s = jax.lax.dot_general(
        q_t, k, (((2,), (1,)), ((0,), (0,))),
        precision=prec, preferred_element_type=jnp.float32)   # (bh, tq, tk) f32

    if mask_kv:
        # kv-tail mask for padded T (padding < 128 <= tk, so every tile keeps
        # at least one valid column and the row max stays finite).
        col = jax.lax.broadcasted_iota(jnp.int32, s.shape, 2) + kv_i * block_kv
        s = jnp.where(col < kv_len, s, -jnp.inf)

    # Online softmax update (all f32).
    m_prev = m_scr[...]
    m_new = jnp.maximum(m_prev, jnp.max(s, axis=-1, keepdims=True))
    alpha = jnp.exp(m_prev - m_new)
    p = jnp.exp(s - m_new)                                     # (bh, tq, tk) f32
    l_scr[...] = alpha * l_scr[...] + jnp.sum(p, axis=-1, keepdims=True)

    # pv[b, t, c] = sum_s p[b, t, s] * v[b, c, s]  -- NT matmul (contract last
    # dims of both operands); v stays in its native (C, T) layout.
    pv = jax.lax.dot_general(
        p.astype(op_dtype), v, (((2,), (2,)), ((0,), (0,))),
        precision=prec, preferred_element_type=jnp.float32)    # (bh, tq, C) f32

    acc_scr[...] = alpha * acc_scr[...] + pv
    m_scr[...] = m_new

    @pl.when(kv_i == pl.num_programs(3) - 1)
    def _finalize():
        if o_ref.dtype == jnp.float32:
            inv_l = 1.0 / l_scr[...]                  # exact recip for f32 out
        else:
            inv_l = pl.reciprocal(l_scr[...], approx=True)
        out = acc_scr[...] * inv_l                               # (bh, tq, C)
        # One transpose per q tile -> lane-dense (bh, C, tq) HBM store.
        o_ref[...] = jnp.swapaxes(out, 1, 2).astype(o_ref.dtype)


def _largest_divisor_at_most(n, target):
    d = max(1, min(n, target))
    while n % d != 0:
        d -= 1
    return d


def _pick_seq_tile(t_padded, target):
    """Largest multiple of 128 that divides t_padded and is <= target."""
    target = max(128, target)
    m = (min(target, t_padded) // 128) * 128
    while m > 128 and t_padded % m != 0:
        m -= 128
    return m


def qkv_attention(qkv, n_heads, *, block_heads=4, block_q=512, block_kv=256,
                  mxu_bf16=False):
    """Pallas TPU equivalent of QKVAttention.forward.

    qkv: [N, 3*H*C, T]  ->  [N, H*C, T]

    mxu_bf16: if True and the input is float32, run the MXU products with
    bfloat16 operands (f32 accumulation / f32 softmax).  Deviates slightly
    from strict torch dtype semantics but is multi-x faster on all TPU gens.
    """
    N, width, T = qkv.shape
    assert width % (3 * n_heads) == 0
    ch = width // (3 * n_heads)

    # Pad T to a 128 multiple; the kv tail is masked in-kernel and padded q
    # rows are sliced off afterwards.  (Aligned T: zero extra HBM passes.)
    t_pad = ((T + 127) // 128) * 128
    needs_pad = t_pad != T
    if needs_pad:
        qkv = jnp.pad(qkv, ((0, 0), (0, 0), (0, t_pad - T)))

    # Metadata-only view exposing (chunk, head) so BlockSpecs slice q/k/v and
    # the head block directly -- no split / reshape-copy / transpose passes.
    qkv5 = qkv.reshape(N, 3, n_heads, ch, t_pad)

    tq = _pick_seq_tile(t_pad, block_q)
    tk = _pick_seq_tile(t_pad, block_kv)
    bh = _largest_divisor_at_most(n_heads, block_heads)
    # v7x megacore: keep the product of the parallel grid extents >= 2 when
    # possible so both TensorCores get work (no effect on v5e/v6e).
    while bh > 1 and N * (n_heads // bh) * (t_pad // tq) < 2:
        bh = _largest_divisor_at_most(n_heads, bh - 1)

    grid = (N, n_heads // bh, t_pad // tq, t_pad // tk)

    in_dtype = qkv.dtype
    op_dtype = jnp.bfloat16 if (mxu_bf16 and in_dtype == jnp.float32) else in_dtype
    itemsize = jnp.dtype(in_dtype).itemsize
    op_itemsize = jnp.dtype(op_dtype).itemsize

    # Derive the VMEM limit from actual usage (v7x has only 64 MiB physical):
    # double-buffered q/k/v/o tiles + persistent scratch + f32 s/p temporaries.
    lane = 128
    ch_l = -(-ch // lane) * lane
    tile_bytes = 2 * itemsize * (2 * bh * ch * tq + 2 * bh * ch * tk)
    scratch_bytes = (bh * tq * ch_l * op_itemsize          # cached q^T
                     + 2 * bh * tq * lane * 4              # m, l (lane-padded)
                     + bh * tq * ch_l * 4)                 # acc
    temp_bytes = 3 * bh * tq * tk * 4                      # s, p, cast copy
    vmem_limit = int(1.5 * (tile_bytes + scratch_bytes + temp_bytes)) + (8 << 20)
    vmem_limit = max(16 << 20, min(vmem_limit, 56 << 20))

    kernel = functools.partial(
        _qkv_attention_kernel,
        scale=1.0 / math.sqrt(ch),      # == torch's two-sided 1/sqrt(sqrt(ch))
        kv_len=T, block_kv=tk, mask_kv=needs_pad, op_dtype=op_dtype)

    out5 = pl.pallas_call(
        kernel,
        out_shape=jax.ShapeDtypeStruct((N, n_heads, ch, t_pad), in_dtype),
        grid_spec=pltpu.PrefetchScalarGridSpec(
            num_scalar_prefetch=0,
            grid=grid,
            in_specs=[
                # q chunk (index 0 on the "3" axis), head block, full C, q tile
                pl.BlockSpec((None, None, bh, ch, tq),
                             lambda n, h, qi, ki: (n, 0, h, 0, qi)),
                # k chunk
                pl.BlockSpec((None, None, bh, ch, tk),
                             lambda n, h, qi, ki: (n, 1, h, 0, ki)),
                # v chunk
                # TODO(synk): if profiling shows exposed DMA at kv-step
                # boundaries, add pipeline_mode=pl.Buffered(3) to k/v specs.
                pl.BlockSpec((None, None, bh, ch, tk),
                             lambda n, h, qi, ki: (n, 2, h, 0, ki)),
            ],
            out_specs=pl.BlockSpec((None, bh, ch, tq),
                                   lambda n, h, qi, ki: (n, h, 0, qi)),
            scratch_shapes=[
                pltpu.VMEM((bh, tq, ch), op_dtype),     # scaled, transposed q
                pltpu.VMEM((bh, tq, 1), jnp.float32),   # running max
                pltpu.VMEM((bh, tq, 1), jnp.float32),   # running sum
                pltpu.VMEM((bh, tq, ch), jnp.float32),  # output accumulator
            ],
        ),
        compiler_params=pltpu.CompilerParams(
            dimension_semantics=("parallel", "parallel", "parallel", "arbitrary"),
            vmem_limit_bytes=vmem_limit,
        ),
    )(qkv5, qkv5, qkv5)

    out = out5.reshape(N, n_heads * ch, t_pad)   # free reshape
    if needs_pad:
        out = out[:, :, :T]
    return out


def _reference(qkv, n_heads):
    # Plain-JAX reference mirroring the PyTorch forward (f32, high precision).
    N, width, T = qkv.shape
    ch = width // (3 * n_heads)
    B = N * n_heads
    q, k, v = jnp.split(qkv.astype(jnp.float32), 3, axis=1)
    q = q.reshape(B, ch, T)
    k = k.reshape(B, ch, T)
    v = v.reshape(B, ch, T)
    scale = 1.0 / math.sqrt(math.sqrt(ch))
    w = jnp.einsum('bct,bcs->bts', q * scale, k * scale,
                   precision=jax.lax.Precision.HIGHEST)
    w = jax.nn.softmax(w, axis=-1)
    a = jnp.einsum('bts,bcs->bct', w, v, precision=jax.lax.Precision.HIGHEST)
    return a.reshape(N, n_heads * ch, T)


if __name__ == "__main__":
    key = jax.random.PRNGKey(0)
    N, H, C, T = 2, 4, 16, 256              # qkv: [N, 3*H*C, T] = [2, 192, 256]
    qkv = jax.random.normal(key, (N, 3 * H * C, T), dtype=jnp.float32)
    ref = _reference(qkv, n_heads=H)

    # 1) f32 path, small explicit tiles: grid (N, H/bh, T/tq, T/tk) = (2,2,2,2)
    #    exercises head batching + online-softmax accumulation across kv tiles.
    out = jax.block_until_ready(
        qkv_attention(qkv, n_heads=H, block_heads=2, block_q=128, block_kv=128))
    assert out.shape == (N, H * C, T)
    assert jnp.allclose(out, ref, atol=1e-2, rtol=1e-2), \
        float(jnp.max(jnp.abs(out - ref)))

    # 2) bf16 path, default tiles (native bf16 MXU operands, f32 accumulation).
    qkv_bf16 = qkv.astype(jnp.bfloat16)
    out_bf16 = jax.block_until_ready(qkv_attention(qkv_bf16, n_heads=H))
    ref_bf16 = _reference(qkv_bf16, n_heads=H)
    assert out_bf16.dtype == jnp.bfloat16
    assert jnp.allclose(out_bf16.astype(jnp.float32), ref_bf16,
                        atol=1e-1, rtol=1e-1)

    # 3) Ragged T (not a multiple of 128): padded + kv-tail masked in kernel.
    T2 = 200
    qkv_r = jax.random.normal(jax.random.PRNGKey(1), (N, 3 * H * C, T2),
                              dtype=jnp.float32)
    out_r = jax.block_until_ready(qkv_attention(qkv_r, n_heads=H))
    ref_r = _reference(qkv_r, n_heads=H)
    assert out_r.shape == (N, H * C, T2)
    assert jnp.allclose(out_r, ref_r, atol=1e-2, rtol=1e-2), \
        float(jnp.max(jnp.abs(out_r - ref_r)))

    # 4) f32 input with bf16 MXU operands (flagged fast path).
    out_fast = jax.block_until_ready(qkv_attention(qkv, n_heads=H, mxu_bf16=True))
    assert jnp.allclose(out_fast, ref, atol=1e-1, rtol=1e-1)

    print("KERNEL_OK")
</pallas_src>

<mosaic_0001>
module attributes {stable_mosaic.version = 11 : i64} {
  func.func @_qkv_attention_kernel(%arg0: i32, %arg1: i32, %arg2: i32, %arg3: i32, %arg4: memref<1x1x2x16x128xf32, #tpu.memory_space<vmem>>, %arg5: memref<1x1x2x16x128xf32, #tpu.memory_space<vmem>>, %arg6: memref<1x1x2x16x128xf32, #tpu.memory_space<vmem>>, %arg7: memref<1x2x16x128xf32, #tpu.memory_space<vmem>>, %arg8: memref<2x128x16xf32, #tpu.memory_space<vmem>>, %arg9: memref<2x128x1xf32, #tpu.memory_space<vmem>>, %arg10: memref<2x128x1xf32, #tpu.memory_space<vmem>>, %arg11: memref<2x128x16xf32, #tpu.memory_space<vmem>>) attributes {dimension_semantics = [#tpu.dimension_semantics<parallel>, #tpu.dimension_semantics<parallel>, #tpu.dimension_semantics<parallel>, #tpu.dimension_semantics<arbitrary>], iteration_bounds = array<i64: 2, 2, 2, 2>, scalar_prefetch = 0 : i64, scratch_operands = 4 : i64, tpu.core_type = #tpu.core_type<tc>, window_params = [{transform_indices = @transform_0, window_bounds = array<i64: 1, 1, 2, 16, 128>}, {transform_indices = @transform_1, window_bounds = array<i64: 1, 1, 2, 16, 128>}, {transform_indices = @transform_2, window_bounds = array<i64: 1, 1, 2, 16, 128>}, {transform_indices = @transform_3, window_bounds = array<i64: 1, 2, 16, 128>}]} {
    %c0_i32 = arith.constant 0 : i32
    %0 = arith.cmpi eq, %arg3, %c0_i32 : i32
    %1 = arith.extui %0 : i1 to i32
    %c0_i32_0 = arith.constant 0 : i32
    %2 = arith.cmpi ne, %1, %c0_i32_0 : i32
    scf.if %2 {
      %c0_35 = arith.constant 0 : index
      %c0_36 = arith.constant 0 : index
      %c0_37 = arith.constant 0 : index
      %c0_38 = arith.constant 0 : index
      %c0_39 = arith.constant 0 : index
      %34 = vector.load %arg4[%c0_35, %c0_36, %c0_37, %c0_38, %c0_39] : memref<1x1x2x16x128xf32, #tpu.memory_space<vmem>>, vector<1x1x2x16x128xf32>
      %35 = vector.shape_cast %34 : vector<1x1x2x16x128xf32> to vector<2x16x128xf32>
      %36 = tpu.transpose %35, [0, 2, 1] : vector<2x16x128xf32> -> vector<2x128x16xf32>
      %cst_40 = arith.constant 2.500000e-01 : f32
      %37 = vector.broadcast %cst_40 : f32 to vector<2x128x16xf32>
      %38 = arith.mulf %36, %37 : vector<2x128x16xf32>
      %c0_41 = arith.constant 0 : index
      %c0_42 = arith.constant 0 : index
      %c0_43 = arith.constant 0 : index
      %39 = vector.load %arg8[%c0_41, %c0_42, %c0_43] : memref<2x128x16xf32, #tpu.memory_space<vmem>>, vector<2x128x16xf32>
      tpu.vector_store %arg8[%c0_41, %c0_42, %c0_43], %38 {strides = array<i32>} : memref<2x128x16xf32, #tpu.memory_space<vmem>>, vector<2x128x16xf32>,
      %cst_44 = arith.constant 0xFF800000 : f32
      %40 = vector.broadcast %cst_44 : f32 to vector<2x128x1xf32>
      %c0_45 = arith.constant 0 : index
      %c0_46 = arith.constant 0 : index
      %c0_47 = arith.constant 0 : index
      %41 = vector.load %arg9[%c0_45, %c0_46, %c0_47] : memref<2x128x1xf32, #tpu.memory_space<vmem>>, vector<2x128x1xf32>
      tpu.vector_store %arg9[%c0_45, %c0_46, %c0_47], %40 {strides = array<i32>} : memref<2x128x1xf32, #tpu.memory_space<vmem>>, vector<2x128x1xf32>,
      %cst_48 = arith.constant 0.000000e+00 : f32
      %42 = vector.broadcast %cst_48 : f32 to vector<2x128x1xf32>
      %c0_49 = arith.constant 0 : index
      %c0_50 = arith.constant 0 : index
      %c0_51 = arith.constant 0 : index
      %43 = vector.load %arg10[%c0_49, %c0_50, %c0_51] : memref<2x128x1xf32, #tpu.memory_space<vmem>>, vector<2x128x1xf32>
      tpu.vector_store %arg10[%c0_49, %c0_50, %c0_51], %42 {strides = array<i32>} : memref<2x128x1xf32, #tpu.memory_space<vmem>>, vector<2x128x1xf32>,
      %cst_52 = arith.constant 0.000000e+00 : f32
      %44 = vector.broadcast %cst_52 : f32 to vector<2x128x16xf32>
      %c0_53 = arith.constant 0 : index
      %c0_54 = arith.constant 0 : index
      %c0_55 = arith.constant 0 : index
      %45 = vector.load %arg11[%c0_53, %c0_54, %c0_55] : memref<2x128x16xf32, #tpu.memory_space<vmem>>, vector<2x128x16xf32>
      tpu.vector_store %arg11[%c0_53, %c0_54, %c0_55], %44 {strides = array<i32>} : memref<2x128x16xf32, #tpu.memory_space<vmem>>, vector<2x128x16xf32>,
    } else {
    }
    %c0 = arith.constant 0 : index
    %c0_1 = arith.constant 0 : index
    %c0_2 = arith.constant 0 : index
    %3 = vector.load %arg8[%c0, %c0_1, %c0_2] : memref<2x128x16xf32, #tpu.memory_space<vmem>>, vector<2x128x16xf32>
    %c0_3 = arith.constant 0 : index
    %c0_4 = arith.constant 0 : index
    %c0_5 = arith.constant 0 : index
    %c0_6 = arith.constant 0 : index
    %c0_7 = arith.constant 0 : index
    %4 = vector.load %arg5[%c0_3, %c0_4, %c0_5, %c0_6, %c0_7] : memref<1x1x2x16x128xf32, #tpu.memory_space<vmem>>, vector<1x1x2x16x128xf32>
    %5 = vector.shape_cast %4 : vector<1x1x2x16x128xf32> to vector<2x16x128xf32>
    %c0_8 = arith.constant 0 : index
    %c0_9 = arith.constant 0 : index
    %c0_10 = arith.constant 0 : index
    %c0_11 = arith.constant 0 : index
    %c0_12 = arith.constant 0 : index
    %6 = vector.load %arg6[%c0_8, %c0_9, %c0_10, %c0_11, %c0_12] : memref<1x1x2x16x128xf32, #tpu.memory_space<vmem>>, vector<1x1x2x16x128xf32>
    %7 = vector.shape_cast %6 : vector<1x1x2x16x128xf32> to vector<2x16x128xf32>
    %cst = arith.constant dense<0.000000e+00> : vector<2x128x128xf32>
    %8 = tpu.matmul %3, %5, %cst {dimension_numbers = #tpu.dot_dimension_numbers<[2], [1], [1], [2], [0, 0, 0, 1, 1, 2], [0], [0]>, precision = #tpu.contract_precision<fp32>} : vector<2x128x16xf32>, vector<2x16x128xf32>, vector<2x128x128xf32> -> vector<2x128x128xf32>
    %c0_13 = arith.constant 0 : index
    %c0_14 = arith.constant 0 : index
    %c0_15 = arith.constant 0 : index
    %9 = vector.load %arg9[%c0_13, %c0_14, %c0_15] : memref<2x128x1xf32, #tpu.memory_space<vmem>>, vector<2x128x1xf32>
    %cst_16 = arith.constant dense<0xFF800000> : vector<2x128xf32>
    %10 = vector.multi_reduction <maximumf>, %8, %cst_16 [2] : vector<2x128x128xf32> to vector<2x128xf32>
    %11 = vector.shape_cast %10 : vector<2x128xf32> to vector<2x128x1xf32>
    %12 = arith.maximumf %9, %11 : vector<2x128x1xf32>
    %13 = arith.subf %9, %12 : vector<2x128x1xf32>
    %14 = math.exp %13 : vector<2x128x1xf32>
    %15 = vector.broadcast %12 : vector<2x128x1xf32> to vector<2x128x128xf32>
    %16 = arith.subf %8, %15 : vector<2x128x128xf32>
    %17 = math.exp %16 : vector<2x128x128xf32>
    %c0_17 = arith.constant 0 : index
    %c0_18 = arith.constant 0 : index
    %c0_19 = arith.constant 0 : index
    %18 = vector.load %arg10[%c0_17, %c0_18, %c0_19] : memref<2x128x1xf32, #tpu.memory_space<vmem>>, vector<2x128x1xf32>
    %19 = arith.mulf %14, %18 : vector<2x128x1xf32>
    %cst_20 = arith.constant dense<0.000000e+00> : vector<2x128xf32>
    %20 = vector.multi_reduction <add>, %17, %cst_20 [2] : vector<2x128x128xf32> to vector<2x128xf32>
    %21 = vector.shape_cast %20 : vector<2x128xf32> to vector<2x128x1xf32>
    %22 = arith.addf %19, %21 : vector<2x128x1xf32>
    %c0_21 = arith.constant 0 : index
    %c0_22 = arith.constant 0 : index
    %c0_23 = arith.constant 0 : index
    %23 = vector.load %arg10[%c0_21, %c0_22, %c0_23] : memref<2x128x1xf32, #tpu.memory_space<vmem>>, vector<2x128x1xf32>
    tpu.vector_store %arg10[%c0_21, %c0_22, %c0_23], %22 {strides = array<i32>} : memref<2x128x1xf32, #tpu.memory_space<vmem>>, vector<2x128x1xf32>,
    %cst_24 = arith.constant dense<0.000000e+00> : vector<2x128x16xf32>
    %24 = tpu.matmul %17, %7, %cst_24 {dimension_numbers = #tpu.dot_dimension_numbers<[2], [2], [1], [1], [0, 0, 0, 1, 1, 1], [0], [0]>, precision = #tpu.contract_precision<fp32>} : vector<2x128x128xf32>, vector<2x16x128xf32>, vector<2x128x16xf32> -> vector<2x128x16xf32>
    %c0_25 = arith.constant 0 : index
    %c0_26 = arith.constant 0 : index
    %c0_27 = arith.constant 0 : index
    %25 = vector.load %arg11[%c0_25, %c0_26, %c0_27] : memref<2x128x16xf32, #tpu.memory_space<vmem>>, vector<2x128x16xf32>
    %26 = vector.broadcast %14 : vector<2x128x1xf32> to vector<2x128x16xf32>
    %27 = arith.mulf %26, %25 : vector<2x128x16xf32>
    %28 = arith.addf %27, %24 : vector<2x128x16xf32>
    %c0_28 = arith.constant 0 : index
    %c0_29 = arith.constant 0 : index
    %c0_30 = arith.constant 0 : index
    %29 = vector.load %arg11[%c0_28, %c0_29, %c0_30] : memref<2x128x16xf32, #tpu.memory_space<vmem>>, vector<2x128x16xf32>
    tpu.vector_store %arg11[%c0_28, %c0_29, %c0_30], %28 {strides = array<i32>} : memref<2x128x16xf32, #tpu.memory_space<vmem>>, vector<2x128x16xf32>,
    %c0_31 = arith.constant 0 : index
    %c0_32 = arith.constant 0 : index
    %c0_33 = arith.constant 0 : index
    %30 = vector.load %arg9[%c0_31, %c0_32, %c0_33] : memref<2x128x1xf32, #tpu.memory_space<vmem>>, vector<2x128x1xf32>
    tpu.vector_store %arg9[%c0_31, %c0_32, %c0_33], %12 {strides = array<i32>} : memref<2x128x1xf32, #tpu.memory_space<vmem>>, vector<2x128x1xf32>,
    %c1_i32 = arith.constant 1 : i32
    %31 = arith.cmpi eq, %arg3, %c1_i32 : i32
    %32 = arith.extui %31 : i1 to i32
    %c0_i32_34 = arith.constant 0 : i32
    %33 = arith.cmpi ne, %32, %c0_i32_34 : i32
    scf.if %33 {
      %c0_35 = arith.constant 0 : index
      %c0_36 = arith.constant 0 : index
      %c0_37 = arith.constant 0 : index
      %34 = vector.load %arg10[%c0_35, %c0_36, %c0_37] : memref<2x128x1xf32, #tpu.memory_space<vmem>>, vector<2x128x1xf32>
      %cst_38 = arith.constant 1.000000e+00 : f32
      %35 = vector.broadcast %cst_38 : f32 to vector<2x128x1xf32>
      %36 = arith.divf %35, %34 : vector<2x128x1xf32>
      %c0_39 = arith.constant 0 : index
      %c0_40 = arith.constant 0 : index
      %c0_41 = arith.constant 0 : index
      %37 = vector.load %arg11[%c0_39, %c0_40, %c0_41] : memref<2x128x16xf32, #tpu.memory_space<vmem>>, vector<2x128x16xf32>
      %38 = vector.broadcast %36 : vector<2x128x1xf32> to vector<2x128x16xf32>
      %39 = arith.mulf %37, %38 : vector<2x128x16xf32>
      %40 = tpu.transpose %39, [0, 2, 1] : vector<2x128x16xf32> -> vector<2x16x128xf32>
      %c0_42 = arith.constant 0 : index
      %c0_43 = arith.constant 0 : index
      %c0_44 = arith.constant 0 : index
      %c0_45 = arith.constant 0 : index
      %41 = vector.load %arg7[%c0_42, %c0_43, %c0_44, %c0_45] : memref<1x2x16x128xf32, #tpu.memory_space<vmem>>, vector<1x2x16x128xf32>
      %42 = vector.shape_cast %41 : vector<1x2x16x128xf32> to vector<2x16x128xf32>
      %43 = vector.shape_cast %40 : vector<2x16x128xf32> to vector<1x2x16x128xf32>
      tpu.vector_store %arg7[%c0_42, %c0_43, %c0_44, %c0_45], %43 {strides = array<i32>} : memref<1x2x16x128xf32, #tpu.memory_space<vmem>>, vector<1x2x16x128xf32>,
    } else {
    }
    return
  }
  func.func @transform_0(%arg0: i32, %arg1: i32, %arg2: i32, %arg3: i32) -> (i32, i32, i32, i32, i32) {
    %c0_i32 = arith.constant 0 : i32
    %c0_i32_0 = arith.constant 0 : i32
    %c0_i32_1 = arith.constant 0 : i32
    return %arg0, %c0_i32, %arg1, %c0_i32_0, %arg2 : i32, i32, i32, i32, i32
  }
  func.func @transform_1(%arg0: i32, %arg1: i32, %arg2: i32, %arg3: i32) -> (i32, i32, i32, i32, i32) {
    %c1_i32 = arith.constant 1 : i32
    %c0_i32 = arith.constant 0 : i32
    %c0_i32_0 = arith.constant 0 : i32
    return %arg0, %c1_i32, %arg1, %c0_i32, %arg3 : i32, i32, i32, i32, i32
  }
  func.func @transform_2(%arg0: i32, %arg1: i32, %arg2: i32, %arg3: i32) -> (i32, i32, i32, i32, i32) {
    %c2_i32 = arith.constant 2 : i32
    %c0_i32 = arith.constant 0 : i32
    %c0_i32_0 = arith.constant 0 : i32
    return %arg0, %c2_i32, %arg1, %c0_i32, %arg3 : i32, i32, i32, i32, i32
  }
  func.func @transform_3(%arg0: i32, %arg1: i32, %arg2: i32, %arg3: i32) -> (i32, i32, i32, i32) {
    %c0_i32 = arith.constant 0 : i32
    %c0_i32_0 = arith.constant 0 : i32
    return %arg0, %arg1, %c0_i32, %arg2 : i32, i32, i32, i32
  }
}

</mosaic_0001>

<bundles_post_ra>
// kernel: tpu_custom_call.1
= control target key start
LH: loop header
LB: loop body
LE: loop exit
PB: predicated region body
PF: predicated region fallthrough
CT: control target
= control target key end

     0   :  { %s11748_s0 = inlined_call_operand.hbm [shape: f32[2,3,4,16,256], index: 0, kind: input, shape index: {}]   ;;  %s11749_s1 = inlined_call_operand.hbm [shape: f32[2,3,4,16,256], index: 1, kind: input, shape index: {}]   ;;  %s11750_s2 = inlined_call_operand.hbm [shape: f32[2,3,4,16,256], index: 2, kind: input, shape index: {}]   ;;  %s11751_s3 = inlined_call_operand.hbm [shape: f32[2,4,16,256], index: 3, kind: output, shape index: {}]  }
   0x1   :  { %11938 = sst [smem:[#allocation113_spill]] %s11749_s1 }
   0x2   :  { %11939 = sst [smem:[#allocation114_spill]] %s11750_s2 }
   0x3   :  { %11940 = sst [smem:[#allocation115_spill]] %s11751_s3 }
   0x4   :  { %8 = vsyncpa [#allocation7], 0 }
   0x5   :  { %10 = vsyncpa [#allocation7 + $0x1], 0 }
   0x6   :  { %11 = vsyncpa [#allocation10], 0 }
   0x7   :  { %13 = vsyncpa [#allocation10 + $0x1], 0 }
   0x8   :  { %14 = vsyncpa [#allocation8], 0 }
   0x9   :  { %16 = vsyncpa [#allocation8 + $0x1], 0  ;;  %s8436_s12 = smov 0   ;;  %s8438_s13 = smov 0  }
   0xa   :  { %s8440_s14 = smov 0   ;;  %s8442_s15 = smov 0  }
   0xb   :  { %s8444_s16 = smov 0   ;;  %s8446_s17 = smov 0  }
   0xc   :  { %s8448_s18 = smov 0   ;;  %s8450_s19 = smov 0  }
   0xd   :  { %s8452_s20 = smov 0   ;;  %s8454_s21 = smov 0  }
   0xe   :  { %s8456_s22 = smov 0   ;;  %s8458_s23 = smov 0  }
   0xf   :  { %s8460_s24 = smov 0   ;;  %s8462_s25 = smov 0  }
  0x10   :  { %s8464_s26 = smov 0  }
  0x11 LB: > { %11941 = sst [smem:[#allocation16_spill]] %s8348_s13  ;;  %s8510_s27 = sadd.s32 4294967295, %s8400_s26   ;;  %s8400_s26 = sphi %s8464_s26, %s22_s26   ;;  %s8396_s25 = sphi %s8462_s25, %s12476_s25   ;;  %s8392_s24 = sphi %s8460_s24, %s12466_s24   ;;  %s8388_s23 = sphi %s8458_s23, %s12465_s23   ;;  %s8384_s22 = sphi %s8456_s22, %s12475_s22   ;;  %s8380_s21 = sphi %s8454_s21, %s12474_s21   ;;  %s8376_s20 = sphi %s8452_s20, %s12464_s20   ;;  %s8372_s19 = sphi %s8450_s19, %s12463_s19   ;;  %s8368_s18 = sphi %s8448_s18, %s12473_s18   ;;  %s8364_s17 = sphi %s8446_s17, %s12472_s17   ;;  %s8360_s16 = sphi %s8444_s16, %s12471_s16   ;;  %s8356_s15 = sphi %s8442_s15, %s12470_s15   ;;  %s8352_s14 = sphi %s8440_s14, %s12469_s14   ;;  %s8348_s13 = sphi %s8438_s13, %s12468_s13   ;;  %s8344_s12 = sphi %s8436_s12, %s12461_s12  }
  0x12   : > { %11942 = sst [smem:[#allocation17_spill]] %s8356_s15  ;;  %s37_s28 = sadd.s32 1, %s8384_s22 }
  0x13   : > { %11943 = sst [smem:[#allocation18_spill]] %s8360_s16  ;;  %p8513_p0 = scmp.ge.s32.totalorder %s37_s28, 2 }
  0x14   : > { %11944 = sst [smem:[#allocation19_spill]] %s8368_s18  ;;  %p67_p1 = scmp.eq.s32.totalorder %s8400_s26, 0 }
  0x15   : > { %11945 = sst [smem:[#allocation20_spill]] %s8372_s19  ;;  %s12478_s28 = smov (%p8513_p0, %s37_s28), 0 }
  0x16   : > { %11946 = sst [smem:[#allocation21_spill]] %s8376_s20  ;;  %p73_p2 = scmp.eq.s32.totalorder %s8510_s27, 0 }
  0x17   : > { %11947 = sst [smem:[#allocation22_spill]] %s8380_s21  ;;  %p96_p3 = scmp.ne.s32.totalorder %s8352_s14, %s8348_s13 }
  0x18   : > { %11948 = sst [smem:[#allocation23_spill]] %s8388_s23  ;;  %p102_p4 = scmp.ne.s32.totalorder %s8348_s13, %s8344_s12 }
  0x19   : > { %11949 = sst [smem:[#allocation24_spill]] %s8392_s24  ;;  %p8533_p5 = por %p96_p3, %p67_p1 }
  0x1a   : > { %11950 = sst [smem:[#allocation25_spill]] %s8510_s27  ;;  %p7830_p6 = scmp.lt.s32.totalorder %s8400_s26, 16 }
  0x1b   : > { %p8540_p7 = por %p102_p4, %p73_p2  ;;  %s11755_s9 = sshll.u32 %s8392_s24, 3 }
  0x1c   : > { %s11764_s10 = smul.u32 48, %s8396_s25  ;;  %s211_s11 = sand.u32 1, %s8400_s26  }
  0x1d   : > { %s11953_s8 = scalar_select %p8540_p7, 1, 0 }
  0x1e   : > { %s213_s5 = sand.u32 1, %s8352_s14   ;;  %s6559_s12 = sadd.s32 %s8384_s22, %s11755_s9 }
  0x1f   : > { %11954 = sst [smem:[#allocation26_spill]] %s11953_s8  ;;  %s8548_s6 = sshll.u32 %s213_s5, 5 }
  0x20   : > { %s6561_s4 = sadd.s32 %s11764_s10, %s6559_s12  ;;  %s215_s30 = scalar_lea.vmem [#allocation9], %s8548_s6 }
  0x21   : > { %s227_s3 = sshll.u32 %s215_s30, 4  ;;  %s6683_s21 = sshll.u32 %s6561_s4, 7  ;;  %s228_s3 = int_to_ptr.vmem [resolvable:$true] %s227_s3 }
  0x22   : > { %s11955_s1 = sld [smem:[#allocation113_spill]]  ;;  %p8563_p8 = pnand %p7830_p6, %p8533_p5 }
  0x23   : > { %s11957_s2 = sld [smem:[#allocation114_spill]]  ;;  %s8572_s30 = scalar_lea.sflag [#allocation10], %s211_s11 }
  0x24   : > { %p11757_p9 = pneg %p8563_p8  ;;  %s8171_s19 = scalar_lea.vmem %s228_s3, 512 }
  0x25   : > { %p8172_p10 = scmp.ne.s32.totalorder %s228_s3, %s8171_s19  ;;  %s8402_s20 = smov [#allocation9]  }
  0x26   : > { %s8176_s4 = sshll.u32 %s8402_s20, 4  ;;  %s8177_s4 = int_to_ptr.vmem [resolvable:$false] %s8176_s4 }
  0x27   : > { %p8174_p11 = pnand %p8172_p10, %p11757_p9  ;;  %s8178_s7 = scalar_lea.vmem %s8177_s4, 1024 }
  0x28   : > { %s6563_s18 = scalar_lea.hbm %s11955_s1, %s6683_s21  ;;  %p8179_p13 = scmp.lt.s32.totalorder %s228_s3, %s8177_s4 }
  0x29   : > { %s6564_s5 = scalar_lea.hbm %s6563_s18, 2048  ;;  %s8570_s12 = scalar_lea.hbm %s11957_s2, %s6683_s21 }
  0x2a   : > { %11958 = sst [smem:[#allocation27_spill]] %s8570_s12  ;;  %p8175_p12 = pneg %p8174_p11 }
  0x2b   : > { %p8180_p3 = scmp.lt.s32.totalorder %s8178_s7, %s8171_s19 }
  0x2d   : > { %p8181_p4 = por %p8180_p3, %p8179_p13 }
  0x2f   : > { %p8182_p5 = pnand %p8181_p4, %p8175_p12 }
  0x31   : > { %8185 = shalt.err (!%p8182_p5)
}
  0x32   : > { %s11758_s13 = smov 256   ;;  %s11760_s18 = smov 128  }
  0x33   : > { %s11762_s21 = smov 8   ;;  %s241_s11 = scalar_lea.vmem [#allocation11], %s8548_s6 }
  0x34   : > { %7822 = dma.hbm_to_vmem [thread:$0]  (!%p8563_p8), %s6564_s5, 512, %s228_s3, %s8572_s30, %s11758_s13, %s11760_s18, %s11762_s21  }
  0x35   : > { %s253_s19 = sshll.u32 %s241_s11, 4  ;;  %p6687_p10 = scmp.ge.s32.totalorder %s8400_s26, 1  ;;  %s8587_s19 = int_to_ptr.vmem [resolvable:$true] %s253_s19 }
  0x36   : > { %p261_p11 = scmp.lt.s32.totalorder %s8400_s26, 17  ;;  %s6674_s4 = sadd.s32 4294967294, %s8400_s26  }
  0x37   : > { %s40_s3 = sadd.s32 1, %s8388_s23  ;;  %p66_p13 = scmp.ne.s32.totalorder %s8364_s17, %s8360_s16 }
  0x38   : > { %p8591_p12 = pnand %p6687_p10, %p261_p11  ;;  %s12480_s3 = smov (!%p8513_p0, %s40_s3), %s8388_s23 }
  0x39   : > { %p42_p3 = scmp.ge.s32.totalorder %s12480_s3, 2  ;;  %p72_p4 = scmp.ne.s32.totalorder %s8360_s16, %s8356_s15 }
  0x3a   : > { %s11959_s20 = scalar_select %p8591_p12, 1, 0 }
  0x3b   : > { %p8607_p5 = por %p67_p1, %p66_p13  ;;  %p160_p10 = scmp.eq.s32.totalorder %s8510_s27, 15 }
  0x3c   : > { %11960 = sst [smem:[#allocation28_spill]] %s11959_s20  ;;  %s12482_s3 = smov (%p42_p3, %s12480_s3), 0 }
  0x3d   : > { %11962 = sst [smem:[#allocation29_spill]] %s12482_s3  ;;  %s11963_s29 = sadd.s32 1, %s8392_s24 }
  0x3e   : > { %s12484_s29 = smov (!%p42_p3, %s11963_s29), %s8392_s24  ;;  %s55_s7 = ssub.s32 %s8388_s23, %s12482_s3 }
  0x3f   : > { %p8624_p0 = por %p73_p2, %p72_p4  ;;  %p46_p1 = scmp.ge.s32.totalorder %s12484_s29, 2 }
  0x40   : > { %p8628_p11 = por %p160_p10, %p66_p13  ;;  %p166_p9 = scmp.eq.s32.totalorder %s6674_s4, 15 }
  0x41   : > { %s11964_s11 = scalar_select %p8624_p0, 1, 0 }
  0x42   : > { %s11966_s9 = scalar_select %p8628_p11, 1, 0 }
  0x43   : > { %11965 = sst [smem:[#allocation30_spill]] %s11964_s11  ;;  %s186_s13 = sand.u32 1, %s8364_s17  }
  0x44   : > { %11967 = sst [smem:[#allocation31_spill]] %s11966_s9  ;;  %s12486_s29 = smov (%p46_p1, %s12484_s29), 0 }
  0x45   : > { %11968 = sst [smem:[#allocation32_spill]] %s12486_s29  ;;  %s11969_s18 = sadd.s32 1, %s8396_s25 }
  0x46   : > { %s12488_s18 = smov (!%p46_p1, %s11969_s18), %s8396_s25  ;;  %s53_s21 = ssub.s32 %s8392_s24, %s12486_s29 }
  0x47   : > { %p8643_p2 = por %p166_p9, %p72_p4  ;;  %p50_p13 = scmp.ge.s32.totalorder %s12488_s18, 2 }
  0x48   : > { %s6677_s4 = sshll.u32 %s186_s13, 5  ;;  %s11972_s10 = sshll.u32 %s8392_s24, 3 }
  0x49   : > { %s11970_s6 = scalar_select %p8643_p2, 1, 0 }
  0x4a   : > { %s196_s1 = sadd.s32 %s8388_s23, %s11972_s10  ;;  %s12490_s18 = smov (%p50_p13, %s12488_s18), 0 }
  0x4b   : > { %11971 = sst [smem:[#allocation33_spill]] %s11970_s6  ;;  %s11973_s2 = smul.u32 48, %s8396_s25 }
  0x4c   : > { %s52_s3 = ssub.s32 %s8396_s25, %s12490_s18  ;;  %s11974_s20 = ssub.s32 %s8384_s22, %s12478_s28 }
  0x4d   : > { %s198_s29 = sadd.s32 %s11973_s2, %s196_s1  ;;  %s54_s9 = sor.u32 %s53_s21, %s52_s3 }
  0x4e   : > { %s6680_s15 = sshll.u32 %s198_s29, 7  ;;  %s56_s16 = sor.u32 %s55_s7, %s54_s9 }
  0x4f   : > { %s8659_s11 = scalar_lea.hbm %s11748_s0, %s6680_s15  ;;  %s86_s12 = sor.u32 %s11974_s20, %s54_s9 }
  0x50   : > { %p57_p9 = scmp.eq.s32.totalorder %s56_s16, 0  ;;  %p87_p3 = scmp.eq.s32.totalorder %s86_s12, 0 }
  0x51   : > { %s190_s24 = scalar_lea.vmem [#allocation6], %s6677_s4  ;;  %p8668_p4 = pnand %p7830_p6, %p8607_p5 }
  0x52   : > { %s201_s10 = sshll.u32 %s190_s24, 4  ;;  %s11976_s1 = sadd.s32 1, %s8364_s17  ;;  %s202_s10 = int_to_ptr.vmem [resolvable:$true] %s201_s10 }
  0x53   : > { %s8675_s2 = scalar_select %p57_p9, %s8364_s17, %s11976_s1  }
  0x54   : > { %s11977_s27 = sadd.s32 1, %s8352_s14  ;;  %s187_s21 = scalar_lea.sflag [#allocation7], %s186_s13 }
  0x55   : > { %s8680_s15 = scalar_select %p87_p3, %s8352_s14, %s11977_s27  }
  0x56   : > { %p8189_p10 = pneg %p8668_p4  ;;  %s8200_s16 = scalar_lea.vmem %s202_s10, 512 }
  0x57   : > { %p8201_p1 = scmp.ne.s32.totalorder %s202_s10, %s8200_s16  ;;  %s8406_s24 = smov [#allocation6]  }
  0x58   : > { %s8205_s12 = sshll.u32 %s8406_s24, 4  ;;  %s8206_s12 = int_to_ptr.vmem [resolvable:$false] %s8205_s12 }
  0x59   : > { %p8203_p13 = pnand %p8201_p1, %p8189_p10  ;;  %s8207_s9 = scalar_lea.vmem %s8206_s12, 1024 }
  0x5a   : > { %p8208_p6 = scmp.lt.s32.totalorder %s202_s10, %s8206_s12  ;;  %p8209_p5 = scmp.lt.s32.totalorder %s8207_s9, %s8200_s16 }
  0x5b   : > { %p8204_p2 = pneg %p8203_p13 }
  0x5c   : > { %p8210_p11 = por %p8209_p5, %p8208_p6 }
  0x5e   : > { %p8211_p9 = pnand %p8210_p11, %p8204_p2 }
  0x60   : > { %8214 = shalt.err (!%p8211_p9)
}
  0x61   : > { %s11978_s20 = smov 8   ;;  %s11979_s3 = smov 128  }
  0x62   : > { %s11980_s13 = smov 256   ;;  %s8228_s6 = scalar_lea.vmem %s8587_s19, 512 }
  0x63   : > { %7819 = dma.hbm_to_vmem [thread:$0]  (!%p8668_p4), %s8659_s11, 512, %s202_s10, %s187_s21, %s11980_s13, %s11979_s3, %s11978_s20  }
  0x64   : > { %p8229_p3 = scmp.ne.s32.totalorder %s8587_s19, %s8228_s6  ;;  %p11981_p10 = pneg %p8563_p8 }
  0x65   : > { %s8407_s5 = smov [#allocation11]  }
  0x66   : > { %p8231_p1 = pnand %p8229_p3, %p11981_p10  ;;  %s8233_s29 = sshll.u32 %s8407_s5, 4  ;;  %s8234_s29 = int_to_ptr.vmem [resolvable:$false] %s8233_s29 }
  0x67   : > { %s8235_s7 = scalar_lea.vmem %s8234_s29, 1024  ;;  %p8236_p11 = scmp.lt.s32.totalorder %s8587_s19, %s8234_s29 }
  0x68   : > { %p8232_p13 = pneg %p8231_p1  ;;  %p8237_p2 = scmp.lt.s32.totalorder %s8235_s7, %s8228_s6 }
  0x6a   : > { %p8238_p6 = por %p8237_p2, %p8236_p11 }
  0x6c   : > { %p8239_p5 = pnand %p8238_p6, %p8232_p13 }
  0x6e   : > { %8242 = shalt.err (!%p8239_p5)
}
  0x6f   : > { %s11982_s23 = sld [smem:[#allocation27_spill]] }
  0x72   : > { %265 = sbr.rel (%p8591_p12) target bundleno = 1760 (0x6e0), region = 32 }
  0x75   : > { %s11983_s11 = scalar_lea.hbm %s11982_s23, 4096 }
  0x76   : > { %7825 = dma.hbm_to_vmem [thread:$0]  (!%p8563_p8), %s11983_s11, 512, %s8587_s19, %s8572_s30, %s11980_s13, %s11979_s3, %s11978_s20  }
  0x77   : > { %s11985_s10 = sld [smem:[#allocation18_spill]] }
  0x7d   : > { %s8708_s27 = sand.u32 1, %s11985_s10  }
  0x7e   : > { %s6688_s21 = sshll.u32 %s8708_s27, 5  ;;  %s268_s16 = scalar_lea.sflag [#allocation7], %s8708_s27 }
  0x7f   : > { %s271_s8 = scalar_lea.vmem [#allocation6], %s6688_s21 }
  0x80   : > { %8331 = dma.done.wait (%p8624_p0), %s268_s16, 512  }
  0x81   : > { %8333 = vsyncadd (%p8624_p0), %s268_s16, 4294966784  ;;  %s11987_s24 = sld [smem:[#allocation25_spill]] }
  0x82   : > { %s11988_s12 = sld [smem:[#allocation16_spill]] }
  0x87   : > { %s276_s19 = sand.u32 1, %s11987_s24  }
  0x88   : > { %s278_s9 = sand.u32 1, %s11988_s12   ;;  %s277_s3 = scalar_lea.sflag [#allocation10], %s276_s19 }
  0x89   : > { %s6689_s20 = sshll.u32 %s278_s9, 5 }
  0x8a   : > { %s8718_s13 = scalar_lea.vmem [#allocation9], %s6689_s20 }
  0x8b   : > { %8335 = dma.done.wait (%p8540_p7), %s277_s3, 1024  }
  0x8c   : > { %8337 = vsyncadd (%p8540_p7), %s277_s3, 4294966272  ;;  %s8724_s6 = scalar_lea.vmem [#allocation11], %s6689_s20  ;;  %s8726_s5 = scalar_lea.vmem [#allocation12], %s6688_s21 }
  0x8d   : > { %s11990_s29 = sld [smem:[#allocation19_spill]] }
  0x93   : > { %p6692_p8 = scmp.ne.s32.totalorder %s11990_s29, 0 }
  0x95   : > { %329 = sbr.rel (%p6692_p8) target bundleno = 343 (0x157), region = 48 }
  0x9a   : > { %v332_v0 = vld [vmem:[%s271_s8 + $0x10] sm:$0xff]  ;;  %v330_v1 = vld [vmem:[%s271_s8] sm:$0xff]  ;;  %v333_v2 = vld [vmem:[%s271_s8 + $0x18] sm:$0xff]  ;;  %vm430_vm0 = vcmask 130048   ;;  %vm463_vm1 = vcmask 7168   ;;  %v8408_v4 = vmov -inf  }
  0x9b   : > { %366 = vxpose.xlu1.b32.start [1/2] (short) %v332_v0, 128  ;;  %334 = vxpose.xlu0.b32.start [1/2] (short) %v330_v1, 128  ;;  %v331_v3 = vld [vmem:[%s271_s8 + $0x8] sm:$0xff]  ;;  %464 = vst.msk [vmem:[#allocation3] sm:$0xff] %vm463_vm1, %v8408_v4  ;;  %465 = vst.msk [vmem:[#allocation3 + $0x8] sm:$0xff] %vm463_vm1, %v8408_v4  ;;  %v8409_v5 = vmov 0.0  }
  0x9c   : > { %466 = vst.msk [vmem:[#allocation3 + $0x10] sm:$0xff] %vm463_vm1, %v8408_v4  ;;  %467 = vst.msk [vmem:[#allocation3 + $0x18] sm:$0xff] %vm463_vm1, %v8408_v4 }
  0x9d   : > { %468 = vst.msk [vmem:[#allocation3 + $0x20] sm:$0xff] %vm463_vm1, %v8408_v4  ;;  %469 = vst.msk [vmem:[#allocation3 + $0x28] sm:$0xff] %vm463_vm1, %v8408_v4 }
  0x9e   : > { %470 = vst.msk [vmem:[#allocation3 + $0x30] sm:$0xff] %vm463_vm1, %v8408_v4  ;;  %471 = vst.msk [vmem:[#allocation3 + $0x38] sm:$0xff] %vm463_vm1, %v8408_v4 }
  0x9f   : > { %367 = vxpose.xlu1.b32.end [2/2] (short) %v333_v2, 128  ;;  %335 = vxpose.xlu0.b32.end [2/2] (short) %v331_v3, 128  ;;  %472 = vst.msk [vmem:[#allocation3 + $0x40] sm:$0xff] %vm463_vm1, %v8408_v4  ;;  %473 = vst.msk [vmem:[#allocation3 + $0x48] sm:$0xff] %vm463_vm1, %v8408_v4 }
  0xa0   : > { %474 = vst.msk [vmem:[#allocation3 + $0x50] sm:$0xff] %vm463_vm1, %v8408_v4  ;;  %475 = vst.msk [vmem:[#allocation3 + $0x58] sm:$0xff] %vm463_vm1, %v8408_v4 }
  0xa1   : > { %476 = vst.msk [vmem:[#allocation3 + $0x60] sm:$0xff] %vm463_vm1, %v8408_v4  ;;  %477 = vst.msk [vmem:[#allocation3 + $0x68] sm:$0xff] %vm463_vm1, %v8408_v4 }
  0xa2   : > { %478 = vst.msk [vmem:[#allocation3 + $0x70] sm:$0xff] %vm463_vm1, %v8408_v4  ;;  %479 = vst.msk [vmem:[#allocation3 + $0x78] sm:$0xff] %vm463_vm1, %v8408_v4 }
  0xa3   : > { %480 = vst.msk [vmem:[#allocation3 + $0x80] sm:$0xff] %vm463_vm1, %v8408_v4  ;;  %481 = vst.msk [vmem:[#allocation3 + $0x88] sm:$0xff] %vm463_vm1, %v8408_v4 }
  0xa4   : > { %482 = vst.msk [vmem:[#allocation3 + $0x90] sm:$0xff] %vm463_vm1, %v8408_v4  ;;  %483 = vst.msk [vmem:[#allocation3 + $0x98] sm:$0xff] %vm463_vm1, %v8408_v4 }
  0xa5   : > { %484 = vst.msk [vmem:[#allocation3 + $0xa0] sm:$0xff] %vm463_vm1, %v8408_v4  ;;  %485 = vst.msk [vmem:[#allocation3 + $0xa8] sm:$0xff] %vm463_vm1, %v8408_v4 }
  0xa6   : > { %486 = vst.msk [vmem:[#allocation3 + $0xb0] sm:$0xff] %vm463_vm1, %v8408_v4  ;;  %487 = vst.msk [vmem:[#allocation3 + $0xb8] sm:$0xff] %vm463_vm1, %v8408_v4 }
  0xa7   : > { %488 = vst.msk [vmem:[#allocation3 + $0xc0] sm:$0xff] %vm463_vm1, %v8408_v4  ;;  %489 = vst.msk [vmem:[#allocation3 + $0xc8] sm:$0xff] %vm463_vm1, %v8408_v4 }
  0xa8   : > { %490 = vst.msk [vmem:[#allocation3 + $0xd0] sm:$0xff] %vm463_vm1, %v8408_v4  ;;  %491 = vst.msk [vmem:[#allocation3 + $0xd8] sm:$0xff] %vm463_vm1, %v8408_v4 }
  0xa9   : > { %492 = vst.msk [vmem:[#allocation3 + $0xe0] sm:$0xff] %vm463_vm1, %v8408_v4  ;;  %493 = vst.msk [vmem:[#allocation3 + $0xe8] sm:$0xff] %vm463_vm1, %v8408_v4 }
  0xaa   : > { %494 = vst.msk [vmem:[#allocation3 + $0xf0] sm:$0xff] %vm463_vm1, %v8408_v4  ;;  %495 = vst.msk [vmem:[#allocation3 + $0xf8] sm:$0xff] %vm463_vm1, %v8408_v4 }
  0xab   : > { %496 = vst.msk [vmem:[#allocation4] sm:$0xff] %vm463_vm1, %v8409_v5  ;;  %497 = vst.msk [vmem:[#allocation4 + $0x8] sm:$0xff] %vm463_vm1, %v8409_v5 }
  0xac   : > { %498 = vst.msk [vmem:[#allocation4 + $0x10] sm:$0xff] %vm463_vm1, %v8409_v5  ;;  %499 = vst.msk [vmem:[#allocation4 + $0x18] sm:$0xff] %vm463_vm1, %v8409_v5 }
  0xad   : > { %500 = vst.msk [vmem:[#allocation4 + $0x20] sm:$0xff] %vm463_vm1, %v8409_v5  ;;  %501 = vst.msk [vmem:[#allocation4 + $0x28] sm:$0xff] %vm463_vm1, %v8409_v5 }
  0xae   : > { %502 = vst.msk [vmem:[#allocation4 + $0x30] sm:$0xff] %vm463_vm1, %v8409_v5  ;;  %503 = vst.msk [vmem:[#allocation4 + $0x38] sm:$0xff] %vm463_vm1, %v8409_v5 }
  0xaf   : > { %504 = vst.msk [vmem:[#allocation4 + $0x40] sm:$0xff] %vm463_vm1, %v8409_v5  ;;  %505 = vst.msk [vmem:[#allocation4 + $0x48] sm:$0xff] %vm463_vm1, %v8409_v5 }
  0xb0   : > { %506 = vst.msk [vmem:[#allocation4 + $0x50] sm:$0xff] %vm463_vm1, %v8409_v5  ;;  %507 = vst.msk [vmem:[#allocation4 + $0x58] sm:$0xff] %vm463_vm1, %v8409_v5 }
  0xb1   : > { %508 = vst.msk [vmem:[#allocation4 + $0x60] sm:$0xff] %vm463_vm1, %v8409_v5  ;;  %509 = vst.msk [vmem:[#allocation4 + $0x68] sm:$0xff] %vm463_vm1, %v8409_v5 }
  0xb2   : > { %510 = vst.msk [vmem:[#allocation4 + $0x70] sm:$0xff] %vm463_vm1, %v8409_v5  ;;  %511 = vst.msk [vmem:[#allocation4 + $0x78] sm:$0xff] %vm463_vm1, %v8409_v5 }
  0xb3   : > { %512 = vst.msk [vmem:[#allocation4 + $0x80] sm:$0xff] %vm463_vm1, %v8409_v5  ;;  %513 = vst.msk [vmem:[#allocation4 + $0x88] sm:$0xff] %vm463_vm1, %v8409_v5 }
  0xb4   : > { %514 = vst.msk [vmem:[#allocation4 + $0x90] sm:$0xff] %vm463_vm1, %v8409_v5  ;;  %515 = vst.msk [vmem:[#allocation4 + $0x98] sm:$0xff] %vm463_vm1, %v8409_v5 }
  0xb5   : > { %516 = vst.msk [vmem:[#allocation4 + $0xa0] sm:$0xff] %vm463_vm1, %v8409_v5  ;;  %517 = vst.msk [vmem:[#allocation4 + $0xa8] sm:$0xff] %vm463_vm1, %v8409_v5 }
  0xb6   : > { %518 = vst.msk [vmem:[#allocation4 + $0xb0] sm:$0xff] %vm463_vm1, %v8409_v5  ;;  %519 = vst.msk [vmem:[#allocation4 + $0xb8] sm:$0xff] %vm463_vm1, %v8409_v5 }
  0xb7   : > { %520 = vst.msk [vmem:[#allocation4 + $0xc0] sm:$0xff] %vm463_vm1, %v8409_v5  ;;  %521 = vst.msk [vmem:[#allocation4 + $0xc8] sm:$0xff] %vm463_vm1, %v8409_v5 }
  0xb8   : > { %522 = vst.msk [vmem:[#allocation4 + $0xd0] sm:$0xff] %vm463_vm1, %v8409_v5  ;;  %523 = vst.msk [vmem:[#allocation4 + $0xd8] sm:$0xff] %vm463_vm1, %v8409_v5 }
  0xb9   : > { %524 = vst.msk [vmem:[#allocation4 + $0xe0] sm:$0xff] %vm463_vm1, %v8409_v5  ;;  %525 = vst.msk [vmem:[#allocation4 + $0xe8] sm:$0xff] %vm463_vm1, %v8409_v5 }
  0xba   : > { %526 = vst.msk [vmem:[#allocation4 + $0xf0] sm:$0xff] %vm463_vm1, %v8409_v5  ;;  %527 = vst.msk [vmem:[#allocation4 + $0xf8] sm:$0xff] %vm463_vm1, %v8409_v5 }
  0xbb   : > { %528 = vst.msk [vmem:[#allocation5] sm:$0xff] %vm430_vm0, %v8409_v5  ;;  %529 = vst.msk [vmem:[#allocation5 + $0x8] sm:$0xff] %vm430_vm0, %v8409_v5 }
  0xbc   : > { %530 = vst.msk [vmem:[#allocation5 + $0x10] sm:$0xff] %vm430_vm0, %v8409_v5  ;;  %531 = vst.msk [vmem:[#allocation5 + $0x18] sm:$0xff] %vm430_vm0, %v8409_v5 }
  0xbd   : > { %532 = vst.msk [vmem:[#allocation5 + $0x20] sm:$0xff] %vm430_vm0, %v8409_v5  ;;  %533 = vst.msk [vmem:[#allocation5 + $0x28] sm:$0xff] %vm430_vm0, %v8409_v5 }
  0xbe   : > { %534 = vst.msk [vmem:[#allocation5 + $0x30] sm:$0xff] %vm430_vm0, %v8409_v5  ;;  %535 = vst.msk [vmem:[#allocation5 + $0x38] sm:$0xff] %vm430_vm0, %v8409_v5 }
  0xbf   : > { %536 = vst.msk [vmem:[#allocation5 + $0x40] sm:$0xff] %vm430_vm0, %v8409_v5  ;;  %537 = vst.msk [vmem:[#allocation5 + $0x48] sm:$0xff] %vm430_vm0, %v8409_v5 }
  0xc0   : > { %538 = vst.msk [vmem:[#allocation5 + $0x50] sm:$0xff] %vm430_vm0, %v8409_v5  ;;  %539 = vst.msk [vmem:[#allocation5 + $0x58] sm:$0xff] %vm430_vm0, %v8409_v5 }
  0xc1   : > { %540 = vst.msk [vmem:[#allocation5 + $0x60] sm:$0xff] %vm430_vm0, %v8409_v5  ;;  %541 = vst.msk [vmem:[#allocation5 + $0x68] sm:$0xff] %vm430_vm0, %v8409_v5 }
  0xc2   : > { %542 = vst.msk [vmem:[#allocation5 + $0x70] sm:$0xff] %vm430_vm0, %v8409_v5  ;;  %543 = vst.msk [vmem:[#allocation5 + $0x78] sm:$0xff] %vm430_vm0, %v8409_v5 }
  0xc3   : > { %544 = vst.msk [vmem:[#allocation5 + $0x80] sm:$0xff] %vm430_vm0, %v8409_v5  ;;  %545 = vst.msk [vmem:[#allocation5 + $0x88] sm:$0xff] %vm430_vm0, %v8409_v5 }
  0xc4   : > { %546 = vst.msk [vmem:[#allocation5 + $0x90] sm:$0xff] %vm430_vm0, %v8409_v5  ;;  %547 = vst.msk [vmem:[#allocation5 + $0x98] sm:$0xff] %vm430_vm0, %v8409_v5 }
  0xc5   : > { %548 = vst.msk [vmem:[#allocation5 + $0xa0] sm:$0xff] %vm430_vm0, %v8409_v5  ;;  %549 = vst.msk [vmem:[#allocation5 + $0xa8] sm:$0xff] %vm430_vm0, %v8409_v5 }
  0xc6   : > { %550 = vst.msk [vmem:[#allocation5 + $0xb0] sm:$0xff] %vm430_vm0, %v8409_v5  ;;  %551 = vst.msk [vmem:[#allocation5 + $0xb8] sm:$0xff] %vm430_vm0, %v8409_v5 }
  0xc7   : > { %552 = vst.msk [vmem:[#allocation5 + $0xc0] sm:$0xff] %vm430_vm0, %v8409_v5  ;;  %553 = vst.msk [vmem:[#allocation5 + $0xc8] sm:$0xff] %vm430_vm0, %v8409_v5 }
  0xc8   : > { %554 = vst.msk [vmem:[#allocation5 + $0xd0] sm:$0xff] %vm430_vm0, %v8409_v5  ;;  %555 = vst.msk [vmem:[#allocation5 + $0xd8] sm:$0xff] %vm430_vm0, %v8409_v5 }
  0xc9   : > { %556 = vst.msk [vmem:[#allocation5 + $0xe0] sm:$0xff] %vm430_vm0, %v8409_v5  ;;  %557 = vst.msk [vmem:[#allocation5 + $0xe8] sm:$0xff] %vm430_vm0, %v8409_v5 }
  0xca   : > { %558 = vst.msk [vmem:[#allocation5 + $0xf0] sm:$0xff] %vm430_vm0, %v8409_v5  ;;  %559 = vst.msk [vmem:[#allocation5 + $0xf8] sm:$0xff] %vm430_vm0, %v8409_v5 }
 0x117   : > { %v382_v6 = vpop.trf.xlu1  ;;  %v350_v7 = vpop.trf.xlu0 }
 0x118   : > { %v414_v8 = vmul.f32 0.25, %v382_v6  ;;  %v398_v9 = vmul.f32 0.25, %v350_v7 }
 0x11a   : > { %447 = vst.msk [vmem:[#allocation2 + $0x80] sm:$0xff] %vm430_vm0, %v414_v8  ;;  %431 = vst.msk [vmem:[#allocation2] sm:$0xff] %vm430_vm0, %v398_v9 }
 0x11b   : > { %v383_v10 = vpop.trf.xlu1  ;;  %v351_v11 = vpop.trf.xlu0 }
 0x11c   : > { %v415_v12 = vmul.f32 0.25, %v383_v10  ;;  %v399_v13 = vmul.f32 0.25, %v351_v11 }
 0x11e   : > { %448 = vst.msk [vmem:[#allocation2 + $0x88] sm:$0xff] %vm430_vm0, %v415_v12  ;;  %432 = vst.msk [vmem:[#allocation2 + $0x8] sm:$0xff] %vm430_vm0, %v399_v13 }
 0x11f   : > { %v384_v14 = vpop.trf.xlu1  ;;  %v352_v15 = vpop.trf.xlu0 }
 0x120   : > { %v416_v16 = vmul.f32 0.25, %v384_v14  ;;  %v400_v17 = vmul.f32 0.25, %v352_v15 }
 0x122   : > { %449 = vst.msk [vmem:[#allocation2 + $0x90] sm:$0xff] %vm430_vm0, %v416_v16  ;;  %433 = vst.msk [vmem:[#allocation2 + $0x10] sm:$0xff] %vm430_vm0, %v400_v17 }
 0x123   : > { %v385_v18 = vpop.trf.xlu1  ;;  %v353_v19 = vpop.trf.xlu0 }
 0x124   : > { %v417_v20 = vmul.f32 0.25, %v385_v18  ;;  %v401_v21 = vmul.f32 0.25, %v353_v19 }
 0x126   : > { %450 = vst.msk [vmem:[#allocation2 + $0x98] sm:$0xff] %vm430_vm0, %v417_v20  ;;  %434 = vst.msk [vmem:[#allocation2 + $0x18] sm:$0xff] %vm430_vm0, %v401_v21 }
 0x127   : > { %v386_v22 = vpop.trf.xlu1  ;;  %v354_v23 = vpop.trf.xlu0 }
 0x128   : > { %v418_v24 = vmul.f32 0.25, %v386_v22  ;;  %v402_v25 = vmul.f32 0.25, %v354_v23 }
 0x12a   : > { %451 = vst.msk [vmem:[#allocation2 + $0xa0] sm:$0xff] %vm430_vm0, %v418_v24  ;;  %435 = vst.msk [vmem:[#allocation2 + $0x20] sm:$0xff] %vm430_vm0, %v402_v25 }
 0x12b   : > { %v387_v26 = vpop.trf.xlu1  ;;  %v355_v27 = vpop.trf.xlu0 }
 0x12c   : > { %v419_v28 = vmul.f32 0.25, %v387_v26  ;;  %v403_v29 = vmul.f32 0.25, %v355_v27 }
 0x12e   : > { %452 = vst.msk [vmem:[#allocation2 + $0xa8] sm:$0xff] %vm430_vm0, %v419_v28  ;;  %436 = vst.msk [vmem:[#allocation2 + $0x28] sm:$0xff] %vm430_vm0, %v403_v29 }
 0x12f   : > { %v388_v30 = vpop.trf.xlu1  ;;  %v356_v31 = vpop.trf.xlu0 }
 0x130   : > { %v420_v32 = vmul.f32 0.25, %v388_v30  ;;  %v404_v33 = vmul.f32 0.25, %v356_v31 }
 0x132   : > { %453 = vst.msk [vmem:[#allocation2 + $0xb0] sm:$0xff] %vm430_vm0, %v420_v32  ;;  %437 = vst.msk [vmem:[#allocation2 + $0x30] sm:$0xff] %vm430_vm0, %v404_v33 }
 0x133   : > { %v389_v34 = vpop.trf.xlu1  ;;  %v357_v35 = vpop.trf.xlu0 }
 0x134   : > { %v421_v36 = vmul.f32 0.25, %v389_v34  ;;  %v405_v37 = vmul.f32 0.25, %v357_v35 }
 0x136   : > { %454 = vst.msk [vmem:[#allocation2 + $0xb8] sm:$0xff] %vm430_vm0, %v421_v36  ;;  %438 = vst.msk [vmem:[#allocation2 + $0x38] sm:$0xff] %vm430_vm0, %v405_v37 }
 0x137   : > { %v390_v38 = vpop.trf.xlu1  ;;  %v358_v39 = vpop.trf.xlu0 }
 0x138   : > { %v422_v40 = vmul.f32 0.25, %v390_v38  ;;  %v406_v41 = vmul.f32 0.25, %v358_v39 }
 0x13a   : > { %455 = vst.msk [vmem:[#allocation2 + $0xc0] sm:$0xff] %vm430_vm0, %v422_v40  ;;  %439 = vst.msk [vmem:[#allocation2 + $0x40] sm:$0xff] %vm430_vm0, %v406_v41 }
 0x13b   : > { %v391_v42 = vpop.trf.xlu1  ;;  %v359_v43 = vpop.trf.xlu0 }
 0x13c   : > { %v423_v44 = vmul.f32 0.25, %v391_v42  ;;  %v407_v45 = vmul.f32 0.25, %v359_v43 }
 0x13e   : > { %456 = vst.msk [vmem:[#allocation2 + $0xc8] sm:$0xff] %vm430_vm0, %v423_v44  ;;  %440 = vst.msk [vmem:[#allocation2 + $0x48] sm:$0xff] %vm430_vm0, %v407_v45 }
 0x13f   : > { %v392_v46 = vpop.trf.xlu1  ;;  %v360_v47 = vpop.trf.xlu0 }
 0x140   : > { %v424_v48 = vmul.f32 0.25, %v392_v46  ;;  %v408_v49 = vmul.f32 0.25, %v360_v47 }
 0x142   : > { %457 = vst.msk [vmem:[#allocation2 + $0xd0] sm:$0xff] %vm430_vm0, %v424_v48  ;;  %441 = vst.msk [vmem:[#allocation2 + $0x50] sm:$0xff] %vm430_vm0, %v408_v49 }
 0x143   : > { %v393_v50 = vpop.trf.xlu1  ;;  %v361_v51 = vpop.trf.xlu0 }
 0x144   : > { %v425_v52 = vmul.f32 0.25, %v393_v50  ;;  %v409_v53 = vmul.f32 0.25, %v361_v51 }
 0x146   : > { %458 = vst.msk [vmem:[#allocation2 + $0xd8] sm:$0xff] %vm430_vm0, %v425_v52  ;;  %442 = vst.msk [vmem:[#allocation2 + $0x58] sm:$0xff] %vm430_vm0, %v409_v53 }
 0x147   : > { %v394_v54 = vpop.trf.xlu1  ;;  %v362_v55 = vpop.trf.xlu0 }
 0x148   : > { %v426_v56 = vmul.f32 0.25, %v394_v54  ;;  %v410_v57 = vmul.f32 0.25, %v362_v55 }
 0x14a   : > { %459 = vst.msk [vmem:[#allocation2 + $0xe0] sm:$0xff] %vm430_vm0, %v426_v56  ;;  %443 = vst.msk [vmem:[#allocation2 + $0x60] sm:$0xff] %vm430_vm0, %v410_v57 }
 0x14b   : > { %v395_v58 = vpop.trf.xlu1  ;;  %v363_v59 = vpop.trf.xlu0 }
 0x14c   : > { %v427_v60 = vmul.f32 0.25, %v395_v58  ;;  %v411_v61 = vmul.f32 0.25, %v363_v59 }
 0x14e   : > { %460 = vst.msk [vmem:[#allocation2 + $0xe8] sm:$0xff] %vm430_vm0, %v427_v60  ;;  %444 = vst.msk [vmem:[#allocation2 + $0x68] sm:$0xff] %vm430_vm0, %v411_v61 }
 0x14f   : > { %v396_v62 = vpop.trf.xlu1  ;;  %v364_v63 = vpop.trf.xlu0 }
 0x150   : > { %v428_v0 = vmul.f32 0.25, %v396_v62  ;;  %v412_v1 = vmul.f32 0.25, %v364_v63 }
 0x152   : > { %461 = vst.msk [vmem:[#allocation2 + $0xf0] sm:$0xff] %vm430_vm0, %v428_v0  ;;  %445 = vst.msk [vmem:[#allocation2 + $0x70] sm:$0xff] %vm430_vm0, %v412_v1 }
 0x153   : > { %v397_v2 = vpop.trf.xlu1  ;;  %v365_v3 = vpop.trf.xlu0 }
 0x154   : > { %v429_v4 = vmul.f32 0.25, %v397_v2  ;;  %v413_v5 = vmul.f32 0.25, %v365_v3 }
 0x156   : > { %462 = vst.msk [vmem:[#allocation2 + $0xf8] sm:$0xff] %vm430_vm0, %v429_v4  ;;  %446 = vst.msk [vmem:[#allocation2 + $0x78] sm:$0xff] %vm430_vm0, %v413_v5 }
 0x157 PF: > { %v593_v6 = vld [vmem:[%s8718_s13 + $0x8] sm:$0xff]  ;;  %v592_v7 = vld [vmem:[%s8718_s13] sm:$0xff]  ;;  %vm600_vm2 = vcmask 130048   ;;  %v562_v13 = vld [vmem:[#allocation2 + $0x10] sm:$0xff]  ;;  %vm3545_vm3 = vcmask 7168   ;;  %s12450_s7 = sld [smem:[#allocation19_spill]] }
 0x158   : > { %v560_v8 = vld [vmem:[#allocation2] sm:$0xff]  ;;  %v8923_v9 = vand.u32 4294901760, %v593_v6  ;;  %v8925_v10 = vand.u32 4294901760, %v592_v7  ;;  %v561_v12 = vld [vmem:[#allocation2 + $0x8] sm:$0xff]  ;;  %v563_v14 = vld [vmem:[#allocation2 + $0x18] sm:$0xff]  ;;  %v608_v17 = vsel %vm600_vm2, %v562_v13, 0 }
 0x159   : > { %v602_v11 = vsel %vm600_vm2, %v560_v8, 0  ;;  %v605_v16 = vsel %vm600_vm2, %v561_v12, 0  ;;  %v611_v18 = vsel %vm600_vm2, %v563_v14, 0  ;;  %v564_v19 = vld [vmem:[#allocation2 + $0x20] sm:$0xff]  ;;  %v565_v20 = vld [vmem:[#allocation2 + $0x28] sm:$0xff]  ;;  %v8940_v24 = vand.u32 4294901760, %v608_v17 }
 0x15a   : > { %v8928_v15 = vand.u32 4294901760, %v602_v11  ;;  %7135 = vmatprep.subr.mxu0 %v8923_v9  ;;  %v906_v21 = vsub.f32 %v593_v6, %v8923_v9  ;;  %v8935_v22 = vand.u32 4294901760, %v605_v16  ;;  %v8938_v23 = vsub.f32 %v592_v7, %v8925_v10  ;;  %v566_v45 = vld [vmem:[#allocation2 + $0x30] sm:$0xff]  ;;  %v567_v46 = vld [vmem:[#allocation2 + $0x38] sm:$0xff]  ;;  %v568_v55 = vld [vmem:[#allocation2 + $0x40] sm:$0xff] }
 0x15b   : > { %7136 = vmatpush3.msra.mxu0 %v8923_v9  ;;  %v8947_v26 = vand.u32 4294901760, %v611_v18  ;;  %v614_v27 = vsel %vm600_vm2, %v564_v19, 0  ;;  %v617_v28 = vsel %vm600_vm2, %v565_v20, 0  ;;  %v8961_v32 = vsub.f32 %v608_v17, %v8940_v24  ;;  %v569_v56 = vld [vmem:[#allocation2 + $0x48] sm:$0xff]  ;;  %v570_v57 = vld [vmem:[#allocation2 + $0x50] sm:$0xff]  ;;  %v571_v2 = vld [vmem:[#allocation2 + $0x58] sm:$0xff] }
 0x15c   : > { %v8944_v25 = vsub.f32 %v602_v11, %v8928_v15  ;;  %7167 = vmatprep.mubr.f32.mxu1 %v8928_v15  ;;  %7137 = vmatprep.subr.mxu0 %v8925_v10  ;;  %v8952_v29 = vand.u32 4294901760, %v906_v21  ;;  %v8955_v30 = vsub.f32 %v605_v16, %v8935_v22  ;;  %v8958_v31 = vand.u32 4294901760, %v8938_v23  ;;  %v572_v7 = vld [vmem:[#allocation2 + $0x60] sm:$0xff]  ;;  %v573_v19 = vld [vmem:[#allocation2 + $0x68] sm:$0xff] }
 0x15d   : > { %7138 = vmatpush3.msra.mxu0 %v8925_v10  ;;  %v8966_v34 = vsub.f32 %v611_v18, %v8947_v26  ;;  %v8968_v35 = vand.u32 4294901760, %v614_v27  ;;  %v8970_v36 = vand.u32 4294901760, %v617_v28  ;;  %v738_v40 = vand.u32 4294901760, %v8961_v32  ;;  %p6693_p7 = scmp.ne.s32.totalorder %s12450_s7, 1 }
 0x15e   : > { %v718_v33 = vand.u32 4294901760, %v8944_v25  ;;  %v908_v37 = vsub.f32 %v906_v21, %v8952_v29  ;;  %v728_v38 = vand.u32 4294901760, %v8955_v30  ;;  %v915_v39 = vsub.f32 %v8938_v23, %v8958_v31  ;;  %7191 = vmatprep.subr.mxu0 %v906_v21 }
 0x15f   : > { %v748_v42 = vand.u32 4294901760, %v8966_v34  ;;  %v8982_v43 = vsub.f32 %v614_v27, %v8968_v35  ;;  %v8985_v44 = vsub.f32 %v617_v28, %v8970_v36  ;;  %v739_v50 = vsub.f32 %v8961_v32, %v738_v40 }
 0x160   : > { %v719_v41 = vsub.f32 %v8944_v25, %v718_v33  ;;  %v909_v47 = vand.u32 4294901760, %v908_v37  ;;  %v729_v48 = vsub.f32 %v8955_v30, %v728_v38  ;;  %v916_v49 = vand.u32 4294901760, %v915_v39 }
 0x161   : > { %v749_v52 = vsub.f32 %v8966_v34, %v748_v42  ;;  %v758_v53 = vand.u32 4294901760, %v8982_v43  ;;  %v768_v54 = vand.u32 4294901760, %v8985_v44  ;;  %v740_v59 = vand.u32 4294901760, %v739_v50 }
 0x162   : > { %v720_v51 = vand.u32 4294901760, %v719_v41  ;;  %7163 = vmatprep.subr.mxu1 %v909_v47  ;;  %v730_v58 = vand.u32 4294901760, %v729_v48  ;;  %v620_v60 = vsel %vm600_vm2, %v566_v45, 0  ;;  %v623_v61 = vsel %vm600_vm2, %v567_v46, 0 }
 0x163   : > { %7164 = vmatpush3.msra.mxu1 %v909_v47  ;;  %v750_v62 = vand.u32 4294901760, %v749_v52  ;;  %v759_v63 = vsub.f32 %v8982_v43, %v758_v53  ;;  %v769_v0 = vsub.f32 %v8985_v44, %v768_v54  ;;  %v9006_v1 = vand.u32 4294901760, %v620_v60 }
 0x164   : > { %7139 = vmatprep.mubr.f32.mxu0 %v720_v51  ;;  %7165 = vmatprep.subr.mxu1 %v916_v49  ;;  %v9008_v3 = vand.u32 4294901760, %v623_v61  ;;  %v626_v4 = vsel %vm600_vm2, %v568_v55, 0  ;;  %v629_v5 = vsel %vm600_vm2, %v569_v56, 0  ;;  %v632_v6 = vsel %vm600_vm2, %v570_v57, 0  ;;  %v574_v56 = vld [vmem:[#allocation2 + $0x70] sm:$0xff] }
 0x165   : > { %7140 = vmatmul.mubr.f32.vlgmr.msra.gmra.mxu0 %v730_v58  ;;  %7166 = vmatpush3.msra.mxu1 %v916_v49  ;;  %v760_v8 = vand.u32 4294901760, %v759_v63  ;;  %v770_v11 = vand.u32 4294901760, %v769_v0  ;;  %v9014_v12 = vsub.f32 %v620_v60, %v9006_v1  ;;  %v9016_v13 = vand.u32 4294901760, %v626_v4  ;;  %v575_v63 = vld [vmem:[#allocation2 + $0x78] sm:$0xff] }
 0x166   : > { %7192 = vmatpush3.msra.mxu0 %v906_v21  ;;  %7168 = vmatmul.mubr.f32.vlgmr.msra.gmra.mxu1 %v8935_v22  ;;  %v9021_v14 = vsub.f32 %v623_v61, %v9008_v3  ;;  %v9023_v16 = vand.u32 4294901760, %v629_v5  ;;  %v9025_v17 = vand.u32 4294901760, %v632_v6  ;;  %v635_v18 = vsel %vm600_vm2, %v571_v2, 0 }
 0x167   : > { %7219 = vmatprep.subr.mxu1 %v8923_v9  ;;  %7142 = vmatprep.mubr.f32.mxu0 %v740_v59  ;;  %v778_v20 = vand.u32 4294901760, %v9014_v12  ;;  %v9031_v21 = vsub.f32 %v626_v4, %v9016_v13  ;;  %v9033_v27 = vand.u32 4294901760, %v635_v18  ;;  %v638_v28 = vsel %vm600_vm2, %v572_v7, 0 }
 0x168   : > { %7220 = vmatpush3.msra.mxu1 %v8923_v9  ;;  %7170 = vmatprep.mubr.f32.mxu1 %v8940_v24  ;;  %v788_v37 = vand.u32 4294901760, %v9021_v14  ;;  %v9039_v39 = vsub.f32 %v629_v5, %v9023_v16  ;;  %v9042_v41 = vsub.f32 %v632_v6, %v9025_v17  ;;  %v9044_v45 = vand.u32 4294901760, %v638_v28 }
 0x169   : > { %7143 = vmatmul.mubr.f32.gmra.mxu0 %v750_v62  ;;  %v779_v46 = vsub.f32 %v9014_v12, %v778_v20  ;;  %v798_v47 = vand.u32 4294901760, %v9031_v21  ;;  %7193 = vmatprep.subr.mxu0 %v8938_v23  ;;  %v9052_v48 = vsub.f32 %v635_v18, %v9033_v27  ;;  %v641_v49 = vsel %vm600_vm2, %v573_v19, 0 }
 0x16a   : > { %7145 = vmatprep.mubr.f32.mxu0 %v760_v8  ;;  %7171 = vmatmul.mubr.f32.gmra.mxu1 %v8947_v26  ;;  %v789_v50 = vsub.f32 %v9021_v14, %v788_v37  ;;  %v808_v51 = vand.u32 4294901760, %v9039_v39  ;;  %v818_v52 = vand.u32 4294901760, %v9042_v41  ;;  %v9063_v55 = vsub.f32 %v638_v28, %v9044_v45 }
 0x16b   : > { %7194 = vmatpush3.msra.mxu0 %v8938_v23  ;;  %7173 = vmatprep.mubr.f32.mxu1 %v8968_v35  ;;  %v780_v57 = vand.u32 4294901760, %v779_v46  ;;  %v799_v58 = vsub.f32 %v9031_v21, %v798_v47  ;;  %v828_v59 = vand.u32 4294901760, %v9052_v48  ;;  %v9071_v60 = vand.u32 4294901760, %v641_v49 }
 0x16c   : > { %7221 = vmatprep.subr.mxu1 %v8925_v10  ;;  %v790_v23 = vand.u32 4294901760, %v789_v50  ;;  %v809_v61 = vsub.f32 %v9039_v39, %v808_v51  ;;  %v819_v62 = vsub.f32 %v9042_v41, %v818_v52  ;;  %v838_v2 = vand.u32 4294901760, %v9063_v55  ;;  %7247 = vmatprep.subr.mxu0 %v8952_v29 }
 0x16d   : > { %7146 = vmatmul.mubr.f32.gmra.mxu0 %v770_v11  ;;  %7222 = vmatpush3.msra.mxu1 %v8925_v10  ;;  %v800_v0 = vand.u32 4294901760, %v799_v58  ;;  %v9082_v4 = vsub.f32 %v641_v49, %v9071_v60  ;;  %v644_v5 = vsel %vm600_vm2, %v574_v56, 0  ;;  %v829_v7 = vsub.f32 %v9052_v48, %v828_v59 }
 0x16e   : > { %7148 = vmatprep.mubr.f32.mxu0 %v780_v57  ;;  %7174 = vmatmul.mubr.f32.gmra.mxu1 %v8970_v36  ;;  %v9087_v6 = vand.u32 4294901760, %v644_v5  ;;  %v647_v8 = vsel %vm600_vm2, %v575_v63, 0  ;;  %v810_v11 = vand.u32 4294901760, %v809_v61  ;;  %v820_v46 = vand.u32 4294901760, %v819_v62  ;;  %v595_v63 = vld [vmem:[%s8718_s13 + $0x18] sm:$0xff] }
 0x16f   : > { %7275 = vmatprep.subr.mxu1 %v8923_v9  ;;  %7176 = vmatprep.mubr.f32.mxu1 %v9006_v1  ;;  %v848_v18 = vand.u32 4294901760, %v9082_v4  ;;  %v9099_v28 = vand.u32 4294901760, %v647_v8  ;;  %v839_v49 = vsub.f32 %v9063_v55, %v838_v2  ;;  %v830_v57 = vand.u32 4294901760, %v829_v7 }
 0x170   : > { %v9097_v19 = vsub.f32 %v644_v5, %v9087_v6  ;;  %v9123_v7 = vand.u32 4294901760, %v595_v63 }
 0x171   : > { %7149 = vmatmul.mubr.f32.gmra.mxu0 %v790_v23  ;;  %v9107_v56 = vsub.f32 %v647_v8, %v9099_v28  ;;  %v849_v58 = vsub.f32 %v9082_v4, %v848_v18  ;;  %v840_v61 = vand.u32 4294901760, %v839_v49 }
 0x172   : > { %7151 = vmatprep.mubr.f32.mxu0 %v800_v0  ;;  %7177 = vmatmul.mubr.f32.gmra.mxu1 %v9008_v3  ;;  %v858_v50 = vand.u32 4294901760, %v9097_v19 }
 0x173   : > { %7179 = vmatprep.mubr.f32.mxu1 %v9016_v13  ;;  %v868_v23 = vand.u32 4294901760, %v9107_v56  ;;  %v850_v0 = vand.u32 4294901760, %v849_v58 }
 0x174   : > { %v859_v62 = vsub.f32 %v9097_v19, %v858_v50 }
 0x175   : > { %7152 = vmatmul.mubr.f32.gmra.mxu0 %v810_v11  ;;  %v869_v5 = vsub.f32 %v9107_v56, %v868_v23 }
 0x176   : > { %7154 = vmatprep.mubr.f32.mxu0 %v820_v46  ;;  %7180 = vmatmul.mubr.f32.gmra.mxu1 %v9023_v16  ;;  %v860_v8 = vand.u32 4294901760, %v859_v62  ;;  %v9128_v46 = vsub.f32 %v595_v63, %v9123_v7 }
 0x177   : > { %7182 = vmatprep.mubr.f32.mxu1 %v9025_v17  ;;  %v870_v11 = vand.u32 4294901760, %v869_v5  ;;  %v587_v5 = vld [vmem:[#allocation2 + $0xd8] sm:$0xff] }
 0x178   : > { %v9133_v49 = vand.u32 4294901760, %v9128_v46 }
 0x179   : > { %7155 = vmatmul.mubr.f32.gmra.mxu0 %v830_v57 }
 0x17a   : > { %7157 = vmatprep.mubr.f32.mxu0 %v840_v61  ;;  %7183 = vmatmul.mubr.f32.gmra.mxu1 %v9033_v27  ;;  %v2060_v57 = vsub.f32 %v9128_v46, %v9133_v49 }
 0x17b   : > { %7185 = vmatprep.mubr.f32.mxu1 %v9044_v45 }
 0x17d   : > { %7158 = vmatmul.mubr.f32.gmra.mxu0 %v850_v0 }
 0x17e   : > { %7160 = vmatprep.mubr.f32.mxu0 %v860_v8  ;;  %7186 = vmatmul.mubr.f32.gmra.mxu1 %v9071_v60 }
 0x17f   : > { %7188 = vmatprep.mubr.f32.mxu1 %v9087_v6 }
 0x181   : > { %7161 = vmatmul.mubr.f32.gmra.mxu0 %v870_v11 }
 0x182   : > { %7195 = vmatprep.mubr.f32.mxu0 %v8944_v25  ;;  %7189 = vmatmul.mubr.f32.gmra.mxu1 %v9099_v28  ;;  %v2061_v25 = vand.u32 4294901760, %v2060_v57 }
 0x183   : > { %7223 = vmatprep.mubr.f32.mxu1 %v718_v33  ;;  %v576_v33 = vld [vmem:[#allocation2 + $0x80] sm:$0xff] }
 0x185   : > { %7196 = vmatmul.mubr.f32.vlgmr.msra.gmra.mxu0 %v8955_v30 }
 0x186   : > { %7248 = vmatpush3.msra.mxu0 %v8952_v29  ;;  %7198 = vmatprep.mubr.f32.mxu0 %v8961_v32 }
 0x187   : > { %7224 = vmatmul.mubr.f32.vlgmr.msra.gmra.mxu1 %v728_v38  ;;  %7249 = vmatprep.subr.mxu0 %v8958_v31 }
 0x188   : > { %7276 = vmatpush3.msra.mxu1 %v8923_v9  ;;  %7226 = vmatprep.mubr.f32.mxu1 %v738_v40  ;;  %v594_v9 = vld [vmem:[%s8718_s13 + $0x10] sm:$0xff]  ;;  %v579_v40 = vld [vmem:[#allocation2 + $0x98] sm:$0xff] }
 0x189   : > { %7199 = vmatmul.mubr.f32.gmra.mxu0 %v8966_v34  ;;  %7277 = vmatprep.subr.mxu1 %v8925_v10  ;;  %v577_v34 = vld [vmem:[#allocation2 + $0x88] sm:$0xff] }
 0x18a   : > { %7201 = vmatprep.mubr.f32.mxu0 %v8982_v43  ;;  %7250 = vmatpush3.msra.mxu0 %v8958_v31  ;;  %v1757_v38 = vsel %vm600_vm2, %v577_v34, 0  ;;  %v1787_v34 = vsel %vm600_vm2, %v587_v5, 0 }
 0x18b   : > { %7227 = vmatmul.mubr.f32.gmra.mxu1 %v748_v42  ;;  %7303 = vmatprep.subr.mxu0 %v9123_v7  ;;  %v580_v42 = vld [vmem:[#allocation2 + $0xa0] sm:$0xff] }
 0x18c   : > { %7229 = vmatprep.mubr.f32.mxu1 %v758_v53  ;;  %7278 = vmatpush3.msra.mxu1 %v8925_v10  ;;  %v9174_v10 = vand.u32 4294901760, %v594_v9 }
 0x18d   : > { %7202 = vmatmul.mubr.f32.gmra.mxu0 %v8985_v44  ;;  %7331 = vmatprep.subr.mxu1 %v2061_v25  ;;  %v1763_v44 = vsel %vm600_vm2, %v579_v40, 0 }
 0x18e   : > { %7204 = vmatprep.mubr.f32.mxu0 %v9014_v12  ;;  %v9183_v29 = vsub.f32 %v594_v9, %v9174_v10 }
 0x18f   : > { %7230 = vmatmul.mubr.f32.gmra.mxu1 %v768_v54  ;;  %v581_v54 = vld [vmem:[#allocation2 + $0xa8] sm:$0xff] }
 0x190   : > { %7232 = vmatprep.mubr.f32.mxu1 %v778_v20  ;;  %v9192_v30 = vand.u32 4294901760, %v9183_v29 }
 0x191   : > { %7205 = vmatmul.mubr.f32.gmra.mxu0 %v9021_v14  ;;  %v9244_v14 = vand.u32 4294901760, %v1763_v44 }
 0x192   : > { %7207 = vmatprep.mubr.f32.mxu0 %v9031_v21  ;;  %v2067_v31 = vsub.f32 %v9183_v29, %v9192_v30 }
 0x193   : > { %7233 = vmatmul.mubr.f32.gmra.mxu1 %v788_v37  ;;  %v1769_v37 = vsel %vm600_vm2, %v581_v54, 0 }
 0x194   : > { %7235 = vmatprep.mubr.f32.mxu1 %v798_v47  ;;  %v2068_v32 = vand.u32 4294901760, %v2067_v31 }
 0x195   : > { %7208 = vmatmul.mubr.f32.gmra.mxu0 %v9039_v39  ;;  %v583_v39 = vld [vmem:[#allocation2 + $0xb8] sm:$0xff] }
 0x196   : > { %7210 = vmatprep.mubr.f32.mxu0 %v9042_v41  ;;  %v584_v41 = vld [vmem:[#allocation2 + $0xc0] sm:$0xff] }
 0x197   : > { %7236 = vmatmul.mubr.f32.gmra.mxu1 %v808_v51  ;;  %v9263_v51 = vand.u32 4294901760, %v1769_v37 }
 0x198   : > { %7238 = vmatprep.mubr.f32.mxu1 %v818_v52 }
 0x199   : > { %7211 = vmatmul.mubr.f32.gmra.mxu0 %v9052_v48  ;;  %v9260_v48 = vsub.f32 %v1763_v44, %v9244_v14  ;;  %v590_v44 = vld [vmem:[#allocation2 + $0xf0] sm:$0xff] }
 0x19a   : > { %7213 = vmatprep.mubr.f32.mxu0 %v9063_v55  ;;  %v1775_v55 = vsel %vm600_vm2, %v583_v39, 0 }
 0x19b   : > { %7239 = vmatmul.mubr.f32.gmra.mxu1 %v828_v59  ;;  %v1778_v59 = vsel %vm600_vm2, %v584_v41, 0  ;;  %v1900_v58 = vand.u32 4294901760, %v9260_v48 }
 0x19c   : > { %7241 = vmatprep.mubr.f32.mxu1 %v838_v2 }
 0x19d   : > { %7214 = vmatmul.mubr.f32.gmra.mxu0 %v9082_v4  ;;  %v585_v4 = vld [vmem:[#allocation2 + $0xc8] sm:$0xff] }
 0x19e   : > { %7216 = vmatprep.mubr.f32.mxu0 %v9097_v19  ;;  %v9282_v19 = vand.u32 4294901760, %v1775_v55 }
 0x19f   : > { %7242 = vmatmul.mubr.f32.gmra.mxu1 %v848_v18 }
 0x1a0   : > { %7244 = vmatprep.mubr.f32.mxu1 %v858_v50  ;;  %v9284_v50 = vand.u32 4294901760, %v1778_v59  ;;  %v9304_v8 = vsub.f32 %v1775_v55, %v9282_v19  ;;  %v1796_v55 = vsel %vm600_vm2, %v590_v44, 0 }
 0x1a1   : > { %7217 = vmatmul.mubr.f32.gmra.mxu0 %v9107_v56  ;;  %v586_v56 = vld [vmem:[#allocation2 + $0xd0] sm:$0xff]  ;;  %v9369_v5 = vand.u32 4294901760, %v1796_v55 }
 0x1a2   : > { %7251 = vmatprep.mubr.f32.mxu0 %v8928_v15  ;;  %v1784_v0 = vsel %vm600_vm2, %v586_v56, 0  ;;  %v9307_v11 = vsub.f32 %v1778_v59, %v9284_v50  ;;  %v1940_v40 = vand.u32 4294901760, %v9304_v8  ;;  %v591_v59 = vld [vmem:[#allocation2 + $0xf8] sm:$0xff] }
 0x1a3   : > { %7245 = vmatmul.mubr.f32.gmra.mxu1 %v868_v23  ;;  %v9289_v23 = vsub.f32 %v1769_v37, %v9263_v51  ;;  %v9391_v44 = vsub.f32 %v1796_v55, %v9369_v5 }
 0x1a4   : > { %7279 = vmatprep.mubr.f32.mxu1 %v8928_v15  ;;  %v1754_v15 = vsel %vm600_vm2, %v576_v33, 0 }
 0x1a5   : > { %7252 = vmatmul.mubr.f32.vlgmr.msra.gmra.mxu0 %v8935_v22  ;;  %v1920_v31 = vand.u32 4294901760, %v9289_v23 }
 0x1a6   : > { %7254 = vmatprep.mubr.f32.mxu0 %v8940_v24  ;;  %7304 = vmatpush3.msra.mxu0 %v9123_v7 }
 0x1a7   : > { %7280 = vmatmul.mubr.f32.vlgmr.msra.gmra.mxu1 %v8935_v22  ;;  %7305 = vmatprep.subr.mxu0 %v9174_v10  ;;  %v578_v22 = vld [vmem:[#allocation2 + $0x90] sm:$0xff]  ;;  %v1921_v54 = vsub.f32 %v9289_v23, %v1920_v31 }
 0x1a8   : > { %7282 = vmatprep.mubr.f32.mxu1 %v8940_v24  ;;  %7332 = vmatpush3.msra.mxu1 %v2061_v25  ;;  %v9220_v24 = vand.u32 4294901760, %v1754_v15  ;;  %v588_v25 = vld [vmem:[#allocation2 + $0xe0] sm:$0xff] }
 0x1a9   : > { %7255 = vmatmul.mubr.f32.gmra.mxu0 %v8947_v26  ;;  %7333 = vmatprep.subr.mxu1 %v2068_v32 }
 0x1aa   : > { %7257 = vmatprep.mubr.f32.mxu0 %v8968_v35  ;;  %7306 = vmatpush3.msra.mxu0 %v9174_v10  ;;  %v9232_v43 = vsub.f32 %v1754_v15, %v9220_v24  ;;  %v9320_v15 = vand.u32 4294901760, %v1784_v0 }
 0x1ab   : > { %7283 = vmatmul.mubr.f32.gmra.mxu1 %v8947_v26  ;;  %7359 = vmatprep.subr.mxu0 %v9128_v46  ;;  %v1760_v26 = vsel %vm600_vm2, %v578_v22, 0  ;;  %v1790_v22 = vsel %vm600_vm2, %v588_v25, 0  ;;  %v1799_v25 = vsel %vm600_vm2, %v591_v59, 0  ;;  %v2010_v59 = vand.u32 4294901760, %v9391_v44 }
 0x1ac   : > { %7285 = vmatprep.mubr.f32.mxu1 %v8968_v35  ;;  %7334 = vmatpush3.msra.mxu1 %v2068_v32  ;;  %v9228_v35 = vand.u32 4294901760, %v1757_v38  ;;  %v9236_v53 = vand.u32 4294901760, %v1760_v26  ;;  %v1870_v20 = vand.u32 4294901760, %v9232_v43  ;;  %v9343_v39 = vand.u32 4294901760, %v1790_v22 }
 0x1ad   : > { %7258 = vmatmul.mubr.f32.gmra.mxu0 %v8970_v36  ;;  %7387 = vmatprep.subr.mxu1 %v9123_v7 }
 0x1ae   : > { %7260 = vmatprep.mubr.f32.mxu0 %v9006_v1  ;;  %v9242_v12 = vsub.f32 %v1757_v38, %v9228_v35  ;;  %v9250_v21 = vsub.f32 %v1760_v26, %v9236_v53  ;;  %v589_v38 = vld [vmem:[#allocation2 + $0xe8] sm:$0xff]  ;;  %v1950_v26 = vand.u32 4294901760, %v9307_v11 }
 0x1af   : > { %7286 = vmatmul.mubr.f32.gmra.mxu1 %v8970_v36  ;;  %v1766_v36 = vsel %vm600_vm2, %v580_v42, 0  ;;  %v1793_v41 = vsel %vm600_vm2, %v589_v38, 0 }
 0x1b0   : > { %7288 = vmatprep.mubr.f32.mxu1 %v9006_v1  ;;  %v582_v1 = vld [vmem:[#allocation2 + $0xb0] sm:$0xff]  ;;  %v1880_v47 = vand.u32 4294901760, %v9242_v12 }
 0x1b1   : > { %7261 = vmatmul.mubr.f32.gmra.mxu0 %v9008_v3 }
 0x1b2   : > { %7263 = vmatprep.mubr.f32.mxu0 %v9016_v13  ;;  %v1881_v18 = vsub.f32 %v9242_v12, %v1880_v47 }
 0x1b3   : > { %7289 = vmatmul.mubr.f32.gmra.mxu1 %v9008_v3  ;;  %v9252_v3 = vand.u32 4294901760, %v1766_v36 }
 0x1b4   : > { %7291 = vmatprep.mubr.f32.mxu1 %v9016_v13  ;;  %v1772_v13 = vsel %vm600_vm2, %v582_v1, 0  ;;  %v1882_v9 = vand.u32 4294901760, %v1881_v18  ;;  %v9337_v1 = vand.u32 4294901760, %v1787_v34  ;;  %v1922_v18 = vand.u32 4294901760, %v1921_v54 }
 0x1b5   : > { %7264 = vmatmul.mubr.f32.gmra.mxu0 %v9023_v16  ;;  %v9265_v52 = vand.u32 4294901760, %v1772_v13  ;;  %v9275_v2 = vsub.f32 %v1766_v36, %v9252_v3 }
 0x1b6   : > { %7266 = vmatprep.mubr.f32.mxu0 %v9025_v17 }
 0x1b7   : > { %7292 = vmatmul.mubr.f32.gmra.mxu1 %v9023_v16  ;;  %v1871_v16 = vsub.f32 %v9232_v43, %v1870_v20  ;;  %v1910_v63 = vand.u32 4294901760, %v9275_v2 }
 0x1b8   : > { %7294 = vmatprep.mubr.f32.mxu1 %v9025_v17  ;;  %v1890_v17 = vand.u32 4294901760, %v9250_v21 }
 0x1b9   : > { %7267 = vmatmul.mubr.f32.gmra.mxu0 %v9033_v27  ;;  %v1872_v61 = vand.u32 4294901760, %v1871_v16  ;;  %v1911_v33 = vsub.f32 %v9275_v2, %v1910_v63  ;;  %v1951_v16 = vsub.f32 %v9307_v11, %v1950_v26 }
 0x1ba   : > { %7269 = vmatprep.mubr.f32.mxu0 %v9044_v45  ;;  %v1891_v62 = vsub.f32 %v9250_v21, %v1890_v17 }
 0x1bb   : > { %7295 = vmatmul.mubr.f32.gmra.mxu1 %v9033_v27  ;;  %v9292_v27 = vsub.f32 %v1772_v13, %v9265_v52  ;;  %v1912_v37 = vand.u32 4294901760, %v1911_v33  ;;  %v9341_v13 = vsub.f32 %v1784_v0, %v9320_v15  ;;  %v9366_v0 = vsub.f32 %v1790_v22, %v9343_v39 }
 0x1bc   : > { %7297 = vmatprep.mubr.f32.mxu1 %v9044_v45  ;;  %v1781_v45 = vsel %vm600_vm2, %v585_v4, 0  ;;  %v1892_v32 = vand.u32 4294901760, %v1891_v62  ;;  %v9383_v33 = vand.u32 4294901760, %v1799_v25 }
 0x1bd   : > { %7270 = vmatmul.mubr.f32.gmra.mxu0 %v9071_v60  ;;  %v9309_v57 = vand.u32 4294901760, %v1781_v45  ;;  %v1970_v62 = vand.u32 4294901760, %v9341_v13  ;;  %v1990_v38 = vand.u32 4294901760, %v9366_v0 }
 0x1be   : > { %7272 = vmatprep.mubr.f32.mxu0 %v9087_v6 }
 0x1bf   : > { %7298 = vmatmul.mubr.f32.gmra.mxu1 %v9071_v60  ;;  %v1901_v60 = vsub.f32 %v9260_v48, %v1900_v58  ;;  %v9329_v42 = vsub.f32 %v1781_v45, %v9309_v57  ;;  %v9359_v45 = vsub.f32 %v1787_v34, %v9337_v1  ;;  %v1952_v34 = vand.u32 4294901760, %v1951_v16 }
 0x1c0   : > { %7300 = vmatprep.mubr.f32.mxu1 %v9087_v6  ;;  %v1930_v6 = vand.u32 4294901760, %v9292_v27  ;;  %v1971_v22 = vsub.f32 %v9341_v13, %v1970_v62  ;;  %v1991_v55 = vsub.f32 %v9366_v0, %v1990_v38 }
 0x1c1   : > { %7273 = vmatmul.mubr.f32.gmra.mxu0 %v9099_v28  ;;  %v1902_v36 = vand.u32 4294901760, %v1901_v60  ;;  %v1960_v4 = vand.u32 4294901760, %v9329_v42 }
 0x1c2   : > { %7307 = vmatprep.mubr.f32.mxu0 %v1872_v61  ;;  %v9361_v61 = vand.u32 4294901760, %v1793_v41 }
 0x1c3   : > { %7301 = vmatmul.mubr.f32.gmra.mxu1 %v9099_v28  ;;  %v1931_v28 = vsub.f32 %v9292_v27, %v1930_v6  ;;  %v1961_v60 = vsub.f32 %v9329_v42, %v1960_v4 }
 0x1c4   : > { %7335 = vmatprep.mubr.f32.mxu1 %v9220_v24 }
 0x1c5   : > { %7308 = vmatmul.mubr.f32.vlgmr.msra.gmra.mxu0 %v1882_v9  ;;  %v1932_v56 = vand.u32 4294901760, %v1931_v28 }
 0x1c6   : > { %7310 = vmatprep.mubr.f32.mxu0 %v1892_v32  ;;  %7360 = vmatpush3.msra.mxu0 %v9128_v46  ;;  %v1941_v46 = vsub.f32 %v9304_v8, %v1940_v40  ;;  %v9381_v32 = vsub.f32 %v1793_v41, %v9361_v61  ;;  %v1972_v41 = vand.u32 4294901760, %v1971_v22 }
 0x1c7   : > { %7336 = vmatmul.mubr.f32.vlgmr.msra.gmra.mxu1 %v9228_v35  ;;  %7361 = vmatprep.subr.mxu0 %v9183_v29 }
 0x1c8   : > { %7338 = vmatprep.mubr.f32.mxu1 %v9236_v53  ;;  %7388 = vmatpush3.msra.mxu1 %v9123_v7  ;;  %v1942_v9 = vand.u32 4294901760, %v1941_v46  ;;  %v2000_v28 = vand.u32 4294901760, %v9381_v32 }
 0x1c9   : > { %7311 = vmatmul.mubr.f32.gmra.mxu0 %v1902_v36  ;;  %7389 = vmatprep.subr.mxu1 %v9174_v10  ;;  %v1962_v36 = vand.u32 4294901760, %v1961_v60 }
 0x1ca   : > { %7313 = vmatprep.mubr.f32.mxu0 %v1912_v37  ;;  %7362 = vmatpush3.msra.mxu0 %v9183_v29  ;;  %v1980_v29 = vand.u32 4294901760, %v9359_v45  ;;  %v9400_v37 = vsub.f32 %v1799_v25, %v9383_v33  ;;  %v2001_v16 = vsub.f32 %v9381_v32, %v2000_v28  ;;  %v2011_v25 = vsub.f32 %v9391_v44, %v2010_v59 }
 0x1cb   : > { %7339 = vmatmul.mubr.f32.gmra.mxu1 %v9244_v14  ;;  %7415 = vmatprep.subr.mxu0 %v9133_v49 }
 0x1cc   : > { %7341 = vmatprep.mubr.f32.mxu1 %v9252_v3  ;;  %7390 = vmatpush3.msra.mxu1 %v9174_v10  ;;  %v1981_v54 = vsub.f32 %v9359_v45, %v1980_v29 }
 0x1cd   : > { %7314 = vmatmul.mubr.f32.gmra.mxu0 %v1922_v18  ;;  %7443 = vmatprep.subr.mxu1 %v9123_v7  ;;  %v2020_v18 = vand.u32 4294901760, %v9400_v37 }
 0x1ce   : > { %7316 = vmatprep.mubr.f32.mxu0 %v1932_v56  ;;  %v1982_v46 = vand.u32 4294901760, %v1981_v54  ;;  %v1992_v56 = vand.u32 4294901760, %v1991_v55 }
 0x1cf   : > { %7342 = vmatmul.mubr.f32.gmra.mxu1 %v9263_v51  ;;  %v2021_v60 = vsub.f32 %v9400_v37, %v2020_v18 }
 0x1d0   : > { %7344 = vmatprep.mubr.f32.mxu1 %v9265_v52 }
 0x1d1   : > { %7317 = vmatmul.mubr.f32.gmra.mxu0 %v1942_v9  ;;  %v2002_v9 = vand.u32 4294901760, %v2001_v16  ;;  %v2022_v22 = vand.u32 4294901760, %v2021_v60 }
 0x1d2   : > { %7319 = vmatprep.mubr.f32.mxu0 %v1952_v34  ;;  %v2012_v34 = vand.u32 4294901760, %v2011_v25 }
 0x1d3   : > { %7345 = vmatmul.mubr.f32.gmra.mxu1 %v9282_v19 }
 0x1d4   : > { %7347 = vmatprep.mubr.f32.mxu1 %v9284_v50 }
 0x1d5   : > { %7320 = vmatmul.mubr.f32.gmra.mxu0 %v1962_v36 }
 0x1d6   : > { %7322 = vmatprep.mubr.f32.mxu0 %v1972_v41 }
 0x1d7   : > { %7348 = vmatmul.mubr.f32.gmra.mxu1 %v9309_v57 }
 0x1d8   : > { %7350 = vmatprep.mubr.f32.mxu1 %v9320_v15 }
 0x1d9   : > { %7323 = vmatmul.mubr.f32.gmra.mxu0 %v1982_v46 }
 0x1da   : > { %7325 = vmatprep.mubr.f32.mxu0 %v1992_v56 }
 0x1db   : > { %7351 = vmatmul.mubr.f32.gmra.mxu1 %v9337_v1 }
 0x1dc   : > { %7353 = vmatprep.mubr.f32.mxu1 %v9343_v39 }
 0x1dd   : > { %7326 = vmatmul.mubr.f32.gmra.mxu0 %v2002_v9 }
 0x1de   : > { %7328 = vmatprep.mubr.f32.mxu0 %v2012_v34 }
 0x1df   : > { %7354 = vmatmul.mubr.f32.gmra.mxu1 %v9361_v61 }
 0x1e0   : > { %7356 = vmatprep.mubr.f32.mxu1 %v9369_v5 }
 0x1e1   : > { %7329 = vmatmul.mubr.f32.gmra.mxu0 %v2022_v22 }
 0x1e2   : > { %7363 = vmatprep.mubr.f32.mxu0 %v9232_v43 }
 0x1e3   : > { %7357 = vmatmul.mubr.f32.gmra.mxu1 %v9383_v33 }
 0x1e4   : > { %7391 = vmatprep.mubr.f32.mxu1 %v1870_v20 }
 0x1e5   : > { %7364 = vmatmul.mubr.f32.vlgmr.msra.gmra.mxu0 %v9242_v12 }
 0x1e6   : > { %7366 = vmatprep.mubr.f32.mxu0 %v9250_v21  ;;  %7416 = vmatpush3.msra.mxu0 %v9133_v49 }
 0x1e7   : > { %7392 = vmatmul.mubr.f32.vlgmr.msra.gmra.mxu1 %v1880_v47  ;;  %7417 = vmatprep.subr.mxu0 %v9192_v30 }
 0x1e8   : > { %7394 = vmatprep.mubr.f32.mxu1 %v1890_v17  ;;  %7444 = vmatpush3.msra.mxu1 %v9123_v7 }
 0x1e9   : > { %7367 = vmatmul.mubr.f32.gmra.mxu0 %v9260_v48  ;;  %7445 = vmatprep.subr.mxu1 %v9174_v10 }
 0x1ea   : > { %7369 = vmatprep.mubr.f32.mxu0 %v9275_v2  ;;  %7418 = vmatpush3.msra.mxu0 %v9192_v30 }
 0x1eb   : > { %7395 = vmatmul.mubr.f32.gmra.mxu1 %v1900_v58 }
 0x1ec   : > { %7397 = vmatprep.mubr.f32.mxu1 %v1910_v63  ;;  %7446 = vmatpush3.msra.mxu1 %v9174_v10 }
 0x1ed   : > { %7370 = vmatmul.mubr.f32.gmra.mxu0 %v9289_v23 }
 0x1ee   : > { %7372 = vmatprep.mubr.f32.mxu0 %v9292_v27 }
 0x1ef   : > { %7398 = vmatmul.mubr.f32.gmra.mxu1 %v1920_v31 }
 0x1f0   : > { %7400 = vmatprep.mubr.f32.mxu1 %v1930_v6 }
 0x1f1   : > { %7373 = vmatmul.mubr.f32.gmra.mxu0 %v9304_v8 }
 0x1f2   : > { %7375 = vmatprep.mubr.f32.mxu0 %v9307_v11 }
 0x1f3   : > { %7401 = vmatmul.mubr.f32.gmra.mxu1 %v1940_v40 }
 0x1f4   : > { %7403 = vmatprep.mubr.f32.mxu1 %v1950_v26 }
 0x1f5   : > { %7376 = vmatmul.mubr.f32.gmra.mxu0 %v9329_v42 }
 0x1f6   : > { %7378 = vmatprep.mubr.f32.mxu0 %v9341_v13 }
 0x1f7   : > { %7404 = vmatmul.mubr.f32.gmra.mxu1 %v1960_v4 }
 0x1f8   : > { %7406 = vmatprep.mubr.f32.mxu1 %v1970_v62 }
 0x1f9   : > { %7379 = vmatmul.mubr.f32.gmra.mxu0 %v9359_v45 }
 0x1fa   : > { %7381 = vmatprep.mubr.f32.mxu0 %v9366_v0 }
 0x1fb   : > { %7407 = vmatmul.mubr.f32.gmra.mxu1 %v1980_v29 }
 0x1fc   : > { %7409 = vmatprep.mubr.f32.mxu1 %v1990_v38 }
 0x1fd   : > { %7382 = vmatmul.mubr.f32.gmra.mxu0 %v9381_v32 }
 0x1fe   : > { %7384 = vmatprep.mubr.f32.mxu0 %v9391_v44 }
 0x1ff   : > { %7410 = vmatmul.mubr.f32.gmra.mxu1 %v2000_v28 }
 0x200   : > { %7412 = vmatprep.mubr.f32.mxu1 %v2010_v59 }
 0x201   : > { %7385 = vmatmul.mubr.f32.gmra.mxu0 %v9400_v37 }
 0x202   : > { %7419 = vmatprep.mubr.f32.mxu0 %v9220_v24 }
 0x203   : > { %7413 = vmatmul.mubr.f32.gmra.mxu1 %v2020_v18 }
 0x204   : > { %7447 = vmatprep.mubr.f32.mxu1 %v9220_v24 }
 0x205   : > { %7420 = vmatmul.mubr.f32.vlgmr.msra.gmra.mxu0 %v9228_v35 }
 0x206   : > { %7422 = vmatprep.mubr.f32.mxu0 %v9236_v53 }
 0x207   : > { %7448 = vmatmul.mubr.f32.vlgmr.msra.gmra.mxu1 %v9228_v35 }
 0x208   : > { %7450 = vmatprep.mubr.f32.mxu1 %v9236_v53 }
 0x209   : > { %7423 = vmatmul.mubr.f32.gmra.mxu0 %v9244_v14 }
 0x20a   : > { %7425 = vmatprep.mubr.f32.mxu0 %v9252_v3 }
 0x20b   : > { %7451 = vmatmul.mubr.f32.gmra.mxu1 %v9244_v14 }
 0x20c   : > { %7453 = vmatprep.mubr.f32.mxu1 %v9252_v3 }
 0x20d   : > { %7426 = vmatmul.mubr.f32.gmra.mxu0 %v9263_v51 }
 0x20e   : > { %7428 = vmatprep.mubr.f32.mxu0 %v9265_v52 }
 0x20f   : > { %7454 = vmatmul.mubr.f32.gmra.mxu1 %v9263_v51 }
 0x210   : > { %7456 = vmatprep.mubr.f32.mxu1 %v9265_v52 }
 0x211   : > { %7429 = vmatmul.mubr.f32.gmra.mxu0 %v9282_v19 }
 0x212   : > { %7431 = vmatprep.mubr.f32.mxu0 %v9284_v50 }
 0x213   : > { %7457 = vmatmul.mubr.f32.gmra.mxu1 %v9282_v19 }
 0x214   : > { %7459 = vmatprep.mubr.f32.mxu1 %v9284_v50 }
 0x215   : > { %7432 = vmatmul.mubr.f32.gmra.mxu0 %v9309_v57 }
 0x216   : > { %7434 = vmatprep.mubr.f32.mxu0 %v9320_v15 }
 0x217   : > { %7460 = vmatmul.mubr.f32.gmra.mxu1 %v9309_v57 }
 0x218   : > { %7462 = vmatprep.mubr.f32.mxu1 %v9320_v15 }
 0x219   : > { %7435 = vmatmul.mubr.f32.gmra.mxu0 %v9337_v1 }
 0x21a   : > { %7437 = vmatprep.mubr.f32.mxu0 %v9343_v39 }
 0x21b   : > { %7463 = vmatmul.mubr.f32.gmra.mxu1 %v9337_v1 }
 0x21c   : > { %7465 = vmatprep.mubr.f32.mxu1 %v9343_v39 }
 0x21d   : > { %7438 = vmatmul.mubr.f32.gmra.mxu0 %v9361_v61 }
 0x21e   : > { %7440 = vmatprep.mubr.f32.mxu0 %v9369_v5 }
 0x21f   : > { %7466 = vmatmul.mubr.f32.gmra.mxu1 %v9361_v61 }
 0x220   : > { %7468 = vmatprep.mubr.f32.mxu1 %v9369_v5 }
 0x221   : > { %7441 = vmatmul.mubr.f32.gmra.mxu0 %v9383_v33 }
 0x223   : > { %7469 = vmatmul.mubr.f32.gmra.mxu1 %v9383_v33 }
 0x225   : > { %v7141_v7 = vpop.f32.mrf.mxu0 }
 0x226   : > { %v7169_v10 = vpop.f32.mrf.mxu1 }
 0x227   : > { %v722_v49 = vpop.f32.mrf.mxu0  ;;  %v960_v18 = vadd.f32 %v7169_v10, %v7141_v7 }
 0x228   : > { %v953_v24 = vpop.f32.mrf.mxu1 }
 0x229   : > { %v7144_v30 = vpop.f32.mrf.mxu0  ;;  %v954_v9 = vadd.f32 %v953_v24, %v722_v49 }
 0x22a   : > { %v7172_v43 = vpop.f32.mrf.mxu1 }
 0x22b   : > { %v9503_v35 = vpop.f32.mrf.mxu0 }
 0x22c   : > { %v965_v12 = vpop.f32.mrf.mxu1 }
 0x22d   : > { %v9505_v53 = vpop.f32.mrf.mxu0 }
 0x22e   : > { %v9509_v20 = vpop.f32.mrf.mxu1 }
 0x22f   : > { %v9507_v14 = vpop.f32.mrf.mxu0 }
 0x230   : > { %v9513_v3 = vpop.f32.mrf.mxu1 }
 0x231   : > { %v9511_v21 = vpop.f32.mrf.mxu0 }
 0x232   : > { %v9517_v48 = vpop.f32.mrf.mxu1 }
 0x233   : > { %v9515_v47 = vpop.f32.mrf.mxu0 }
 0x234   : > { %v9521_v52 = vpop.f32.mrf.mxu1 }
 0x235   : > { %v9519_v51 = vpop.f32.mrf.mxu0 }
 0x236   : > { %v9525_v2 = vpop.f32.mrf.mxu1 }
 0x237   : > { %v9523_v17 = vpop.f32.mrf.mxu0 }
 0x238   : > { %v9529_v50 = vpop.f32.mrf.mxu1 }
 0x239   : > { %v9527_v19 = vpop.f32.mrf.mxu0 }
 0x23a   : > { %v9533_v23 = vpop.f32.mrf.mxu1 }
 0x23b   : > { %v9531_v58 = vpop.f32.mrf.mxu0 }
 0x23c   : > { %v9537_v63 = vpop.f32.mrf.mxu1 }
 0x23d   : > { %v9535_v27 = vpop.f32.mrf.mxu0 }
 0x23e   : > { %v9541_v11 = vpop.f32.mrf.mxu1 }
 0x23f   : > { %v9539_v8 = vpop.f32.mrf.mxu0 }
 0x240   : > { %v9545_v31 = vpop.f32.mrf.mxu1 }
 0x241   : > { %v9543_v57 = vpop.f32.mrf.mxu0 }
 0x242   : > { %11991 = vst [vmem:[#allocation34_spill] sm:$0xff] %v9543_v57  ;;  %v9549_v15 = vpop.f32.mrf.mxu1 }
 0x243   : > { %v9547_v6 = vpop.f32.mrf.mxu0  ;;  %11993 = vst [vmem:[#allocation36_spill] sm:$0xff] %v9549_v15 }
 0x244   : > { %11992 = vst [vmem:[#allocation35_spill] sm:$0xff] %v9547_v6  ;;  %v9551_v40 = vpop.f32.mrf.mxu1 }
 0x245   : > { %11994 = vst [vmem:[#allocation37_spill] sm:$0xff] %v9551_v40  ;;  %v7197_v26 = vpop.f32.mrf.mxu0  ;;  %v972_v40 = vadd.f32 %v7172_v43, %v7144_v30  ;;  %v978_v43 = vadd.f32 %v9513_v3, %v9507_v14  ;;  %v990_v14 = vadd.f32 %v9521_v52, %v9515_v47  ;;  %v1002_v52 = vadd.f32 %v9529_v50, %v9523_v17 }
 0x246   : > { %v1127_v60 = vadd.f32 %v7197_v26, %v960_v18  ;;  %v984_v26 = vadd.f32 %v9509_v20, %v9505_v53  ;;  %v996_v53 = vadd.f32 %v9517_v48, %v9511_v21  ;;  %v1008_v21 = vadd.f32 %v9525_v2, %v9519_v51 }
 0x247   : > { %v1119_v42 = vpop.f32.mrf.mxu0  ;;  %v7225_v1 = vpop.f32.mrf.mxu1  ;;  %v1020_v17 = vadd.f32 %v9533_v23, %v9527_v19  ;;  %v1014_v2 = vadd.f32 %v9537_v63, %v9531_v58 }
 0x248   : > { %v1120_v6 = vadd.f32 %v1119_v42, %v954_v9 }
 0x249   : > { %v7200_v13 = vpop.f32.mrf.mxu0  ;;  %v1299_v39 = vpop.f32.mrf.mxu1 }
 0x24a   : > { %v1141_v7 = vadd.f32 %v7200_v13, %v972_v40 }
 0x24b   : > { %v1133_v4 = vpop.f32.mrf.mxu0  ;;  %v7228_v45 = vpop.f32.mrf.mxu1 }
 0x24c   : > { %v1324_v42 = vadd.f32 %v7228_v45, %v1141_v7 }
 0x24d   : > { %v7203_v61 = vpop.f32.mrf.mxu0  ;;  %v1315_v62 = vpop.f32.mrf.mxu1 }
 0x24f   : > { %v1147_v0 = vpop.f32.mrf.mxu0  ;;  %v7231_v5 = vpop.f32.mrf.mxu1 }
 0x250   : > { %v1148_v13 = vadd.f32 %v1147_v0, %v978_v43  ;;  %v8410_v43 = vmov 0  }
 0x251   : > { %v7206_v29 = vpop.f32.mrf.mxu0  ;;  %v1331_v32 = vpop.f32.mrf.mxu1  ;;  %7962 = vset.pattern.permute.xlu1 %v8410_v43  ;;  %7963 = vset.pattern.permute.xlu0 %v8410_v43 }
 0x252   : > { %v1169_v0 = vadd.f32 %v7206_v29, %v996_v53 }
 0x253   : > { %v1161_v33 = vpop.f32.mrf.mxu0  ;;  %v9553_v38 = vpop.f32.mrf.mxu1 }
 0x254   : > { %v1356_v7 = vadd.f32 %v9553_v38, %v1169_v0 }
 0x255   : > { %v9555_v44 = vpop.f32.mrf.mxu0  ;;  %v9557_v36 = vpop.f32.mrf.mxu1 }
 0x256   : > { %v1183_v29 = vadd.f32 %v9555_v44, %v1008_v21 }
 0x257   : > { %v9559_v54 = vpop.f32.mrf.mxu0  ;;  %v9561_v28 = vpop.f32.mrf.mxu1 }
 0x259   : > { %v9563_v37 = vpop.f32.mrf.mxu0  ;;  %v9565_v41 = vpop.f32.mrf.mxu1 }
 0x25a   : > { %v1197_v19 = vadd.f32 %v9563_v37, %v1020_v17 }
 0x25b   : > { %v9567_v55 = vpop.f32.mrf.mxu0  ;;  %v9569_v59 = vpop.f32.mrf.mxu1 }
 0x25c   : > { %11995 = vst [vmem:[#allocation38_spill] sm:$0xff] %v9569_v59  ;;  %v966_v59 = vadd.f32 %v965_v12, %v9503_v35  ;;  %v1155_v35 = vadd.f32 %v7203_v61, %v984_v26  ;;  %v1190_v58 = vadd.f32 %v9567_v55, %v1014_v2 }
 0x25d   : > { %v9571_v46 = vpop.f32.mrf.mxu0  ;;  %v9573_v16 = vpop.f32.mrf.mxu1 }
 0x25e   : > { %11996 = vst [vmem:[#allocation39_spill] sm:$0xff] %v9573_v16  ;;  %v1308_v16 = vadd.f32 %v7225_v1, %v1127_v60  ;;  %v1134_v49 = vadd.f32 %v1133_v4, %v966_v59  ;;  %v1340_v61 = vadd.f32 %v7231_v5, %v1155_v35  ;;  %v1026_v35 = vadd.f32 %v9545_v31, %v9539_v8  ;;  %v12010_v8 = vld [vmem:[#allocation34_spill] sm:$0xff]  ;;  %v12011_v31 = vld [vmem:[#allocation36_spill] sm:$0xff] }
 0x25f   : > { %v9575_v56 = vpop.f32.mrf.mxu0  ;;  %v9577_v25 = vpop.f32.mrf.mxu1 }
 0x260   : > { %11997 = vst [vmem:[#allocation40_spill] sm:$0xff] %v9575_v56  ;;  %11998 = vst [vmem:[#allocation41_spill] sm:$0xff] %v9577_v25  ;;  %v1300_v25 = vadd.f32 %v1299_v39, %v1120_v6  ;;  %v1316_v1 = vadd.f32 %v1315_v62, %v1134_v49 }
 0x261   : > { %v9579_v34 = vpop.f32.mrf.mxu0  ;;  %v9581_v22 = vpop.f32.mrf.mxu1 }
 0x263   : > { %v9583_v15 = vpop.f32.mrf.mxu0  ;;  %v9585_v57 = vpop.f32.mrf.mxu1 }
 0x264   : > { %11999 = vst [vmem:[#allocation42_spill] sm:$0xff] %v9585_v57 }
 0x265   : > { %v9588_v10 = vpop.f32.mrf.mxu1  ;;  %v7253_v56 = vpop.f32.mrf.mxu0  ;;  %v12007_v53 = vld [vmem:[#allocation39_spill] sm:$0xff] }
 0x266   : > { %v1503_v24 = vadd.f32 %v7253_v56, %v1308_v16  ;;  %v1332_v16 = vadd.f32 %v1331_v32, %v1148_v13  ;;  %v1162_v56 = vadd.f32 %v1161_v33, %v990_v14  ;;  %v12006_v13 = vld [vmem:[#allocation38_spill] sm:$0xff]  ;;  %v1044_v14 = vadd.f32 %v12011_v31, %v12010_v8 }
 0x267   : > { %v1496_v18 = vpop.f32.mrf.mxu0  ;;  %v7281_v30 = vpop.f32.mrf.mxu1  ;;  %v12015_v21 = vld [vmem:[#allocation41_spill] sm:$0xff] }
 0x268   : > { %v1497_v9 = vadd.f32 %v1496_v18, %v1300_v25  ;;  %v9594_v57 = vadd.f32 %v7281_v30, %v1503_v24  ;;  %v1348_v49 = vadd.f32 %v9557_v36, %v1162_v56  ;;  %v1176_v24 = vadd.f32 %v9559_v54, %v1002_v52 }
 0x269   : > { %v7256_v12 = vpop.f32.mrf.mxu0  ;;  %v1659_v40 = vpop.f32.mrf.mxu1  ;;  %v1372_v36 = vadd.f32 %v9561_v28, %v1183_v29 }
 0x26a   : > { %v1515_v6 = vadd.f32 %v7256_v12, %v1324_v42  ;;  %2939 = vmax.xlane.f32.xlu0 %v9594_v57  ;;  %v9603_v45 = vadd.f32 %v1659_v40, %v1497_v9  ;;  %v1364_v23 = vadd.f32 %v9565_v41, %v1176_v24  ;;  %v1032_v42 = vadd.f32 %v9541_v11, %v9535_v27  ;;  %v12008_v27 = vld [vmem:[#allocation40_spill] sm:$0xff] }
 0x26b   : > { %v1508_v20 = vpop.f32.mrf.mxu0  ;;  %v7284_v39 = vpop.f32.mrf.mxu1  ;;  %v1204_v11 = vadd.f32 %v12008_v27, %v1026_v35 }
 0x26c   : > { %v1509_v3 = vadd.f32 %v1508_v20, %v1316_v1  ;;  %v9601_v4 = vadd.f32 %v7284_v39, %v1515_v6  ;;  %12000 = vst [vmem:[#allocation43_spill] sm:$0xff] %v9603_v45  ;;  %v1211_v41 = vadd.f32 %v9571_v46, %v1032_v42  ;;  %v1388_v6 = vadd.f32 %v12006_v13, %v1197_v19 }
 0x26d   : > { %v7259_v59 = vpop.f32.mrf.mxu0  ;;  %v1671_v62 = vpop.f32.mrf.mxu1  ;;  %v1380_v20 = vadd.f32 %v12007_v53, %v1190_v58 }
 0x26e   : > { %2943 = vmax.xlane.f32.xlu1 %v9601_v4  ;;  %2937 = vmax.xlane.f32.xlu0 %v9603_v45  ;;  %v1527_v25 = vadd.f32 %v7259_v59, %v1340_v61  ;;  %v9611_v5 = vadd.f32 %v1671_v62, %v1509_v3  ;;  %v12012_v59 = vld [vmem:[#allocation35_spill] sm:$0xff]  ;;  %v12013_v62 = vld [vmem:[#allocation37_spill] sm:$0xff] }
 0x26f   : > { %v1520_v48 = vpop.f32.mrf.mxu0  ;;  %v7287_v47 = vpop.f32.mrf.mxu1  ;;  %v1038_v46 = vadd.f32 %v12013_v62, %v12012_v59 }
 0x270   : > { %v1521_v60 = vadd.f32 %v1520_v48, %v1332_v16  ;;  %12001 = vst [vmem:[#allocation44_spill] sm:$0xff] %v9611_v5  ;;  %v9624_v26 = vadd.f32 %v7287_v47, %v1527_v25  ;;  %v1404_v48 = vadd.f32 %v12015_v21, %v1211_v41  ;;  %v1225_v25 = vadd.f32 %v9579_v34, %v1044_v14 }
 0x271   : > { %v7262_v32 = vpop.f32.mrf.mxu0  ;;  %v1683_v33 = vpop.f32.mrf.mxu1  ;;  %v1218_v29 = vadd.f32 %v9583_v15, %v1038_v46 }
 0x272   : > { %2941 = vmax.xlane.f32.xlu1 %v9611_v5  ;;  %v9618_v51 = vadd.f32 %v1683_v33, %v1521_v60  ;;  %12003 = vst [vmem:[#allocation46_spill] sm:$0xff] %v9624_v26  ;;  %v1539_v18 = vadd.f32 %v7262_v32, %v1356_v7  ;;  %v1396_v60 = vadd.f32 %v9581_v22, %v1204_v11 }
 0x273   : > { %v1532_v50 = vpop.f32.mrf.mxu0  ;;  %v7290_v44 = vpop.f32.mrf.mxu1  ;;  %v1412_v22 = vadd.f32 %v9588_v10, %v1218_v29 }
 0x274   : > { %12002 = vst [vmem:[#allocation45_spill] sm:$0xff] %v9618_v51  ;;  %v1533_v38 = vadd.f32 %v1532_v50, %v1348_v49  ;;  %2945 = vmax.xlane.f32.xlu0 %v9618_v51  ;;  %v9638_v12 = vadd.f32 %v7290_v44, %v1539_v18  ;;  %v12018_v44 = vld [vmem:[#allocation42_spill] sm:$0xff] }
 0x275   : > { %v7265_v54 = vpop.f32.mrf.mxu0  ;;  %v1695_v30 = vpop.f32.mrf.mxu1  ;;  %v1420_v34 = vadd.f32 %v12018_v44, %v1225_v25 }
 0x276   : > { %2947 = vmax.xlane.f32.xlu1 %v9624_v26  ;;  %v9632_v63 = vadd.f32 %v1695_v30, %v1533_v38  ;;  %12005 = vst [vmem:[#allocation48_spill] sm:$0xff] %v9638_v12  ;;  %v1551_v40 = vadd.f32 %v7265_v54, %v1372_v36 }
 0x277   : > { %v1544_v9 = vpop.f32.mrf.mxu0  ;;  %v7293_v28 = vpop.f32.mrf.mxu1 }
 0x278   : > { %12004 = vst [vmem:[#allocation47_spill] sm:$0xff] %v9632_v63  ;;  %v1545_v37 = vadd.f32 %v1544_v9, %v1364_v23  ;;  %2949 = vmax.xlane.f32.xlu0 %v9632_v63  ;;  %v9652_v0 = vadd.f32 %v7293_v28, %v1551_v40 }
 0x279   : > { %v7268_v55 = vpop.f32.mrf.mxu0  ;;  %v1707_v1 = vpop.f32.mrf.mxu1 }
 0x27a   : > { %2951 = vmax.xlane.f32.xlu1 %v9638_v12  ;;  %v9646_v39 = vadd.f32 %v1707_v1, %v1545_v37  ;;  %12014 = vst [vmem:[#allocation39_spill] sm:$0xff] %v9652_v0  ;;  %v1563_v16 = vadd.f32 %v7268_v55, %v1388_v6 }
 0x27b   : > { %v1556_v3 = vpop.f32.mrf.mxu0  ;;  %v7296_v61 = vpop.f32.mrf.mxu1 }
 0x27c   : > { %12009 = vst [vmem:[#allocation38_spill] sm:$0xff] %v9646_v39  ;;  %v1557_v56 = vadd.f32 %v1556_v3, %v1380_v20  ;;  %2953 = vmax.xlane.f32.xlu0 %v9646_v39  ;;  %v9662_v49 = vadd.f32 %v7296_v61, %v1563_v16 }
 0x27d   : > { %v7271_v47 = vpop.f32.mrf.mxu0  ;;  %v1719_v52 = vpop.f32.mrf.mxu1 }
 0x27e   : > { %2955 = vmax.xlane.f32.xlu1 %v9652_v0  ;;  %v9660_v32 = vadd.f32 %v1719_v52, %v1557_v56  ;;  %12017 = vst [vmem:[#allocation34_spill] sm:$0xff] %v9662_v49  ;;  %v1575_v24 = vadd.f32 %v7271_v47, %v1404_v48 }
 0x27f   : > { %v1568_v33 = vpop.f32.mrf.mxu0  ;;  %v7299_v7 = vpop.f32.mrf.mxu1 }
 0x280   : > { %12016 = vst [vmem:[#allocation40_spill] sm:$0xff] %v9660_v32  ;;  %v1569_v17 = vadd.f32 %v1568_v33, %v1396_v60  ;;  %2957 = vmax.xlane.f32.xlu0 %v9660_v32  ;;  %v9670_v36 = vadd.f32 %v7299_v7, %v1575_v24 }
 0x281   : > { %v7274_v2 = vpop.f32.mrf.mxu0  ;;  %v1731_v50 = vpop.f32.mrf.mxu1 }
 0x282   : > { %2959 = vmax.xlane.f32.xlu1 %v9662_v49  ;;  %v9668_v15 = vadd.f32 %v1731_v50, %v1569_v17  ;;  %12020 = vst [vmem:[#allocation35_spill] sm:$0xff] %v9670_v36  ;;  %v1587_v54 = vadd.f32 %v7274_v2, %v1420_v34 }
 0x283   : > { %v1580_v18 = vpop.f32.mrf.mxu0  ;;  %v7302_v38 = vpop.f32.mrf.mxu1 }
 0x284   : > { %12019 = vst [vmem:[#allocation36_spill] sm:$0xff] %v9668_v15  ;;  %v1581_v30 = vadd.f32 %v1580_v18, %v1412_v22  ;;  %2961 = vmax.xlane.f32.xlu0 %v9668_v15  ;;  %v9682_v42 = vadd.f32 %v7302_v38, %v1587_v54 }
 0x285   : > { %v1743_v43 = vpop.f32.mrf.mxu1  ;;  %v9673_v19 = vpop.f32.mrf.mxu0 }
 0x286   : > { %2963 = vmax.xlane.f32.xlu1 %v9670_v36  ;;  %v9676_v23 = vadd.f32 %v1743_v43, %v1581_v30  ;;  %12022 = vst [vmem:[#allocation41_spill] sm:$0xff] %v9682_v42 }
 0x287   : > { %v9678_v10 = vpop.f32.mrf.mxu0  ;;  %v9680_v58 = vpop.f32.mrf.mxu1 }
 0x288   : > { %12021 = vst [vmem:[#allocation37_spill] sm:$0xff] %v9676_v23  ;;  %2965 = vmax.xlane.f32.xlu0 %v9676_v23 }
 0x289   : > { %v9685_v9 = vpop.f32.mrf.mxu0  ;;  %v9687_v28 = vpop.f32.mrf.mxu1 }
 0x28a   : > { %2967 = vmax.xlane.f32.xlu1 %v9682_v42 }
 0x28b   : > { %v9690_v35 = vpop.f32.mrf.mxu0  ;;  %v9692_v40 = vpop.f32.mrf.mxu1 }
 0x28d   : > { %v9694_v37 = vpop.f32.mrf.mxu0  ;;  %v9696_v41 = vpop.f32.mrf.mxu1 }
 0x28f   : > { %v9698_v55 = vpop.f32.mrf.mxu0  ;;  %v9700_v1 = vpop.f32.mrf.mxu1 }
 0x291   : > { %v9702_v13 = vpop.f32.mrf.mxu0  ;;  %v9704_v6 = vpop.f32.mrf.mxu1 }
 0x293   : > { %v9706_v53 = vpop.f32.mrf.mxu0  ;;  %v9708_v20 = vpop.f32.mrf.mxu1 }
 0x295   : > { %v7321_v27 = vpop.f32.mrf.mxu0  ;;  %v9710_v11 = vpop.f32.mrf.mxu1 }
 0x297   : > { %v9712_v8 = vpop.f32.mrf.mxu0  ;;  %v7349_v31 = vpop.f32.mrf.mxu1 }
 0x298   : > { %v2160_v14 = vadd.f32 %v7349_v31, %v7321_v27 }
 0x299   : > { %v7324_v3 = vpop.f32.mrf.mxu0  ;;  %v9714_v61 = vpop.f32.mrf.mxu1 }
 0x29b   : > { %v9716_v59 = vpop.f32.mrf.mxu0  ;;  %v7352_v62 = vpop.f32.mrf.mxu1 }
 0x29c   : > { %v2172_v46 = vadd.f32 %v7352_v62, %v7324_v3 }
 0x29d   : > { %v7327_v16 = vpop.f32.mrf.mxu0  ;;  %v9718_v56 = vpop.f32.mrf.mxu1 }
 0x29f   : > { %v9720_v21 = vpop.f32.mrf.mxu0  ;;  %v7355_v48 = vpop.f32.mrf.mxu1 }
 0x2a0   : > { %v2184_v47 = vadd.f32 %v7355_v48, %v7327_v16 }
 0x2a1   : > { %v7330_v52 = vpop.f32.mrf.mxu0  ;;  %v9722_v25 = vpop.f32.mrf.mxu1 }
 0x2a3   : > { %v9724_v60 = vpop.f32.mrf.mxu0  ;;  %v7358_v29 = vpop.f32.mrf.mxu1 }
 0x2a4   : > { %v2196_v33 = vadd.f32 %v7358_v29, %v7330_v52 }
 0x2a5   : > { %v9726_v7 = vpop.f32.mrf.mxu1  ;;  %v7365_v24 = vpop.f32.mrf.mxu0 }
 0x2a7   : > { %v2271_v17 = vpop.f32.mrf.mxu0  ;;  %v7393_v2 = vpop.f32.mrf.mxu1 }
 0x2a9   : > { %v7368_v50 = vpop.f32.mrf.mxu0  ;;  %v2451_v44 = vpop.f32.mrf.mxu1 }
 0x2ab   : > { %v2285_v34 = vpop.f32.mrf.mxu0  ;;  %v7396_v22 = vpop.f32.mrf.mxu1 }
 0x2ad   : > { %v7371_v18 = vpop.f32.mrf.mxu0  ;;  %v2467_v38 = vpop.f32.mrf.mxu1 }
 0x2af   : > { %v2299_v54 = vpop.f32.mrf.mxu0  ;;  %v7399_v30 = vpop.f32.mrf.mxu1 }
 0x2b1   : > { %v7374_v43 = vpop.f32.mrf.mxu0  ;;  %v9728_v27 = vpop.f32.mrf.mxu1 }
 0x2b3   : > { %v9730_v31 = vpop.f32.mrf.mxu0  ;;  %v9732_v3 = vpop.f32.mrf.mxu1 }
 0x2b5   : > { %v7377_v62 = vpop.f32.mrf.mxu0  ;;  %v9734_v16 = vpop.f32.mrf.mxu1 }
 0x2b6   : > { %v2335_v48 = vadd.f32 %v7377_v62, %v2160_v14  ;;  %v2112_v14 = vadd.f32 %v9680_v58, %v9673_v19  ;;  %v2118_v19 = vadd.f32 %v9696_v41, %v9690_v35 }
 0x2b7   : > { %v9736_v52 = vpop.f32.mrf.mxu0  ;;  %v7405_v29 = vpop.f32.mrf.mxu1 }
 0x2b8   : > { %v9738_v23 = vadd.f32 %v7405_v29, %v2335_v48  ;;  %v2106_v29 = vadd.f32 %v9687_v28, %v9678_v10  ;;  %v2279_v51 = vadd.f32 %v7365_v24, %v2112_v14  ;;  %v2136_v14 = vadd.f32 %v9700_v1, %v9694_v37 }
 0x2b9   : > { %v7380_v42 = vpop.f32.mrf.mxu0  ;;  %v9740_v15 = vpop.f32.mrf.mxu1 }
 0x2ba   : > { %v2349_v49 = vadd.f32 %v7380_v42, %v2172_v46  ;;  %v2460_v58 = vadd.f32 %v7393_v2, %v2279_v51  ;;  %v2307_v35 = vadd.f32 %v7371_v18, %v2136_v14 }
 0x2bb   : > { %v9742_v0 = vpop.f32.mrf.mxu0  ;;  %v7408_v36 = vpop.f32.mrf.mxu1 }
 0x2bc   : > { %v9744_v32 = vadd.f32 %v7408_v36, %v2349_v49  ;;  %v2124_v49 = vadd.f32 %v9692_v40, %v9685_v9  ;;  %v2272_v36 = vadd.f32 %v2271_v17, %v2106_v29  ;;  %v2286_v9 = vadd.f32 %v2285_v34, %v2118_v19 }
 0x2bd   : > { %v7383_v39 = vpop.f32.mrf.mxu0  ;;  %v9746_v63 = vpop.f32.mrf.mxu1  ;;  %v2492_v34 = vadd.f32 %v7399_v30, %v2307_v35  ;;  %v2154_v19 = vadd.f32 %v9714_v61, %v9712_v8 }
 0x2be   : > { %v2363_v62 = vadd.f32 %v7383_v39, %v2184_v47  ;;  %v2293_v47 = vadd.f32 %v7368_v50, %v2124_v49  ;;  %v2142_v49 = vadd.f32 %v9710_v11, %v9706_v53 }
 0x2bf   : > { %v9750_v12 = vpop.f32.mrf.mxu0  ;;  %v7411_v48 = vpop.f32.mrf.mxu1 }
 0x2c0   : > { %v9754_v42 = vadd.f32 %v7411_v48, %v2363_v62  ;;  %v2452_v62 = vadd.f32 %v2451_v44, %v2272_v36  ;;  %v2476_v29 = vadd.f32 %v7396_v22, %v2293_v47 }
 0x2c1   : > { %v7386_v46 = vpop.f32.mrf.mxu0  ;;  %v9756_v26 = vpop.f32.mrf.mxu1 }
 0x2c2   : > { %v2377_v5 = vadd.f32 %v7386_v46, %v2196_v33  ;;  %v2130_v33 = vadd.f32 %v9704_v6, %v9698_v55  ;;  %v2468_v46 = vadd.f32 %v2467_v38, %v2286_v9 }
 0x2c3   : > { %v9760_v45 = vpop.f32.mrf.mxu0  ;;  %v7414_v39 = vpop.f32.mrf.mxu1 }
 0x2c4   : > { %v9764_v10 = vadd.f32 %v7414_v39, %v2377_v5  ;;  %v2148_v5 = vadd.f32 %v9708_v20, %v9702_v13  ;;  %v2300_v37 = vadd.f32 %v2299_v54, %v2130_v33 }
 0x2c5   : > { %v9766_v28 = vpop.f32.mrf.mxu1  ;;  %v7421_v24 = vpop.f32.mrf.mxu0 }
 0x2c6   : > { %v2655_v40 = vadd.f32 %v7421_v24, %v2460_v58  ;;  %v2321_v22 = vadd.f32 %v7374_v43, %v2148_v5  ;;  %v2484_v38 = vadd.f32 %v9728_v27, %v2300_v37  ;;  %v2314_v58 = vadd.f32 %v9730_v31, %v2142_v49  ;;  %v9819_v37 = vld [vmem:[#allocation3 + $0x18] sm:$0xff]  ;;  %v9834_v49 = vld [vmem:[#allocation3 + $0x10] sm:$0xff] }
 0x2c7   : > { %v2648_v17 = vpop.f32.mrf.mxu0  ;;  %v7449_v48 = vpop.f32.mrf.mxu1  ;;  %v2328_v27 = vadd.f32 %v9736_v52, %v2154_v19 }
 0x2c8   : > { %v2649_v51 = vadd.f32 %v2648_v17, %v2452_v62  ;;  %v9772_v41 = vadd.f32 %v7449_v48, %v2655_v40  ;;  %v2508_v47 = vadd.f32 %v9732_v3, %v2321_v22  ;;  %v2500_v31 = vadd.f32 %v9734_v16, %v2314_v58 }
 0x2c9   : > { %v7424_v2 = vpop.f32.mrf.mxu0  ;;  %v2811_v50 = vpop.f32.mrf.mxu1  ;;  %v2516_v33 = vadd.f32 %v9740_v15, %v2328_v27  ;;  %v9814_v15 = vld [vmem:[#allocation3 + $0x8] sm:$0xff] }
 0x2ca   : > { %12023 = vst [vmem:[#allocation42_spill] sm:$0xff] %v9772_v41  ;;  %v2667_v1 = vadd.f32 %v7424_v2, %v2476_v29  ;;  %v9776_v44 = vadd.f32 %v2811_v50, %v2649_v51  ;;  %2971 = vmax.xlane.f32.xlu0 %v9772_v41 }
 0x2cb   : > { %v2660_v55 = vpop.f32.mrf.mxu0  ;;  %v7452_v6 = vpop.f32.mrf.mxu1 }
 0x2cc   : > { %12024 = vst [vmem:[#allocation49_spill] sm:$0xff] %v9776_v44  ;;  %v2661_v18 = vadd.f32 %v2660_v55, %v2468_v46  ;;  %2969 = vmax.xlane.f32.xlu1 %v9776_v44  ;;  %v9783_v54 = vadd.f32 %v7452_v6, %v2667_v1  ;;  %v9821_v1 = vld [vmem:[#allocation3] sm:$0xff] }
 0x2cd   : > { %v7427_v13 = vpop.f32.mrf.mxu0  ;;  %v2823_v20 = vpop.f32.mrf.mxu1 }
 0x2ce   : > { %12025 = vst [vmem:[#allocation50_spill] sm:$0xff] %v9783_v54  ;;  %v2679_v36 = vadd.f32 %v7427_v13, %v2492_v34  ;;  %v9785_v39 = vadd.f32 %v2823_v20, %v2661_v18  ;;  %v597_v13 = vld [vmem:[%s8724_s6 + $0x8] sm:$0xff] }
 0x2cf   : > { %v2672_v30 = vpop.f32.mrf.mxu0  ;;  %v7455_v43 = vpop.f32.mrf.mxu1 }
 0x2d0   : > { %12026 = vst [vmem:[#allocation51_spill] sm:$0xff] %v9785_v39  ;;  %v2673_v24 = vadd.f32 %v2672_v30, %v2484_v38  ;;  %2975 = vmax.xlane.f32.xlu1 %v9783_v54  ;;  %2973 = vmax.xlane.f32.xlu0 %v9785_v39  ;;  %v9794_v14 = vadd.f32 %v7455_v43, %v2679_v36  ;;  %v9847_v36 = vand.u32 4294901760, %v597_v13  ;;  %v9849_v30 = vld [vmem:[#allocation3 + $0x20] sm:$0xff] }
 0x2d1   : > { %v7430_v53 = vpop.f32.mrf.mxu0  ;;  %v2835_v11 = vpop.f32.mrf.mxu1 }
 0x2d2   : > { %12027 = vst [vmem:[#allocation52_spill] sm:$0xff] %v9794_v14  ;;  %v2691_v62 = vadd.f32 %v7430_v53, %v2508_v47  ;;  %v9796_v9 = vadd.f32 %v2835_v11, %v2673_v24  ;;  %v9855_v58 = vsub.f32 %v597_v13, %v9847_v36  ;;  %7471 = vmatprep.subr.mxu0 %v9847_v36  ;;  %v9858_v24 = vld [vmem:[#allocation3 + $0x28] sm:$0xff]  ;;  %v596_v53 = vld [vmem:[%s8724_s6] sm:$0xff]  ;;  %v9926_v13 = vld [vmem:[#allocation3 + $0x50] sm:$0xff] }
 0x2d3   : > { %v2684_v8 = vpop.f32.mrf.mxu0  ;;  %v7458_v61 = vpop.f32.mrf.mxu1  ;;  %7472 = vmatpush3.xpose.msra.mxu0 %v9847_v36  ;;  %12033 = vst [vmem:[#allocation58_spill] sm:$0xff] %v9926_v13  ;;  %v9947_v11 = vld [vmem:[#allocation3 + $0x60] sm:$0xff] }
 0x2d4   : > { %12028 = vst [vmem:[#allocation53_spill] sm:$0xff] %v9796_v9  ;;  %2979 = vmax.xlane.f32.xlu1 %v9794_v14  ;;  %2977 = vmax.xlane.f32.xlu0 %v9796_v9  ;;  %v2685_v17 = vadd.f32 %v2684_v8, %v2500_v31  ;;  %v9802_v48 = vadd.f32 %v7458_v61, %v2691_v62  ;;  %v9871_v62 = vand.u32 4294901760, %v9855_v58  ;;  %v9873_v61 = vld [vmem:[#allocation3 + $0x30] sm:$0xff]  ;;  %v9875_v31 = vand.u32 4294901760, %v596_v53 }
 0x2d5   : > { %v7433_v3 = vpop.f32.mrf.mxu0  ;;  %v2847_v40 = vpop.f32.mrf.mxu1  ;;  %12035 = vst [vmem:[#allocation60_spill] sm:$0xff] %v9947_v11 }
 0x2d6   : > { %12029 = vst [vmem:[#allocation54_spill] sm:$0xff] %v9802_v48  ;;  %v2703_v52 = vadd.f32 %v7433_v3, %v9738_v23  ;;  %v9808_v2 = vadd.f32 %v2847_v40, %v2685_v17  ;;  %7473 = vmatprep.subr.mxu0 %v9875_v31 }
 0x2d7   : > { %v2696_v29 = vpop.f32.mrf.mxu0  ;;  %v7461_v35 = vpop.f32.mrf.mxu1  ;;  %7474 = vmatpush3.xpose.msra.mxu0 %v9875_v31 }
 0x2d8   : > { %v2697_v51 = vadd.f32 %v2696_v29, %v2516_v33  ;;  %v9805_v5 = vadd.f32 %v7461_v35, %v2703_v52  ;;  %2983 = vmax.xlane.f32.xlu1 %v9802_v48  ;;  %12031 = vst [vmem:[#allocation56_spill] sm:$0xff] %v9808_v2  ;;  %v3837_v33 = vsub.f32 %v9855_v58, %v9871_v62  ;;  %v9886_v52 = vld [vmem:[#allocation3 + $0x38] sm:$0xff]  ;;  %v9958_v48 = vld [vmem:[#allocation3 + $0x68] sm:$0xff] }
 0x2d9   : > { %v2859_v16 = vpop.f32.mrf.mxu1  ;;  %v9889_v29 = vsub.f32 %v596_v53, %v9875_v31  ;;  %7527 = vmatprep.subr.mxu0 %v9855_v58  ;;  %v9914_v53 = vld [vmem:[#allocation3 + $0x48] sm:$0xff]  ;;  %v9935_v35 = vld [vmem:[#allocation3 + $0x58] sm:$0xff]  ;;  %v7436_v20 = vpop.f32.mrf.mxu0 }
 0x2da   : > { %12030 = vst [vmem:[#allocation55_spill] sm:$0xff] %v9805_v5  ;;  %v9810_v50 = vadd.f32 %v2859_v16, %v2697_v51 }
 0x2db   : > { %v7464_v14 = vpop.f32.mrf.mxu1 }
 0x2dc   : > { %12032 = vst [vmem:[#allocation57_spill] sm:$0xff] %v9810_v50  ;;  %2981 = vmax.xlane.f32.xlu1 %v9808_v2  ;;  %2985 = vmax.xlane.f32.xlu0 %v9810_v50  ;;  %v9968_v50 = vld [vmem:[#allocation3 + $0x70] sm:$0xff]  ;;  %v9978_v2 = vld [vmem:[#allocation3 + $0x78] sm:$0xff] }
 0x2dd   : > { %12037 = vst [vmem:[#allocation62_spill] sm:$0xff] %v9968_v50 }
 0x2f3   : > { %v2940_v23 = vpop.xlane.xlu0 %2939 }
 0x2f4   : > { %v9817_v46 = vmax.f32 %v9814_v15, %v2940_v23  ;;  %v9901_v23 = vld [vmem:[#allocation3 + $0x40] sm:$0xff] }
 0x2f6   : > { %6075 = vst.msk [vmem:[#allocation3 + $0x8] sm:$0xff] %vm3545_vm3, %v9817_v46  ;;  %3136 = vperm.xlu1 %7962, %v9817_v46  }
 0x2f7   : > { %v2944_v6 = vpop.xlane.xlu1 %2943  ;;  %v2938_v34 = vpop.xlane.xlu0 %2937 }
 0x2f8   : > { %v9829_v22 = vmax.f32 %v9819_v37, %v2944_v6  ;;  %v9832_v18 = vmax.f32 %v9821_v1, %v2938_v34  ;;  %v3838_v6 = vand.u32 4294901760, %v3837_v33  ;;  %v9904_v34 = vand.u32 4294901760, %v9889_v29 }
 0x2fa   : > { %6077 = vst.msk [vmem:[#allocation3 + $0x18] sm:$0xff] %vm3545_vm3, %v9829_v22  ;;  %6074 = vst.msk [vmem:[#allocation3] sm:$0xff] %vm3545_vm3, %v9832_v18  ;;  %3146 = vperm.xlu1 %7962, %v9829_v22   ;;  %3131 = vperm.xlu0 %7963, %v9832_v18  }
 0x2fb   : > { %v2942_v19 = vpop.xlane.xlu1 %2941  ;;  %7499 = vmatprep.subr.mxu1 %v3838_v6 }
 0x2fc   : > { %v9852_v43 = vmax.f32 %v9834_v49, %v2942_v19  ;;  %7500 = vmatpush3.xpose.msra.mxu1 %v3838_v6 }
 0x2fd   : > { %v2946_v47 = vpop.xlane.xlu0 %2945 }
 0x2fe   : > { %6076 = vst.msk [vmem:[#allocation3 + $0x10] sm:$0xff] %vm3545_vm3, %v9852_v43  ;;  %v9867_v27 = vmax.f32 %v9849_v30, %v2946_v47  ;;  %3141 = vperm.xlu1 %7962, %v9852_v43  }
 0x2ff   : > { %v2948_v8 = vpop.xlane.xlu1 %2947 }
 0x300   : > { %6078 = vst.msk [vmem:[#allocation3 + $0x20] sm:$0xff] %vm3545_vm3, %v9867_v27  ;;  %v9882_v40 = vmax.f32 %v9858_v24, %v2948_v8  ;;  %v3844_v8 = vsub.f32 %v9889_v29, %v9904_v34 }
 0x301   : > { %v2950_v17 = vpop.xlane.xlu0 %2949 }
 0x302   : > { %6079 = vst.msk [vmem:[#allocation3 + $0x28] sm:$0xff] %vm3545_vm3, %v9882_v40  ;;  %v9897_v51 = vmax.f32 %v9873_v61, %v2950_v17  ;;  %3156 = vperm.xlu1 %7962, %v9882_v40   ;;  %v3845_v3 = vand.u32 4294901760, %v3844_v8  ;;  %v2166_v8 = vadd.f32 %v9718_v56, %v9716_v59 }
 0x303   : > { %v2952_v16 = vpop.xlane.xlu1 %2951 }
 0x304   : > { %6080 = vst.msk [vmem:[#allocation3 + $0x30] sm:$0xff] %vm3545_vm3, %v9897_v51  ;;  %v9912_v19 = vmax.f32 %v9886_v52, %v2952_v16  ;;  %7501 = vmatprep.subr.mxu1 %v3845_v3 }
 0x305   : > { %v2954_v47 = vpop.xlane.xlu0 %2953  ;;  %7502 = vmatpush3.xpose.msra.mxu1 %v3845_v3  ;;  %v2342_v3 = vadd.f32 %v9742_v0, %v2166_v8 }
 0x306   : > { %6081 = vst.msk [vmem:[#allocation3 + $0x38] sm:$0xff] %vm3545_vm3, %v9912_v19  ;;  %v9923_v17 = vmax.f32 %v9901_v23, %v2954_v47  ;;  %3151 = vperm.xlu1 %7962, %v9867_v27   ;;  %7555 = vmatprep.subr.mxu1 %v9847_v36 }
 0x307   : > { %v2956_v16 = vpop.xlane.xlu1 %2955  ;;  %v2532_v59 = vadd.f32 %v9746_v63, %v2342_v3 }
 0x308   : > { %6082 = vst.msk [vmem:[#allocation3 + $0x40] sm:$0xff] %vm3545_vm3, %v9923_v17  ;;  %v9933_v55 = vmax.f32 %v9914_v53, %v2956_v16 }
 0x309   : > { %v2958_v33 = vpop.xlane.xlu0 %2957 }
 0x30a   : > { %6083 = vst.msk [vmem:[#allocation3 + $0x48] sm:$0xff] %vm3545_vm3, %v9933_v55  ;;  %v9942_v47 = vmax.f32 %v9926_v13, %v2958_v33  ;;  %3166 = vperm.xlu1 %7962, %v9912_v19  }
 0x30b   : > { %v2960_v16 = vpop.xlane.xlu1 %2959 }
 0x30c   : > { %12034 = vst [vmem:[#allocation59_spill] sm:$0xff] %v9942_v47  ;;  %6084 = vst.msk [vmem:[#allocation3 + $0x50] sm:$0xff] %vm3545_vm3, %v9942_v47  ;;  %v9955_v33 = vmax.f32 %v9935_v35, %v2960_v16  ;;  %v2708_v16 = vpop.f32.mrf.mxu0 }
 0x30d   : > { %v2962_v38 = vpop.xlane.xlu0 %2961  ;;  %v2709_v0 = vadd.f32 %v2708_v16, %v2532_v59  ;;  %v2715_v16 = vadd.f32 %v7436_v20, %v9744_v32  ;;  %v10024_v20 = vld [vmem:[#allocation3 + $0x88] sm:$0xff] }
 0x30e   : > { %6085 = vst.msk [vmem:[#allocation3 + $0x58] sm:$0xff] %vm3545_vm3, %v9955_v33  ;;  %v9965_v56 = vmax.f32 %v9947_v11, %v2962_v38  ;;  %3161 = vperm.xlu1 %7962, %v9897_v51  }
 0x30f   : > { %v2964_v6 = vpop.xlane.xlu1 %2963 }
 0x310   : > { %12036 = vst [vmem:[#allocation61_spill] sm:$0xff] %v9965_v56  ;;  %6086 = vst.msk [vmem:[#allocation3 + $0x60] sm:$0xff] %vm3545_vm3, %v9965_v56  ;;  %v9975_v8 = vmax.f32 %v9958_v48, %v2964_v6  ;;  %v2871_v6 = vpop.f32.mrf.mxu1 }
 0x311   : > { %v2966_v38 = vpop.xlane.xlu0 %2965  ;;  %v10000_v59 = vadd.f32 %v2871_v6, %v2709_v0  ;;  %v10011_v0 = vadd.f32 %v7464_v14, %v2715_v16  ;;  %v2178_v14 = vadd.f32 %v9722_v25, %v9720_v21  ;;  %v10027_v16 = vld [vmem:[#allocation3 + $0x80] sm:$0xff]  ;;  %v10043_v25 = vld [vmem:[#allocation3 + $0x98] sm:$0xff] }
 0x312   : > { %6087 = vst.msk [vmem:[#allocation3 + $0x68] sm:$0xff] %vm3545_vm3, %v9975_v8  ;;  %v9985_v9 = vmax.f32 %v9968_v50, %v2966_v38  ;;  %3171 = vperm.xlu1 %7962, %v9923_v17   ;;  %v7467_v63 = vpop.f32.mrf.mxu1  ;;  %12043 = vst [vmem:[#allocation68_spill] sm:$0xff] %v10027_v16 }
 0x313   : > { %v2968_v11 = vpop.xlane.xlu1 %2967  ;;  %12039 = vst [vmem:[#allocation64_spill] sm:$0xff] %v10000_v59  ;;  %12040 = vst [vmem:[#allocation65_spill] sm:$0xff] %v10011_v0 }
 0x314   : > { %12038 = vst [vmem:[#allocation63_spill] sm:$0xff] %v9985_v9  ;;  %6088 = vst.msk [vmem:[#allocation3 + $0x70] sm:$0xff] %vm3545_vm3, %v9985_v9  ;;  %v9993_v3 = vmax.f32 %v9978_v2, %v2968_v11  ;;  %v7439_v11 = vpop.f32.mrf.mxu0 }
 0x315   : > { %v2727_v6 = vadd.f32 %v7439_v11, %v9754_v42  ;;  %v2356_v42 = vadd.f32 %v9750_v12, %v2178_v14 }
 0x316   : > { %6089 = vst.msk [vmem:[#allocation3 + $0x78] sm:$0xff] %vm3545_vm3, %v9993_v3  ;;  %3181 = vperm.xlu1 %7962, %v9942_v47   ;;  %v2720_v38 = vpop.f32.mrf.mxu0 }
 0x317   : > { %v10015_v50 = vadd.f32 %v7467_v63, %v2727_v6 }
 0x318   : > { %v7442_v54 = vpop.f32.mrf.mxu0 }
 0x319   : > { %2989 = vmax.xlane.f32.xlu0 %v10000_v59  ;;  %v2883_v59 = vpop.f32.mrf.mxu1  ;;  %12041 = vst [vmem:[#allocation66_spill] sm:$0xff] %v10015_v50 }
 0x31a   : > { %3196 = vperm.xlu1 %7962, %v9975_v8   ;;  %v2732_v6 = vpop.f32.mrf.mxu0 }
 0x31b   : > { %v7470_v44 = vpop.f32.mrf.mxu1 }
 0x31d   : > { %v2895_v21 = vpop.f32.mrf.mxu1 }
 0x32f   : > { %3176 = vperm.xlu0 %7963, %v9933_v55  }
 0x333   : > { %3186 = vperm.xlu0 %7963, %v9955_v33  }
 0x337   : > { %3191 = vperm.xlu0 %7963, %v9965_v56   ;;  %v2739_v56 = vadd.f32 %v7442_v54, %v9764_v10  ;;  %v2190_v10 = vadd.f32 %v9726_v7, %v9724_v60  ;;  %v10045_v60 = vld [vmem:[#allocation3 + $0x90] sm:$0xff] }
 0x338   : > { %12045 = vst [vmem:[#allocation70_spill] sm:$0xff] %v10045_v60 }
 0x339   : > { %v10019_v32 = vadd.f32 %v7470_v44, %v2739_v56  ;;  %v2548_v56 = vadd.f32 %v9756_v26, %v2356_v42  ;;  %v2370_v63 = vadd.f32 %v9760_v45, %v2190_v10 }
 0x33b   : > { %3206 = vperm.xlu0 %7963, %v9993_v3   ;;  %12042 = vst [vmem:[#allocation67_spill] sm:$0xff] %v10019_v32  ;;  %v2721_v7 = vadd.f32 %v2720_v38, %v2548_v56  ;;  %v2564_v42 = vadd.f32 %v9766_v28, %v2370_v63  ;;  %v10059_v38 = vld [vmem:[#allocation3 + $0xa8] sm:$0xff] }
 0x33c   : > { %12047 = vst [vmem:[#allocation72_spill] sm:$0xff] %v10059_v38 }
 0x33d   : > { %v10063_v56 = vadd.f32 %v2883_v59, %v2721_v7  ;;  %v2733_v26 = vadd.f32 %v2732_v6, %v2564_v42  ;;  %v10081_v7 = vld [vmem:[#allocation3 + $0xb8] sm:$0xff] }
 0x33e   : > { %2987 = vmax.xlane.f32.xlu1 %v9805_v5  ;;  %12052 = vst [vmem:[#allocation77_spill] sm:$0xff] %v10081_v7 }
 0x33f   : > { %3201 = vperm.xlu0 %7963, %v9985_v9   ;;  %12049 = vst [vmem:[#allocation74_spill] sm:$0xff] %v10063_v56  ;;  %v10083_v6 = vadd.f32 %v2895_v21, %v2733_v26  ;;  %v10098_v21 = vld [vmem:[#allocation3 + $0xb0] sm:$0xff]  ;;  %v10100_v26 = vld [vmem:[#allocation3 + $0xc0] sm:$0xff] }
 0x340   : > { %12055 = vst [vmem:[#allocation80_spill] sm:$0xff] %v10098_v21  ;;  %12056 = vst [vmem:[#allocation81_spill] sm:$0xff] %v10100_v26 }
 0x341   : > { %12053 = vst [vmem:[#allocation78_spill] sm:$0xff] %v10083_v6 }
 0x342   : > { %2991 = vmax.xlane.f32.xlu1 %v10011_v0 }
 0x346   : > { %2995 = vmax.xlane.f32.xlu1 %v10015_v50 }
 0x34a   : > { %2999 = vmax.xlane.f32.xlu1 %v10019_v32 }
 0x353   : > { %v2972_v11 = vpop.xlane.xlu0 %2971 }
 0x354   : > { %v10032_v54 = vmax.f32 %v10024_v20, %v2972_v11 }
 0x355   : > { %v2970_v44 = vpop.xlane.xlu1 %2969 }
 0x356   : > { %6091 = vst.msk [vmem:[#allocation3 + $0x88] sm:$0xff] %vm3545_vm3, %v10032_v54  ;;  %v10041_v12 = vmax.f32 %v10027_v16, %v2970_v44  ;;  %v10061_v44 = vld [vmem:[#allocation3 + $0xa0] sm:$0xff] }
 0x357   : > { %12048 = vst [vmem:[#allocation73_spill] sm:$0xff] %v10061_v44 }
 0x358   : > { %12044 = vst [vmem:[#allocation69_spill] sm:$0xff] %v10041_v12  ;;  %6090 = vst.msk [vmem:[#allocation3 + $0x80] sm:$0xff] %vm3545_vm3, %v10041_v12 }
 0x359   : > { %v2976_v45 = vpop.xlane.xlu1 %2975  ;;  %v2974_v14 = vpop.xlane.xlu0 %2973 }
 0x35a   : > { %v10053_v11 = vmax.f32 %v10043_v25, %v2976_v45  ;;  %v10056_v10 = vmax.f32 %v10045_v60, %v2974_v14 }
 0x35b   : > { %3216 = vperm.xlu1 %7962, %v10032_v54  }
 0x35c   : > { %12046 = vst [vmem:[#allocation71_spill] sm:$0xff] %v10056_v10  ;;  %6093 = vst.msk [vmem:[#allocation3 + $0x98] sm:$0xff] %vm3545_vm3, %v10053_v11 }
 0x35d   : > { %6092 = vst.msk [vmem:[#allocation3 + $0x90] sm:$0xff] %vm3545_vm3, %v10056_v10  ;;  %v2980_v63 = vpop.xlane.xlu1 %2979  ;;  %v2978_v45 = vpop.xlane.xlu0 %2977 }
 0x35e   : > { %v10074_v14 = vmax.f32 %v10059_v38, %v2980_v63  ;;  %v10077_v59 = vmax.f32 %v10061_v44, %v2978_v45  ;;  %2993 = vmax.xlane.f32.xlu0 %v10063_v56 }
 0x35f   : > { %3221 = vperm.xlu1 %7962, %v10056_v10  }
 0x360   : > { %12050 = vst [vmem:[#allocation75_spill] sm:$0xff] %v10074_v14  ;;  %12051 = vst [vmem:[#allocation76_spill] sm:$0xff] %v10077_v59 }
 0x361   : > { %6095 = vst.msk [vmem:[#allocation3 + $0xa8] sm:$0xff] %vm3545_vm3, %v10074_v14  ;;  %6094 = vst.msk [vmem:[#allocation3 + $0xa0] sm:$0xff] %vm3545_vm3, %v10077_v59  ;;  %v2984_v45 = vpop.xlane.xlu1 %2983 }
 0x362   : > { %v10094_v28 = vmax.f32 %v10081_v7, %v2984_v45  ;;  %2997 = vmax.xlane.f32.xlu0 %v10083_v6 }
 0x363   : > { %3231 = vperm.xlu1 %7962, %v10077_v59  }
 0x364   : > { %12054 = vst [vmem:[#allocation79_spill] sm:$0xff] %v10094_v28  ;;  %6097 = vst.msk [vmem:[#allocation3 + $0xb8] sm:$0xff] %vm3545_vm3, %v10094_v28 }
 0x365   : > { %v2982_v63 = vpop.xlane.xlu1 %2981  ;;  %v2986_v32 = vpop.xlane.xlu0 %2985 }
 0x366   : > { %v10107_v56 = vmax.f32 %v10098_v21, %v2982_v63  ;;  %v10110_v45 = vmax.f32 %v10100_v26, %v2986_v32  ;;  %v12059_v21 = vld [vmem:[#allocation43_spill] sm:$0xff] }
 0x368   : > { %12057 = vst [vmem:[#allocation82_spill] sm:$0xff] %v10107_v56  ;;  %12058 = vst [vmem:[#allocation83_spill] sm:$0xff] %v10110_v45  ;;  %3241 = vperm.xlu1 %7962, %v10107_v56  }
 0x369   : > { %6096 = vst.msk [vmem:[#allocation3 + $0xb0] sm:$0xff] %vm3545_vm3, %v10107_v56  ;;  %6098 = vst.msk [vmem:[#allocation3 + $0xc0] sm:$0xff] %vm3545_vm3, %v10110_v45  ;;  %v12060_v56 = vld [vmem:[#allocation44_spill] sm:$0xff] }
 0x36c   : > { %3251 = vperm.xlu1 %7962, %v10110_v45  }
 0x371   : > { %v3137_v63 = vpop.permute.xlu1 %3136 }
 0x372   : > { %v3290_v32 = vsub.f32 %v9594_v57, %v3137_v63  ;;  %v12061_v63 = vld [vmem:[#allocation46_spill] sm:$0xff] }
 0x374   : > { %v3323_v50 = vmul.f32 1.442695, %v3290_v32 }
 0x375   : > { %v3147_v0 = vpop.permute.xlu1 %3146  ;;  %v3132_v5 = vpop.permute.xlu0 %3131 }
 0x376   : > { %7964 = vpow2.f32 %v3323_v50  ;;  %v3292_v6 = vsub.f32 %v9601_v4, %v3147_v0  ;;  %v3289_v59 = vsub.f32 %v12059_v21, %v3132_v5  ;;  %v12062_v5 = vld [vmem:[#allocation45_spill] sm:$0xff] }
 0x378   : > { %v3327_v44 = vmul.f32 1.442695, %v3292_v6  ;;  %v3321_v42 = vmul.f32 1.442695, %v3289_v59  ;;  %3211 = vperm.xlu0 %7963, %v10041_v12   ;;  %v12065_v6 = vld [vmem:[#allocation48_spill] sm:$0xff] }
 0x379   : > { %v3142_v26 = vpop.permute.xlu1 %3141 }
 0x37a   : > { %7966 = vpow2.f32 %v3327_v44  ;;  %v3291_v10 = vsub.f32 %v12060_v56, %v3142_v26 }
 0x37b   : > { %7968 = vpow2.f32 %v3321_v42 }
 0x37c   : > { %v3325_v45 = vmul.f32 1.442695, %v3291_v10  ;;  %3226 = vperm.xlu0 %7963, %v10053_v11  }
 0x37d   : > { %v3157_v57 = vpop.permute.xlu1 %3156 }
 0x37e   : > { %7970 = vpow2.f32 %v3325_v45  ;;  %v3294_v50 = vsub.f32 %v12061_v63, %v3157_v57 }
 0x380   : > { %v3331_v32 = vmul.f32 1.442695, %v3294_v50  ;;  %3236 = vperm.xlu0 %7963, %v10074_v14   ;;  %v10362_v14 = vld [vmem:[#allocation3 + $0xd8] sm:$0xff] }
 0x381   : > { %v3152_v4 = vpop.permute.xlu1 %3151 }
 0x382   : > { %7972 = vpow2.f32 %v3331_v32  ;;  %v3293_v0 = vsub.f32 %v12062_v5, %v3152_v4  ;;  %v12070_v5 = vld [vmem:[#allocation47_spill] sm:$0xff] }
 0x383   : > { %v10131_v59 = vpop.eup %7964 }
 0x384   : > { %12063 = vst [vmem:[#allocation43_spill] sm:$0xff] %v10131_v59  ;;  %v3329_v44 = vmul.f32 1.442695, %v3293_v0  ;;  %3246 = vperm.xlu0 %7963, %v10094_v28   ;;  %v10135_v10 = vand.u32 4294901760, %v10131_v59 }
 0x385   : > { %v3167_v56 = vpop.permute.xlu1 %3166 }
 0x386   : > { %12064 = vst [vmem:[#allocation44_spill] sm:$0xff] %v10135_v10  ;;  %7974 = vpow2.f32 %v3329_v44  ;;  %v3296_v42 = vsub.f32 %v12065_v6, %v3167_v56  ;;  %v10140_v21 = vsub.f32 %v10131_v59, %v10135_v10  ;;  %v12074_v59 = vld [vmem:[#allocation38_spill] sm:$0xff] }
 0x387   : > { %v10142_v26 = vpop.eup %7966 }
 0x388   : > { %12066 = vst [vmem:[#allocation46_spill] sm:$0xff] %v10142_v26  ;;  %v10144_v45 = vpop.eup %7968  ;;  %v3335_v57 = vmul.f32 1.442695, %v3296_v42  ;;  %v10147_v63 = vand.u32 4294901760, %v10142_v26 }
 0x389   : > { %12067 = vst [vmem:[#allocation45_spill] sm:$0xff] %v10144_v45  ;;  %v3162_v50 = vpop.permute.xlu1 %3161  ;;  %v10150_v32 = vand.u32 4294901760, %v10144_v45 }
 0x38a   : > { %12068 = vst [vmem:[#allocation48_spill] sm:$0xff] %v10147_v63  ;;  %7976 = vpow2.f32 %v3335_v57  ;;  %v3295_v0 = vsub.f32 %v12070_v5, %v3162_v50  ;;  %v10156_v44 = vsub.f32 %v10142_v26, %v10147_v63  ;;  %v12073_v5 = vand.u32 4294901760, %v10140_v21 }
 0x38b   : > { %12069 = vst [vmem:[#allocation84_spill] sm:$0xff] %v10150_v32  ;;  %v10158_v56 = vpop.eup %7970  ;;  %7503 = vmatprep.mubr.f32.mxu1 %v10150_v32  ;;  %v10163_v6 = vsub.f32 %v10144_v45, %v10150_v32 }
 0x38c   : > { %12071 = vst [vmem:[#allocation47_spill] sm:$0xff] %v10158_v56  ;;  %v3333_v42 = vmul.f32 1.442695, %v3295_v0  ;;  %7504 = vmatmul.mubr.f32.vlgmr.msra.gmra.mxu1 %v10135_v10  ;;  %v10167_v4 = vand.u32 4294901760, %v10158_v56  ;;  %v3658_v26 = vsub.f32 %v10140_v21, %v12073_v5  ;;  %v12078_v9 = vand.u32 4294901760, %v10156_v44 }
 0x38d   : > { %v3172_v57 = vpop.permute.xlu1 %3171  ;;  %7556 = vmatpush3.xpose.msra.mxu1 %v9847_v36  ;;  %v12076_v12 = vand.u32 4294901760, %v10163_v6 }
 0x38e   : > { %12072 = vst [vmem:[#allocation85_spill] sm:$0xff] %v10167_v4  ;;  %7978 = vpow2.f32 %v3333_v42  ;;  %v3297_v60 = vsub.f32 %v12074_v59, %v3172_v57  ;;  %7506 = vmatprep.mubr.f32.mxu1 %v10167_v4  ;;  %v10178_v0 = vsub.f32 %v10158_v56, %v10167_v4  ;;  %7557 = vmatprep.subr.mxu1 %v9875_v31  ;;  %v3659_v56 = vand.u32 4294901760, %v3658_v26 }
 0x38f   : > { %v10182_v50 = vpop.eup %7972  ;;  %v3648_v5 = vsub.f32 %v10163_v6, %v12076_v12  ;;  %v3678_v12 = vsub.f32 %v10156_v44, %v12078_v9 }
 0x390   : > { %12075 = vst [vmem:[#allocation38_spill] sm:$0xff] %v10182_v50  ;;  %v3337_v16 = vmul.f32 1.442695, %v3297_v60  ;;  %7507 = vmatmul.mubr.f32.gmra.mxu1 %v10147_v63  ;;  %v11828_v59 = vand.u32 4294901760, %v10178_v0  ;;  %v10190_v42 = vand.u32 4294901760, %v10182_v50 }
 0x391   : > { %v3649_v57 = vand.u32 4294901760, %v3648_v5  ;;  %7558 = vmatpush3.xpose.msra.mxu1 %v9875_v31  ;;  %v3679_v9 = vand.u32 4294901760, %v3678_v12 }
 0x392   : > { %12077 = vst [vmem:[#allocation86_spill] sm:$0xff] %v10190_v42  ;;  %7980 = vpow2.f32 %v3337_v16  ;;  %v3668_v45 = vsub.f32 %v10178_v0, %v11828_v59  ;;  %v10201_v60 = vsub.f32 %v10182_v50, %v10190_v42  ;;  %7611 = vmatprep.subr.mxu1 %v9847_v36 }
 0x393   : > { %v10204_v63 = vpop.eup %7974  ;;  %7475 = vmatprep.mubr.f32.mxu0 %v3649_v57 }
 0x394   : > { %12079 = vst [vmem:[#allocation87_spill] sm:$0xff] %v10204_v63  ;;  %7476 = vmatmul.mubr.f32.vlgmr.msra.gmra.mxu0 %v3659_v56  ;;  %v3669_v26 = vand.u32 4294901760, %v3668_v45  ;;  %v10207_v16 = vand.u32 4294901760, %v10204_v63  ;;  %v11833_v5 = vand.u32 4294901760, %v10201_v60 }
 0x395   : > { %7528 = vmatpush3.xpose.msra.mxu0 %v9855_v58 }
 0x396   : > { %12080 = vst [vmem:[#allocation88_spill] sm:$0xff] %v10207_v16  ;;  %7478 = vmatprep.mubr.f32.mxu0 %v3669_v26  ;;  %7509 = vmatprep.mubr.f32.mxu1 %v10207_v16  ;;  %v10214_v59 = vsub.f32 %v10204_v63, %v10207_v16  ;;  %v3698_v58 = vsub.f32 %v10201_v60, %v11833_v5  ;;  %v12085_v16 = vld [vmem:[#allocation40_spill] sm:$0xff] }
 0x397   : > { %v10216_v50 = vpop.eup %7976  ;;  %7510 = vmatmul.mubr.f32.gmra.mxu1 %v10190_v42  ;;  %7529 = vmatprep.subr.mxu0 %v9889_v29 }
 0x398   : > { %12081 = vst [vmem:[#allocation89_spill] sm:$0xff] %v10216_v50  ;;  %7479 = vmatmul.mubr.f32.gmra.mxu0 %v3679_v9  ;;  %v11838_v45 = vand.u32 4294901760, %v10214_v59  ;;  %v10222_v56 = vand.u32 4294901760, %v10216_v50  ;;  %v3182_v9 = vpop.permute.xlu1 %3181  ;;  %v3699_v5 = vand.u32 4294901760, %v3698_v58  ;;  %v10254_v58 = vld [vmem:[#allocation3 + $0xd0] sm:$0xff] }
 0x399   : > { %7530 = vmatpush3.xpose.msra.mxu0 %v9889_v29  ;;  %v3299_v4 = vsub.f32 %v12085_v16, %v3182_v9  ;;  %12088 = vst [vmem:[#allocation94_spill] sm:$0xff] %v10254_v58 }
 0x39a   : > { %12082 = vst [vmem:[#allocation90_spill] sm:$0xff] %v10222_v56  ;;  %v3688_v57 = vsub.f32 %v10214_v59, %v11838_v45  ;;  %v10233_v12 = vsub.f32 %v10216_v50, %v10222_v56  ;;  %7583 = vmatprep.subr.mxu0 %v9871_v62 }
 0x39b   : > { %v10236_v26 = vpop.eup %7978  ;;  %v3341_v9 = vmul.f32 1.442695, %v3299_v4  ;;  %v12092_v4 = vld [vmem:[#allocation39_spill] sm:$0xff] }
 0x39c   : > { %12083 = vst [vmem:[#allocation91_spill] sm:$0xff] %v10236_v26  ;;  %v3689_v63 = vand.u32 4294901760, %v3688_v57  ;;  %v10239_v42 = vand.u32 4294901760, %v10236_v26 }
 0x39d   : > { %7982 = vpow2.f32 %v3341_v9 }
 0x39e   : > { %12084 = vst [vmem:[#allocation92_spill] sm:$0xff] %v10239_v42  ;;  %7481 = vmatprep.mubr.f32.mxu0 %v3689_v63  ;;  %7512 = vmatprep.mubr.f32.mxu1 %v10239_v42  ;;  %v10246_v45 = vsub.f32 %v10236_v26, %v10239_v42  ;;  %v12089_v63 = vand.u32 4294901760, %v10233_v12  ;;  %v3197_v42 = vpop.permute.xlu1 %3196 }
 0x39f   : > { %v10248_v50 = vpop.eup %7980  ;;  %7482 = vmatmul.mubr.f32.gmra.mxu0 %v3699_v5  ;;  %7513 = vmatmul.mubr.f32.gmra.mxu1 %v10222_v56 }
 0x3a0   : > { %12086 = vst [vmem:[#allocation40_spill] sm:$0xff] %v10248_v50  ;;  %v10252_v57 = vand.u32 4294901760, %v10248_v50  ;;  %v11849_v29 = vand.u32 4294901760, %v10246_v45  ;;  %v3718_v16 = vsub.f32 %v10233_v12, %v12089_v63 }
 0x3a2   : > { %12087 = vst [vmem:[#allocation93_spill] sm:$0xff] %v10252_v57  ;;  %7515 = vmatprep.mubr.f32.mxu1 %v10252_v57  ;;  %v2990_v26 = vpop.xlane.xlu0 %2989  ;;  %v3708_v5 = vsub.f32 %v10246_v45, %v11849_v29  ;;  %v10266_v56 = vsub.f32 %v10248_v50, %v10252_v57  ;;  %v3719_v63 = vand.u32 4294901760, %v3718_v16  ;;  %v12091_v29 = vld [vmem:[#allocation35_spill] sm:$0xff]  ;;  %v12093_v16 = vld [vmem:[#allocation34_spill] sm:$0xff] }
 0x3a3   : > { %v10269_v10 = vmax.f32 %v10254_v58, %v2990_v26  ;;  %v3302_v50 = vsub.f32 %v12091_v29, %v3197_v42  ;;  %v12095_v29 = vld [vmem:[#allocation36_spill] sm:$0xff] }
 0x3a4   : > { %v3709_v28 = vand.u32 4294901760, %v3708_v5  ;;  %v11858_v7 = vand.u32 4294901760, %v10266_v56 }
 0x3a5   : > { %12090 = vst [vmem:[#allocation95_spill] sm:$0xff] %v10269_v10  ;;  %6100 = vst.msk [vmem:[#allocation3 + $0xd0] sm:$0xff] %vm3545_vm3, %v10269_v10  ;;  %3261 = vperm.xlu1 %7962, %v10269_v10   ;;  %v3347_v57 = vmul.f32 1.442695, %v3302_v50 }
 0x3a6   : > { %7484 = vmatprep.mubr.f32.mxu0 %v3709_v28  ;;  %v3728_v26 = vsub.f32 %v10266_v56, %v11858_v7 }
 0x3a7   : > { %7485 = vmatmul.mubr.f32.gmra.mxu0 %v3719_v63  ;;  %7984 = vpow2.f32 %v3347_v57 }
 0x3a8   : > { %v3729_v5 = vand.u32 4294901760, %v3728_v26 }
 0x3aa   : > { %7487 = vmatprep.mubr.f32.mxu0 %v3729_v5  ;;  %v3177_v39 = vpop.permute.xlu0 %3176  ;;  %v10283_v28 = vpop.eup %7982 }
 0x3ab   : > { %v3298_v58 = vsub.f32 %v12092_v4, %v3177_v39  ;;  %12094 = vst [vmem:[#allocation35_spill] sm:$0xff] %v10283_v28  ;;  %v10287_v50 = vand.u32 4294901760, %v10283_v28  ;;  %v12097_v39 = vld [vmem:[#allocation41_spill] sm:$0xff] }
 0x3ad   : > { %v3339_v47 = vmul.f32 1.442695, %v3298_v58  ;;  %12096 = vst [vmem:[#allocation39_spill] sm:$0xff] %v10287_v50 }
 0x3ae   : > { %v3187_v13 = vpop.permute.xlu0 %3186 }
 0x3af   : > { %7986 = vpow2.f32 %v3339_v47  ;;  %v3300_v9 = vsub.f32 %v12093_v16, %v3187_v13  ;;  %v10292_v13 = vsub.f32 %v10283_v28, %v10287_v50  ;;  %v10336_v28 = vld [vmem:[#allocation3 + $0xc8] sm:$0xff] }
 0x3b0   : > { %12106 = vst [vmem:[#allocation99_spill] sm:$0xff] %v10336_v28 }
 0x3b1   : > { %v3343_v10 = vmul.f32 1.442695, %v3300_v9 }
 0x3b2   : > { %v3192_v42 = vpop.permute.xlu0 %3191 }
 0x3b3   : > { %7988 = vpow2.f32 %v3343_v10  ;;  %v3301_v7 = vsub.f32 %v12095_v29, %v3192_v42  ;;  %v12099_v10 = vld [vmem:[#allocation37_spill] sm:$0xff]  ;;  %v11861_v42 = vand.u32 4294901760, %v10292_v13 }
 0x3b4   : > { %v10294_v47 = vpop.eup %7984 }
 0x3b5   : > { %v3345_v63 = vmul.f32 1.442695, %v3301_v7  ;;  %12098 = vst [vmem:[#allocation34_spill] sm:$0xff] %v10294_v47  ;;  %v10304_v29 = vand.u32 4294901760, %v10294_v47 }
 0x3b6   : > { %v3207_v26 = vpop.permute.xlu0 %3206 }
 0x3b7   : > { %7990 = vpow2.f32 %v3345_v63  ;;  %v3304_v58 = vsub.f32 %v12097_v39, %v3207_v26  ;;  %12102 = vst [vmem:[#allocation37_spill] sm:$0xff] %v10304_v29 }
 0x3b9   : > { %v3351_v57 = vmul.f32 1.442695, %v3304_v58 }
 0x3ba   : > { %v3202_v4 = vpop.permute.xlu0 %3201 }
 0x3bb   : > { %7992 = vpow2.f32 %v3351_v57  ;;  %v3303_v5 = vsub.f32 %v12099_v10, %v3202_v4  ;;  %v3748_v57 = vsub.f32 %v10292_v13, %v11861_v42  ;;  %v10323_v4 = vsub.f32 %v10294_v47, %v10304_v29 }
 0x3bc   : > { %v10297_v16 = vpop.eup %7986 }
 0x3bd   : > { %12100 = vst [vmem:[#allocation36_spill] sm:$0xff] %v10297_v16  ;;  %v3349_v7 = vmul.f32 1.442695, %v3303_v5  ;;  %v10300_v9 = vand.u32 4294901760, %v10297_v16 }
 0x3bf   : > { %12101 = vst [vmem:[#allocation41_spill] sm:$0xff] %v10300_v9  ;;  %7994 = vpow2.f32 %v3349_v7  ;;  %7516 = vmatmul.mubr.f32.gmra.mxu1 %v10300_v9  ;;  %v10309_v63 = vsub.f32 %v10297_v16, %v10300_v9  ;;  %v599_v16 = vld [vmem:[%s8724_s6 + $0x18] sm:$0xff]  ;;  %v3749_v9 = vand.u32 4294901760, %v3748_v57  ;;  %v12109_v57 = vsub.f32 %v9821_v1, %v9832_v18 }
 0x3c0   : > { %v10311_v26 = vpop.eup %7988  ;;  %7518 = vmatprep.mubr.f32.mxu1 %v10287_v50  ;;  %v12112_v1 = vand.u32 4294901760, %v10323_v4 }
 0x3c1   : > { %12103 = vst [vmem:[#allocation96_spill] sm:$0xff] %v10311_v26  ;;  %v10315_v39 = vand.u32 4294901760, %v10311_v26  ;;  %v11870_v58 = vand.u32 4294901760, %v10309_v63  ;;  %v3065_v32 = vmul.f32 1.442695, %v12109_v57 }
 0x3c3   : > { %12104 = vst [vmem:[#allocation97_spill] sm:$0xff] %v10315_v39  ;;  %7519 = vmatmul.mubr.f32.gmra.mxu1 %v10315_v39  ;;  %v3738_v10 = vsub.f32 %v10309_v63, %v11870_v58  ;;  %v10331_v5 = vsub.f32 %v10311_v26, %v10315_v39  ;;  %7996 = vpow2.f32 %v3065_v32 }
 0x3c4   : > { %v10333_v7 = vpop.eup %7990 }
 0x3c5   : > { %12105 = vst [vmem:[#allocation98_spill] sm:$0xff] %v10333_v7  ;;  %v3739_v42 = vand.u32 4294901760, %v3738_v10  ;;  %v10339_v50 = vand.u32 4294901760, %v10333_v7  ;;  %v11875_v47 = vand.u32 4294901760, %v10331_v5  ;;  %v10351_v10 = vand.u32 4294901760, %v599_v16 }
 0x3c7   : > { %12107 = vst [vmem:[#allocation100_spill] sm:$0xff] %v10339_v50  ;;  %v2988_v41 = vpop.xlane.xlu1 %2987  ;;  %7488 = vmatmul.mubr.f32.gmra.mxu0 %v3739_v42  ;;  %7521 = vmatprep.mubr.f32.mxu1 %v10339_v50  ;;  %v3758_v58 = vsub.f32 %v10331_v5, %v11875_v47  ;;  %v10349_v26 = vsub.f32 %v10333_v7, %v10339_v50 }
 0x3c8   : > { %v10353_v39 = vpop.eup %7992  ;;  %v10359_v42 = vmax.f32 %v10336_v28, %v2988_v41  ;;  %7490 = vmatprep.mubr.f32.mxu0 %v3749_v9  ;;  %7522 = vmatmul.mubr.f32.gmra.mxu1 %v10304_v29  ;;  %v3778_v41 = vsub.f32 %v10323_v4, %v12112_v1  ;;  %v10382_v57 = vsub.f32 %v599_v16, %v10351_v10  ;;  %v10392_v1 = vld [vmem:[#allocation3 + $0xe8] sm:$0xff] }
 0x3c9   : > { %12108 = vst [vmem:[#allocation101_spill] sm:$0xff] %v10353_v39  ;;  %v3759_v47 = vand.u32 4294901760, %v3758_v58  ;;  %v11883_v7 = vand.u32 4294901760, %v10349_v26  ;;  %v10366_v50 = vand.u32 4294901760, %v10353_v39  ;;  %v12114_v28 = vsub.f32 %v9819_v37, %v9829_v22 }
 0x3ca   : > { %12110 = vst [vmem:[#allocation102_spill] sm:$0xff] %v10359_v42  ;;  %6099 = vst.msk [vmem:[#allocation3 + $0xc8] sm:$0xff] %vm3545_vm3, %v10359_v42  ;;  %3256 = vperm.xlu0 %7963, %v10359_v42   ;;  %v3779_v16 = vand.u32 4294901760, %v3778_v41  ;;  %v10407_v32 = vand.u32 4294901760, %v10382_v57 }
 0x3cb   : > { %12111 = vst [vmem:[#allocation103_spill] sm:$0xff] %v10366_v50  ;;  %v2992_v18 = vpop.xlane.xlu1 %2991  ;;  %7491 = vmatmul.mubr.f32.gmra.mxu0 %v3759_v47  ;;  %v3768_v9 = vsub.f32 %v10349_v26, %v11883_v7  ;;  %v10379_v58 = vsub.f32 %v10353_v39, %v10366_v50  ;;  %v3071_v42 = vmul.f32 1.442695, %v12114_v28  ;;  %v12116_v28 = vsub.f32 %v9858_v24, %v9882_v40 }
 0x3cc   : > { %v10384_v29 = vpop.eup %7994  ;;  %v10390_v47 = vmax.f32 %v10362_v14, %v2992_v18 }
 0x3cd   : > { %12113 = vst [vmem:[#allocation104_spill] sm:$0xff] %v10384_v29  ;;  %v3769_v7 = vand.u32 4294901760, %v3768_v9  ;;  %v10395_v38 = vand.u32 4294901760, %v10384_v29  ;;  %7998 = vpow2.f32 %v3071_v42  ;;  %v3075_v18 = vmul.f32 1.442695, %v12116_v28  ;;  %v10418_v9 = vld [vmem:[#allocation3 + $0xf8] sm:$0xff] }
 0x3ce   : > { %6101 = vst.msk [vmem:[#allocation3 + $0xd8] sm:$0xff] %vm3545_vm3, %v10390_v47  ;;  %3266 = vperm.xlu0 %7963, %v10390_v47   ;;  %v12118_v24 = vand.u32 4294901760, %v10379_v58  ;;  %v12119_v28 = vsub.f32 %v9886_v52, %v9912_v19 }
 0x3cf   : > { %12115 = vst [vmem:[#allocation105_spill] sm:$0xff] %v10395_v38  ;;  %v2996_v37 = vpop.xlane.xlu1 %2995  ;;  %7493 = vmatprep.mubr.f32.mxu0 %v3769_v7  ;;  %7524 = vmatprep.mubr.f32.mxu1 %v10395_v38  ;;  %v10404_v22 = vsub.f32 %v10384_v29, %v10395_v38  ;;  %v12117_v7 = vand.u32 4294901760, %v10163_v6  ;;  %8000 = vpow2.f32 %v3075_v18 }
 0x3d0   : > { %v10413_v41 = vmax.f32 %v10392_v1, %v2996_v37  ;;  %7494 = vmatmul.mubr.f32.gmra.mxu0 %v3779_v16  ;;  %7525 = vmatmul.mubr.f32.gmra.mxu1 %v10366_v50  ;;  %v3798_v40 = vsub.f32 %v10379_v58, %v12118_v24  ;;  %v4941_v37 = vsub.f32 %v10382_v57, %v10407_v32  ;;  %v12120_v50 = vand.u32 4294901760, %v10140_v21 }
 0x3d1   : > { %7559 = vmatprep.mubr.f32.mxu1 %v12117_v7  ;;  %v11891_v39 = vand.u32 4294901760, %v10404_v22  ;;  %v3079_v7 = vmul.f32 1.442695, %v12119_v28  ;;  %v12121_v24 = vand.u32 4294901760, %v10178_v0 }
 0x3d2   : > { %6103 = vst.msk [vmem:[#allocation3 + $0xe8] sm:$0xff] %vm3545_vm3, %v10413_v41  ;;  %3276 = vperm.xlu0 %7963, %v10413_v41   ;;  %v3799_v52 = vand.u32 4294901760, %v3798_v40  ;;  %v10449_v19 = vand.u32 4294901760, %v4941_v37  ;;  %v12125_v40 = vand.u32 4294901760, %v10214_v59 }
 0x3d3   : > { %v3000_v42 = vpop.xlane.xlu1 %2999  ;;  %v3788_v16 = vsub.f32 %v10404_v22, %v11891_v39  ;;  %8002 = vpow2.f32 %v3079_v7 }
 0x3d4   : > { %v10436_v29 = vmax.f32 %v10418_v9, %v3000_v42  ;;  %7560 = vmatmul.mubr.f32.vlgmr.msra.gmra.mxu1 %v12120_v50  ;;  %v12122_v50 = vsub.f32 %v9914_v53, %v9933_v55  ;;  %v10456_v42 = vpop.eup %7996  ;;  %v12126_v55 = vsub.f32 %v9935_v35, %v9955_v33  ;;  %v12131_v33 = vsub.f32 %v9958_v48, %v9975_v8 }
 0x3d5   : > { %7562 = vmatprep.mubr.f32.mxu1 %v12121_v24  ;;  %v3789_v38 = vand.u32 4294901760, %v3788_v16  ;;  %7612 = vmatpush3.xpose.msra.mxu1 %v9847_v36  ;;  %v12123_v36 = vand.u32 4294901760, %v10156_v44  ;;  %12124 = vst [vmem:[#allocation106_spill] sm:$0xff] %v10456_v42  ;;  %v12129_v16 = vand.u32 4294901760, %v10246_v45  ;;  %v12135_v48 = vsub.f32 %v9834_v49, %v9852_v43  ;;  %v10512_v43 = vld [vmem:[#allocation3 + $0xe0] sm:$0xff] }
 0x3d6   : > { %6105 = vst.msk [vmem:[#allocation3 + $0xf8] sm:$0xff] %vm3545_vm3, %v10436_v29  ;;  %3286 = vperm.xlu0 %7963, %v10436_v29   ;;  %7613 = vmatprep.subr.mxu1 %v9875_v31  ;;  %v3083_v18 = vmul.f32 1.442695, %v12122_v50  ;;  %v3087_v53 = vmul.f32 1.442695, %v12126_v55  ;;  %v12139_v49 = vand.u32 4294901760, %v10292_v13  ;;  %v12141_v24 = vsub.f32 %v10024_v20, %v10032_v54 }
 0x3d7   : > { %7496 = vmatprep.mubr.f32.mxu0 %v3789_v38  ;;  %v12127_v38 = vand.u32 4294901760, %v10201_v60  ;;  %v12142_v50 = vand.u32 4294901760, %v10331_v5  ;;  %v12145_v20 = vsub.f32 %v9873_v61, %v9897_v51  ;;  %v12149_v61 = vand.u32 4294901760, %v10404_v22 }
 0x3d8   : > { %7497 = vmatmul.mubr.f32.gmra.mxu0 %v3799_v52  ;;  %7563 = vmatmul.mubr.f32.gmra.mxu1 %v12123_v36  ;;  %8004 = vpow2.f32 %v3083_v18 }
 0x3d9   : > { %7531 = vmatprep.mubr.f32.mxu0 %v10163_v6  ;;  %7565 = vmatprep.mubr.f32.mxu1 %v12125_v40  ;;  %8006 = vpow2.f32 %v3087_v53  ;;  %v3077_v54 = vmul.f32 1.442695, %v12145_v20  ;;  %v12146_v40 = vsub.f32 %v10043_v25, %v10053_v11  ;;  %v12150_v25 = vsub.f32 %v9901_v23, %v9923_v17  ;;  %v12156_v23 = vld [vmem:[#allocation42_spill] sm:$0xff] }
 0x3da   : > { %5820 = vperm.xlu0 %7963, %v10456_v42   ;;  %7614 = vmatpush3.xpose.msra.mxu1 %v9875_v31  ;;  %v10470_v6 = vpop.eup %7998  ;;  %v12130_v31 = vsub.f32 %v9814_v15, %v9817_v46  ;;  %v12134_v15 = vand.u32 4294901760, %v10266_v56  ;;  %v3069_v46 = vmul.f32 1.442695, %v12135_v48 }
 0x3db   : > { %7667 = vmatprep.subr.mxu1 %v10449_v19  ;;  %12128 = vst [vmem:[#allocation107_spill] sm:$0xff] %v10470_v6  ;;  %v3103_v55 = vmul.f32 1.442695, %v12146_v40  ;;  %v3081_v11 = vmul.f32 1.442695, %v12150_v25 }
 0x3dc   : > { %7532 = vmatmul.mubr.f32.vlgmr.msra.gmra.mxu0 %v10140_v21  ;;  %7566 = vmatmul.mubr.f32.gmra.mxu1 %v12127_v38  ;;  %v3067_v35 = vmul.f32 1.442695, %v12130_v31  ;;  %v3091_v21 = vmul.f32 1.442695, %v12131_v33  ;;  %v10487_v37 = vpop.eup %8000  ;;  %v12147_v38 = vand.u32 4294901760, %v10323_v4  ;;  %v12151_v31 = vld [vmem:[#allocation72_spill] sm:$0xff] }
 0x3dd   : > { %7534 = vmatprep.mubr.f32.mxu0 %v10178_v0  ;;  %7568 = vmatprep.mubr.f32.mxu1 %v12129_v16  ;;  %v12132_v0 = vand.u32 4294901760, %v10233_v12  ;;  %12133 = vst [vmem:[#allocation108_spill] sm:$0xff] %v10487_v37 }
 0x3de   : > { %5835 = vperm.xlu0 %7963, %v10470_v6   ;;  %7584 = vmatpush3.xpose.msra.mxu0 %v9871_v62  ;;  %8008 = vpow2.f32 %v3067_v35  ;;  %v12136_v62 = vsub.f32 %v9978_v2, %v9993_v3  ;;  %v12140_v2 = vsub.f32 %v9849_v30, %v9867_v27  ;;  %v12144_v30 = vand.u32 4294901760, %v10349_v26  ;;  %v10534_v27 = vld [vmem:[#allocation3 + $0xf0] sm:$0xff]  ;;  %v12152_v35 = vld [vmem:[#allocation75_spill] sm:$0xff]  ;;  %v12263_v6 = vld [vmem:[#allocation78_spill] sm:$0xff] }
 0x3df   : > { %7585 = vmatprep.subr.mxu0 %v9904_v34  ;;  %8010 = vpow2.f32 %v3091_v21  ;;  %v12153_v33 = vsub.f32 %v12151_v31, %v12152_v35  ;;  %v12172_v31 = vld [vmem:[#allocation60_spill] sm:$0xff]  ;;  %v12173_v35 = vld [vmem:[#allocation61_spill] sm:$0xff] }
 0x3e0   : > { %7535 = vmatmul.mubr.f32.gmra.mxu0 %v10156_v44  ;;  %7569 = vmatmul.mubr.f32.gmra.mxu1 %v12132_v0  ;;  %v3095_v8 = vmul.f32 1.442695, %v12136_v62  ;;  %v10501_v44 = vpop.permute.xlu1 %3216  ;;  %v10507_v28 = vpop.eup %8002  ;;  %8012 = vpow2.f32 %v3069_v46  ;;  %v3073_v3 = vmul.f32 1.442695, %v12140_v2  ;;  %v12157_v46 = vld [vmem:[#allocation84_spill] sm:$0xff]  ;;  %v12158_v62 = vld [vmem:[#allocation58_spill] sm:$0xff] }
 0x3e1   : > { %7537 = vmatprep.mubr.f32.mxu0 %v10214_v59  ;;  %7571 = vmatprep.mubr.f32.mxu1 %v12134_v15  ;;  %v12137_v59 = vand.u32 4294901760, %v10309_v63  ;;  %12138 = vst [vmem:[#allocation109_spill] sm:$0xff] %v10507_v28  ;;  %v3107_v21 = vmul.f32 1.442695, %v12153_v33  ;;  %v12154_v15 = vand.u32 4294901760, %v10379_v58  ;;  %v3306_v17 = vsub.f32 %v12156_v23, %v10501_v44 }
 0x3e2   : > { %5845 = vperm.xlu0 %7963, %v10487_v37   ;;  %7586 = vmatpush3.xpose.msra.mxu0 %v9904_v34  ;;  %v598_v34 = vld [vmem:[%s8724_s6 + $0x10] sm:$0xff]  ;;  %8014 = vpow2.f32 %v3095_v8  ;;  %v12159_v8 = vld [vmem:[#allocation59_spill] sm:$0xff] }
 0x3e3   : > { %7639 = vmatprep.subr.mxu0 %v10351_v10  ;;  %v10518_v7 = vand.u32 4294901760, %v598_v34  ;;  %8016 = vpow2.f32 %v3073_v3  ;;  %v12163_v3 = vld [vmem:[#allocation79_spill] sm:$0xff] }
 0x3e4   : > { %7538 = vmatmul.mubr.f32.gmra.mxu0 %v10201_v60  ;;  %7572 = vmatmul.mubr.f32.gmra.mxu1 %v12137_v59  ;;  %v3222_v36 = vpop.permute.xlu1 %3221  ;;  %v12160_v59 = vsub.f32 %v12158_v62, %v12159_v8  ;;  %v3060_v8 = vsub.f32 %v10362_v14, %v10390_v47  ;;  %v12184_v47 = vld [vmem:[#allocation56_spill] sm:$0xff] }
 0x3e5   : > { %7540 = vmatprep.mubr.f32.mxu0 %v10246_v45  ;;  %7574 = vmatprep.mubr.f32.mxu1 %v12139_v49  ;;  %v3099_v45 = vmul.f32 1.442695, %v12141_v24  ;;  %v10529_v18 = vpop.eup %8004  ;;  %v12161_v49 = vld [vmem:[#allocation51_spill] sm:$0xff] }
 0x3e6   : > { %5855 = vperm.xlu0 %7963, %v10507_v28   ;;  %12143 = vst [vmem:[#allocation110_spill] sm:$0xff] %v10529_v18  ;;  %v10555_v16 = vpop.eup %8006  ;;  %v3307_v2 = vsub.f32 %v12161_v49, %v3222_v36  ;;  %v12168_v36 = vld [vmem:[#allocation49_spill] sm:$0xff]  ;;  %v12178_v49 = vld [vmem:[#allocation48_spill] sm:$0xff] }
 0x3e7   : > { %v2994_v60 = vpop.xlane.xlu0 %2993  ;;  %8018 = vpow2.f32 %v3099_v45  ;;  %12148 = vst [vmem:[#allocation111_spill] sm:$0xff] %v10555_v16  ;;  %v12249_v28 = vld [vmem:[#allocation65_spill] sm:$0xff] }
 0x3e8   : > { %v10524_v52 = vmax.f32 %v10512_v43, %v2994_v60  ;;  %7541 = vmatmul.mubr.f32.gmra.mxu0 %v10233_v12  ;;  %7575 = vmatmul.mubr.f32.gmra.mxu1 %v12142_v50  ;;  %8020 = vpow2.f32 %v3077_v54  ;;  %v3232_v0 = vpop.permute.xlu1 %3231  ;;  %v12166_v50 = vld [vmem:[#allocation102_spill] sm:$0xff] }
 0x3e9   : > { %7543 = vmatprep.mubr.f32.mxu0 %v10266_v56  ;;  %7577 = vmatprep.mubr.f32.mxu1 %v12144_v30  ;;  %v10544_v56 = vsub.f32 %v598_v34, %v10518_v7  ;;  %8022 = vpow2.f32 %v3103_v55  ;;  %v3085_v34 = vmul.f32 1.442695, %v12160_v59  ;;  %v12167_v30 = vld [vmem:[#allocation99_spill] sm:$0xff]  ;;  %v3355_v55 = vmul.f32 1.442695, %v3306_v17  ;;  %v12177_v59 = vld [vmem:[#allocation50_spill] sm:$0xff] }
 0x3ea   : > { %6102 = vst.msk [vmem:[#allocation3 + $0xe0] sm:$0xff] %vm3545_vm3, %v10524_v52  ;;  %5865 = vperm.xlu0 %7963, %v10529_v18   ;;  %3271 = vperm.xlu1 %7962, %v10524_v52   ;;  %8024 = vpow2.f32 %v3081_v11  ;;  %v3058_v20 = vsub.f32 %v12167_v30, %v12166_v50  ;;  %v3119_v50 = vmul.f32 1.442695, %v3060_v8  ;;  %v12243_v18 = vld [vmem:[#allocation87_spill] sm:$0xff] }
 0x3eb   : > { %v2998_v12 = vpop.xlane.xlu0 %2997  ;;  %8026 = vpow2.f32 %v3107_v21  ;;  %v12175_v21 = vld [vmem:[#allocation53_spill] sm:$0xff] }
 0x3ec   : > { %v10550_v53 = vmax.f32 %v10534_v27, %v2998_v12  ;;  %7544 = vmatmul.mubr.f32.gmra.mxu0 %v10309_v63  ;;  %7578 = vmatmul.mubr.f32.gmra.mxu1 %v12147_v38  ;;  %v10572_v63 = vpop.eup %8008  ;;  %v12169_v12 = vld [vmem:[#allocation44_spill] sm:$0xff]  ;;  %v12171_v38 = vld [vmem:[#allocation85_spill] sm:$0xff]  ;;  %8028 = vpow2.f32 %v3085_v34  ;;  %v3242_v25 = vpop.permute.xlu1 %3241  ;;  %v3115_v62 = vmul.f32 1.442695, %v3058_v20 }
 0x3ed   : > { %7546 = vmatprep.mubr.f32.mxu0 %v10292_v13  ;;  %7580 = vmatprep.mubr.f32.mxu1 %v12149_v61  ;;  %v10570_v13 = vand.u32 4294901760, %v10544_v56  ;;  %v10580_v48 = vpop.eup %8010  ;;  %v3357_v61 = vmul.f32 1.442695, %v3307_v2  ;;  %v12186_v20 = vld [vmem:[#allocation52_spill] sm:$0xff] }
 0x3ee   : > { %6104 = vst.msk [vmem:[#allocation3 + $0xf0] sm:$0xff] %vm3545_vm3, %v10550_v53  ;;  %5875 = vperm.xlu0 %7963, %v10555_v16   ;;  %3281 = vperm.xlu1 %7962, %v10550_v53   ;;  %12155 = vst [vmem:[#allocation72_spill] sm:$0xff] %v10580_v48  ;;  %v10597_v45 = vpop.eup %8012 }
 0x3ef   : > { %12165 = vst [vmem:[#allocation75_spill] sm:$0xff] %v10597_v45  ;;  %v10604_v40 = vpop.eup %8014 }
 0x3f0   : > { %7547 = vmatmul.mubr.f32.gmra.mxu0 %v10331_v5  ;;  %7581 = vmatmul.mubr.f32.gmra.mxu1 %v12154_v15  ;;  %v12162_v5 = vld [vmem:[#allocation77_spill] sm:$0xff]  ;;  %12170 = vst [vmem:[#allocation42_spill] sm:$0xff] %v10604_v40  ;;  %v3309_v15 = vsub.f32 %v12175_v21, %v3232_v0  ;;  %v10615_v17 = vpop.eup %8016  ;;  %v12180_v0 = vld [vmem:[#allocation62_spill] sm:$0xff]  ;;  %v3252_v30 = vpop.permute.xlu1 %3251 }
 0x3f1   : > { %7549 = vmatprep.mubr.f32.mxu0 %v10349_v26  ;;  %7615 = vmatprep.mubr.f32.mxu1 %v12157_v46  ;;  %v12164_v60 = vsub.f32 %v12162_v5, %v12163_v3  ;;  %v4948_v26 = vsub.f32 %v10544_v56, %v10570_v13  ;;  %12176 = vst [vmem:[#allocation84_spill] sm:$0xff] %v10615_v17  ;;  %v12181_v5 = vld [vmem:[#allocation63_spill] sm:$0xff] }
 0x3f2   : > { %5885 = vperm.xlu0 %7963, %v10580_v48   ;;  %5825 = vperm.xlu1 %7962, %v10572_v63   ;;  %v12182_v3 = vsub.f32 %v12180_v0, %v12181_v5  ;;  %v12201_v5 = vld [vmem:[#allocation70_spill] sm:$0xff] }
 0x3f3   : > { %v3111_v24 = vmul.f32 1.442695, %v12164_v60  ;;  %v3212_v44 = vpop.permute.xlu0 %3211  ;;  %v12183_v60 = vld [vmem:[#allocation88_spill] sm:$0xff] }
 0x3f4   : > { %v3305_v54 = vsub.f32 %v12168_v36, %v3212_v44  ;;  %7550 = vmatmul.mubr.f32.gmra.mxu0 %v10323_v4  ;;  %7616 = vmatmul.mubr.f32.vlgmr.msra.gmra.mxu1 %v12169_v12  ;;  %v12174_v4 = vsub.f32 %v12172_v31, %v12173_v35  ;;  %v10622_v2 = vpop.eup %8018  ;;  %v12192_v35 = vld [vmem:[#allocation92_spill] sm:$0xff] }
 0x3f5   : > { %7552 = vmatprep.mubr.f32.mxu0 %v10404_v22  ;;  %7618 = vmatprep.mubr.f32.mxu1 %v12171_v38  ;;  %8030 = vpow2.f32 %v3111_v24  ;;  %v4949_v22 = vand.u32 4294901760, %v4948_v26  ;;  %12179 = vst [vmem:[#allocation58_spill] sm:$0xff] %v10622_v2  ;;  %v3311_v24 = vsub.f32 %v12184_v47, %v3242_v25  ;;  %v10632_v26 = vpop.eup %8020  ;;  %v12190_v25 = vld [vmem:[#allocation69_spill] sm:$0xff]  ;;  %v12205_v47 = vld [vmem:[#allocation39_spill] sm:$0xff] }
 0x3f6   : > { %v3353_v11 = vmul.f32 1.442695, %v3305_v54  ;;  %5895 = vperm.xlu0 %7963, %v10604_v40   ;;  %5830 = vperm.xlu1 %7962, %v10597_v45   ;;  %v3089_v33 = vmul.f32 1.442695, %v12174_v4  ;;  %12185 = vst [vmem:[#allocation59_spill] sm:$0xff] %v10632_v26  ;;  %v12187_v54 = vld [vmem:[#allocation86_spill] sm:$0xff] }
 0x3f7   : > { %v3227_v23 = vpop.permute.xlu0 %3226  ;;  %7668 = vmatpush3.xpose.msra.mxu1 %v10449_v19  ;;  %v3093_v19 = vmul.f32 1.442695, %v12182_v3  ;;  %v12202_v3 = vld [vmem:[#allocation71_spill] sm:$0xff] }
 0x3f8   : > { %8032 = vpow2.f32 %v3353_v11  ;;  %v3308_v34 = vsub.f32 %v12177_v59, %v3227_v23  ;;  %7553 = vmatmul.mubr.f32.gmra.mxu0 %v10379_v58  ;;  %7619 = vmatmul.mubr.f32.gmra.mxu1 %v12178_v49  ;;  %v3361_v58 = vmul.f32 1.442695, %v3309_v15  ;;  %v12195_v15 = vld [vmem:[#allocation54_spill] sm:$0xff]  ;;  %v12198_v59 = vld [vmem:[#allocation93_spill] sm:$0xff] }
 0x3f9   : > { %8034 = vpow2.f32 %v3355_v55  ;;  %7587 = vmatprep.mubr.f32.mxu0 %v12157_v46  ;;  %7621 = vmatprep.mubr.f32.mxu1 %v12183_v60  ;;  %v3062_v46 = vsub.f32 %v10392_v1, %v10413_v41  ;;  %v10639_v55 = vpop.eup %8022  ;;  %v3365_v41 = vmul.f32 1.442695, %v3311_v24 }
 0x3fa   : > { %8036 = vpow2.f32 %v3357_v61  ;;  %v3359_v14 = vmul.f32 1.442695, %v3308_v34  ;;  %5905 = vperm.xlu0 %7963, %v10622_v2   ;;  %5840 = vperm.xlu1 %7962, %v10615_v17   ;;  %12188 = vst [vmem:[#allocation51_spill] sm:$0xff] %v10639_v55  ;;  %v12189_v61 = vld [vmem:[#allocation68_spill] sm:$0xff]  ;;  %v10650_v21 = vpop.eup %8024 }
 0x3fb   : > { %8038 = vpow2.f32 %v3089_v33  ;;  %v3237_v44 = vpop.permute.xlu0 %3236  ;;  %7669 = vmatprep.subr.mxu1 %v4949_v22  ;;  %v12191_v11 = vsub.f32 %v12189_v61, %v12190_v25  ;;  %12194 = vst [vmem:[#allocation77_spill] sm:$0xff] %v10650_v21  ;;  %v10655_v8 = vpop.eup %8026  ;;  %v12210_v61 = vld [vmem:[#allocation97_spill] sm:$0xff] }
 0x3fc   : > { %8040 = vpow2.f32 %v3115_v62  ;;  %v3310_v36 = vsub.f32 %v12186_v20, %v3237_v44  ;;  %7588 = vmatmul.mubr.f32.vlgmr.msra.gmra.mxu0 %v12169_v12  ;;  %7622 = vmatmul.mubr.f32.gmra.mxu1 %v12187_v54  ;;  %v12193_v12 = vld [vmem:[#allocation57_spill] sm:$0xff]  ;;  %v12196_v62 = vld [vmem:[#allocation90_spill] sm:$0xff]  ;;  %12197 = vst [vmem:[#allocation79_spill] sm:$0xff] %v10655_v8  ;;  %v10661_v34 = vpop.eup %8028  ;;  %v12208_v20 = vld [vmem:[#allocation76_spill] sm:$0xff] }
 0x3fd   : > { %8042 = vpow2.f32 %v3093_v19  ;;  %v3097_v31 = vmul.f32 1.442695, %v12191_v11  ;;  %7590 = vmatprep.mubr.f32.mxu0 %v12171_v38  ;;  %7624 = vmatprep.mubr.f32.mxu1 %v12192_v35  ;;  %v3313_v4 = vsub.f32 %v12193_v12, %v3252_v30  ;;  %v3123_v38 = vmul.f32 1.442695, %v3062_v46  ;;  %12199 = vst [vmem:[#allocation102_spill] sm:$0xff] %v10661_v34  ;;  %v12207_v30 = vld [vmem:[#allocation73_spill] sm:$0xff] }
 0x3fe   : > { %8044 = vpow2.f32 %v3359_v14  ;;  %v3363_v1 = vmul.f32 1.442695, %v3310_v36  ;;  %5915 = vperm.xlu0 %7963, %v10639_v55   ;;  %5850 = vperm.xlu1 %7962, %v10632_v26   ;;  %v12203_v19 = vsub.f32 %v12201_v5, %v12202_v3  ;;  %v12204_v14 = vld [vmem:[#allocation41_spill] sm:$0xff]  ;;  %v12209_v36 = vsub.f32 %v12207_v30, %v12208_v20  ;;  %v12212_v11 = vld [vmem:[#allocation100_spill] sm:$0xff] }
 0x3ff   : > { %8046 = vpow2.f32 %v3361_v58  ;;  %v3247_v33 = vpop.permute.xlu0 %3246  ;;  %7670 = vmatpush3.xpose.msra.mxu1 %v4949_v22  ;;  %7640 = vmatpush3.xpose.msra.mxu0 %v10351_v10  ;;  %v3369_v0 = vmul.f32 1.442695, %v3313_v4  ;;  %v12221_v20 = vld [vmem:[#allocation81_spill] sm:$0xff] }
 0x400   : > { %8048 = vpow2.f32 %v3119_v50  ;;  %v3312_v23 = vsub.f32 %v12195_v15, %v3247_v33  ;;  %7591 = vmatmul.mubr.f32.gmra.mxu0 %v12178_v49  ;;  %7625 = vmatmul.mubr.f32.gmra.mxu1 %v12196_v62  ;;  %v12214_v33 = vld [vmem:[#allocation80_spill] sm:$0xff] }
 0x401   : > { %8050 = vpow2.f32 %v3097_v31  ;;  %7593 = vmatprep.mubr.f32.mxu0 %v12183_v60  ;;  %7627 = vmatprep.mubr.f32.mxu1 %v12198_v59  ;;  %v3101_v60 = vmul.f32 1.442695, %v12203_v19 }
 0x402   : > { %8052 = vpow2.f32 %v3363_v1  ;;  %v3367_v22 = vmul.f32 1.442695, %v3312_v23  ;;  %5925 = vperm.xlu0 %7963, %v10655_v8   ;;  %5860 = vperm.xlu1 %7962, %v10650_v21   ;;  %v10665_v49 = vpop.eup %8030 }
 0x403   : > { %8054 = vpow2.f32 %v3365_v41  ;;  %7641 = vmatprep.subr.mxu0 %v10518_v7  ;;  %7723 = vmatprep.subr.mxu1 %v10351_v10  ;;  %12200 = vst [vmem:[#allocation99_spill] sm:$0xff] %v10665_v49 }
 0x404   : > { %8056 = vpow2.f32 %v3123_v38  ;;  %7594 = vmatmul.mubr.f32.gmra.mxu0 %v12187_v54  ;;  %7628 = vmatmul.mubr.f32.gmra.mxu1 %v12204_v14  ;;  %v3105_v54 = vmul.f32 1.442695, %v12209_v36  ;;  %v12215_v38 = vld [vmem:[#allocation82_spill] sm:$0xff]  ;;  %v12222_v36 = vld [vmem:[#allocation83_spill] sm:$0xff] }
 0x405   : > { %v10672_v58 = vpop.eup %8032  ;;  %7596 = vmatprep.mubr.f32.mxu0 %v12192_v35  ;;  %7630 = vmatprep.mubr.f32.mxu1 %v12205_v47  ;;  %8058 = vpow2.f32 %v3367_v22  ;;  %v12216_v15 = vsub.f32 %v12214_v33, %v12215_v38  ;;  %v12219_v22 = vld [vmem:[#allocation105_spill] sm:$0xff]  ;;  %v12224_v38 = vld [vmem:[#allocation103_spill] sm:$0xff] }
 0x406   : > { %v10676_v24 = vpop.eup %8034  ;;  %5935 = vperm.xlu0 %7963, %v10665_v49   ;;  %5870 = vperm.xlu1 %7962, %v10661_v34   ;;  %8060 = vpow2.f32 %v3369_v0  ;;  %v10683_v50 = vand.u32 4294901760, %v10672_v58  ;;  %v3061_v49 = vsub.f32 %v10512_v43, %v10524_v52 }
 0x407   : > { %v10680_v44 = vpop.eup %8036  ;;  %7642 = vmatpush3.xpose.msra.mxu0 %v10518_v7  ;;  %8062 = vpow2.f32 %v3101_v60  ;;  %v10698_v31 = vand.u32 4294901760, %v10676_v24  ;;  %v3109_v23 = vmul.f32 1.442695, %v12216_v15 }
 0x408   : > { %v10686_v46 = vpop.eup %8038  ;;  %7597 = vmatmul.mubr.f32.gmra.mxu0 %v12196_v62  ;;  %7631 = vmatmul.mubr.f32.gmra.mxu1 %v12210_v61  ;;  %v10705_v1 = vand.u32 4294901760, %v10680_v44  ;;  %v10711_v12 = vsub.f32 %v10672_v58, %v10683_v50  ;;  %8064 = vpow2.f32 %v3105_v54  ;;  %v12217_v62 = vld [vmem:[#allocation37_spill] sm:$0xff]  ;;  %v12223_v54 = vsub.f32 %v12221_v20, %v12222_v36  ;;  %v12226_v20 = vld [vmem:[#allocation94_spill] sm:$0xff] }
 0x409   : > { %12206 = vst [vmem:[#allocation49_spill] sm:$0xff] %v10686_v46  ;;  %v10693_v25 = vpop.eup %8040  ;;  %7599 = vmatprep.mubr.f32.mxu0 %v12198_v59  ;;  %7633 = vmatprep.mubr.f32.mxu1 %v12212_v11  ;;  %v10727_v0 = vsub.f32 %v10676_v24, %v10698_v31  ;;  %8066 = vpow2.f32 %v3109_v23  ;;  %v3121_v52 = vmul.f32 1.442695, %v3061_v49 }
 0x40a   : > { %12211 = vst [vmem:[#allocation44_spill] sm:$0xff] %v10693_v25  ;;  %v10700_v35 = vpop.eup %8042  ;;  %5945 = vperm.xlu0 %7963, %v10693_v25   ;;  %5880 = vperm.xlu1 %7962, %v10686_v46   ;;  %v10738_v19 = vsub.f32 %v10680_v44, %v10705_v1  ;;  %v3113_v33 = vmul.f32 1.442695, %v12223_v54 }
 0x40b   : > { %12213 = vst [vmem:[#allocation85_spill] sm:$0xff] %v10700_v35  ;;  %v10707_v41 = vpop.eup %8044  ;;  %7695 = vmatprep.subr.mxu0 %v10382_v57  ;;  %v12230_v8 = vand.u32 4294901760, %v10727_v0 }
 0x40c   : > { %v10714_v4 = vpop.eup %8046  ;;  %7600 = vmatmul.mubr.f32.gmra.mxu0 %v12204_v14  ;;  %7634 = vmatmul.mubr.f32.gmra.mxu1 %v12217_v62  ;;  %v10734_v3 = vand.u32 4294901760, %v10707_v41  ;;  %v11896_v14 = vand.u32 4294901760, %v10711_v12  ;;  %8068 = vpow2.f32 %v3113_v33 }
 0x40d   : > { %v10721_v59 = vpop.eup %8048  ;;  %7602 = vmatprep.mubr.f32.mxu0 %v12205_v47  ;;  %7636 = vmatprep.mubr.f32.mxu1 %v12219_v22  ;;  %v10744_v47 = vand.u32 4294901760, %v10714_v4  ;;  %v4762_v33 = vsub.f32 %v10727_v0, %v12230_v8 }
 0x40e   : > { %12218 = vst [vmem:[#allocation60_spill] sm:$0xff] %v10721_v59  ;;  %v10729_v5 = vpop.eup %8050  ;;  %5955 = vperm.xlu0 %7963, %v10721_v59   ;;  %5890 = vperm.xlu1 %7962, %v10700_v35  }
 0x40f   : > { %12220 = vst [vmem:[#allocation61_spill] sm:$0xff] %v10729_v5  ;;  %v10740_v60 = vpop.eup %8052  ;;  %v10778_v39 = vsub.f32 %v10714_v4, %v10744_v47 }
 0x410   : > { %v10746_v30 = vpop.eup %8054  ;;  %7603 = vmatmul.mubr.f32.gmra.mxu0 %v12210_v61  ;;  %7637 = vmatmul.mubr.f32.gmra.mxu1 %v12224_v38  ;;  %v10761_v23 = vand.u32 4294901760, %v10740_v60  ;;  %v10766_v61 = vsub.f32 %v10707_v41, %v10734_v3 }
 0x411   : > { %v10753_v15 = vpop.eup %8056  ;;  %7605 = vmatprep.mubr.f32.mxu0 %v12212_v11  ;;  %7671 = vmatprep.mubr.f32.mxu1 %v10683_v50  ;;  %v4752_v11 = vsub.f32 %v10711_v12, %v11896_v14  ;;  %v10774_v54 = vand.u32 4294901760, %v10746_v30 }
 0x412   : > { %12225 = vst [vmem:[#allocation53_spill] sm:$0xff] %v10753_v15  ;;  %5965 = vperm.xlu0 %7963, %v10753_v15   ;;  %5900 = vperm.xlu1 %7962, %v10729_v5   ;;  %v10768_v36 = vpop.eup %8058  ;;  %v12227_v15 = vld [vmem:[#allocation95_spill] sm:$0xff]  ;;  %v12233_v8 = vand.u32 4294901760, %v10766_v61  ;;  %v12264_v5 = vld [vmem:[#allocation101_spill] sm:$0xff] }
 0x413   : > { %v10780_v51 = vpop.eup %8060  ;;  %v12228_v59 = vsub.f32 %v12226_v20, %v12227_v15  ;;  %v4753_v15 = vand.u32 4294901760, %v4752_v11  ;;  %v4763_v11 = vand.u32 4294901760, %v4762_v33 }
 0x414   : > { %7606 = vmatmul.mubr.f32.gmra.mxu0 %v12217_v62  ;;  %7672 = vmatmul.mubr.f32.vlgmr.msra.gmra.mxu1 %v10698_v31  ;;  %v10789_v14 = vpop.eup %8062  ;;  %v10802_v62 = vand.u32 4294901760, %v10768_v36  ;;  %v10811_v20 = vand.u32 4294901760, %v10780_v51  ;;  %v4782_v2 = vsub.f32 %v10766_v61, %v12233_v8 }
 0x415   : > { %v3117_v25 = vmul.f32 1.442695, %v12228_v59  ;;  %12229 = vst [vmem:[#allocation50_spill] sm:$0xff] %v10789_v14  ;;  %7608 = vmatprep.mubr.f32.mxu0 %v12219_v22  ;;  %7674 = vmatprep.mubr.f32.mxu1 %v10705_v1  ;;  %v12231_v59 = vand.u32 4294901760, %v10738_v19  ;;  %v10806_v22 = vsub.f32 %v10740_v60, %v10761_v23  ;;  %v10820_v55 = vpop.eup %8064 }
 0x416   : > { %5910 = vperm.xlu1 %7962, %v10789_v14   ;;  %7724 = vmatpush3.xpose.msra.mxu1 %v10351_v10  ;;  %12232 = vst [vmem:[#allocation48_spill] sm:$0xff] %v10820_v55  ;;  %v10830_v49 = vsub.f32 %v10768_v36, %v10802_v62  ;;  %v10839_v33 = vsub.f32 %v10780_v51, %v10811_v20  ;;  %v10843_v8 = vpop.eup %8066 }
 0x417   : > { %v4772_v43 = vsub.f32 %v10738_v19, %v12231_v59  ;;  %v10815_v59 = vsub.f32 %v10746_v30, %v10774_v54  ;;  %7725 = vmatprep.subr.mxu1 %v10518_v7  ;;  %8070 = vpow2.f32 %v3117_v25  ;;  %v11903_v40 = vand.u32 4294901760, %v10806_v22  ;;  %12235 = vst [vmem:[#allocation62_spill] sm:$0xff] %v10843_v8 }
 0x418   : > { %7609 = vmatmul.mubr.f32.gmra.mxu0 %v12224_v38  ;;  %7675 = vmatmul.mubr.f32.gmra.mxu1 %v10734_v3  ;;  %v12234_v38 = vand.u32 4294901760, %v10778_v39  ;;  %8072 = vpow2.f32 %v3121_v52  ;;  %v11906_v48 = vand.u32 4294901760, %v10830_v49 }
 0x419   : > { %7643 = vmatprep.mubr.f32.mxu0 %v4753_v15  ;;  %7677 = vmatprep.mubr.f32.mxu1 %v10744_v47  ;;  %v4773_v25 = vand.u32 4294901760, %v4772_v43  ;;  %v4783_v43 = vand.u32 4294901760, %v4782_v2  ;;  %v10858_v2 = vpop.eup %8068 }
 0x41a   : > { %5920 = vperm.xlu1 %7962, %v10820_v55   ;;  %7726 = vmatpush3.xpose.msra.mxu1 %v10518_v7  ;;  %v4792_v15 = vsub.f32 %v10778_v39, %v12234_v38  ;;  %v4802_v38 = vsub.f32 %v10806_v22, %v11903_v40  ;;  %12237 = vst [vmem:[#allocation63_spill] sm:$0xff] %v10858_v2 }
 0x41b   : > { %7779 = vmatprep.subr.mxu1 %v10351_v10 }
 0x41c   : > { %7644 = vmatmul.mubr.f32.vlgmr.msra.gmra.mxu0 %v4763_v11  ;;  %7678 = vmatmul.mubr.f32.gmra.mxu1 %v10761_v23  ;;  %v4793_v52 = vand.u32 4294901760, %v4792_v15  ;;  %v12236_v11 = vand.u32 4294901760, %v10815_v59  ;;  %v4822_v15 = vsub.f32 %v10830_v49, %v11906_v48  ;;  %v12242_v48 = vld [vmem:[#allocation64_spill] sm:$0xff] }
 0x41d   : > { %7646 = vmatprep.mubr.f32.mxu0 %v4773_v25  ;;  %7680 = vmatprep.mubr.f32.mxu1 %v10774_v54  ;;  %v11905_v25 = vand.u32 4294901760, %v10839_v33 }
 0x41e   : > { %5930 = vperm.xlu1 %7962, %v10843_v8   ;;  %7696 = vmatpush3.xpose.msra.mxu0 %v10382_v57  ;;  %v4812_v16 = vsub.f32 %v10815_v59, %v12236_v11  ;;  %v4803_v57 = vand.u32 4294901760, %v4802_v38  ;;  %v4823_v38 = vand.u32 4294901760, %v4822_v15  ;;  %v12244_v8 = vld [vmem:[#allocation91_spill] sm:$0xff]  ;;  %v12245_v15 = vld [vmem:[#allocation40_spill] sm:$0xff] }
 0x41f   : > { %7697 = vmatprep.subr.mxu0 %v10544_v56 }
 0x420   : > { %7647 = vmatmul.mubr.f32.gmra.mxu0 %v4783_v43  ;;  %7681 = vmatmul.mubr.f32.gmra.mxu1 %v10802_v62  ;;  %v4813_v11 = vand.u32 4294901760, %v4812_v16  ;;  %v4832_v43 = vsub.f32 %v10839_v33, %v11905_v25  ;;  %v12241_v16 = vld [vmem:[#allocation47_spill] sm:$0xff]  ;;  %v3262_v25 = vpop.permute.xlu1 %3261 }
 0x421   : > { %7649 = vmatprep.mubr.f32.mxu0 %v4793_v52  ;;  %7683 = vmatprep.mubr.f32.mxu1 %v10811_v20 }
 0x422   : > { %5940 = vperm.xlu1 %7962, %v10858_v2   ;;  %7698 = vmatpush3.xpose.msra.mxu0 %v10544_v56  ;;  %v4833_v40 = vand.u32 4294901760, %v4832_v43  ;;  %v12240_v56 = vld [vmem:[#allocation43_spill] sm:$0xff] }
 0x423   : > { %7751 = vmatprep.subr.mxu0 %v10407_v32  ;;  %v12246_v43 = vld [vmem:[#allocation35_spill] sm:$0xff] }
 0x424   : > { %7650 = vmatmul.mubr.f32.gmra.mxu0 %v4803_v57  ;;  %v10870_v52 = vpop.eup %8070  ;;  %v3315_v57 = vsub.f32 %v12242_v48, %v3262_v25 }
 0x425   : > { %12238 = vst [vmem:[#allocation88_spill] sm:$0xff] %v10870_v52  ;;  %7652 = vmatprep.mubr.f32.mxu0 %v4813_v11  ;;  %v10873_v2 = vpop.eup %8072 }
 0x426   : > { %5950 = vperm.xlu1 %7962, %v10870_v52   ;;  %12239 = vst [vmem:[#allocation56_spill] sm:$0xff] %v10873_v2  ;;  %v3373_v11 = vmul.f32 1.442695, %v3315_v57 }
 0x428   : > { %7653 = vmatmul.mubr.f32.gmra.mxu0 %v4823_v38  ;;  %8074 = vpow2.f32 %v3373_v11  ;;  %v12247_v38 = vld [vmem:[#allocation55_spill] sm:$0xff] }
 0x429   : > { %7655 = vmatprep.mubr.f32.mxu0 %v4833_v40 }
 0x42a   : > { %5960 = vperm.xlu1 %7962, %v10873_v2  }
 0x431   : > { %3451 = vadd.xlane.f32.xlu0 %v12240_v56  ;;  %v12248_v56 = vld [vmem:[#allocation98_spill] sm:$0xff] }
 0x435   : > { %3453 = vadd.xlane.f32.xlu0 %v12241_v16  ;;  %v8075_v57 = vpop.eup %8074 }
 0x436   : > { %v10889_v11 = vand.u32 4294901760, %v8075_v57 }
 0x439   : > { %3457 = vadd.xlane.f32.xlu0 %v12243_v18  ;;  %v12250_v18 = vld [vmem:[#allocation104_spill] sm:$0xff] }
 0x43d   : > { %3461 = vadd.xlane.f32.xlu0 %v12244_v8  ;;  %v12251_v8 = vld [vmem:[#allocation45_spill] sm:$0xff] }
 0x441   : > { %3465 = vadd.xlane.f32.xlu0 %v12245_v15  ;;  %v12252_v15 = vld [vmem:[#allocation46_spill] sm:$0xff] }
 0x445   : > { %3469 = vadd.xlane.f32.xlu0 %v12246_v43  ;;  %v3257_v40 = vpop.permute.xlu0 %3256 }
 0x446   : > { %v3314_v2 = vsub.f32 %v12247_v38, %v3257_v40  ;;  %v12254_v38 = vld [vmem:[#allocation66_spill] sm:$0xff] }
 0x448   : > { %v3371_v52 = vmul.f32 1.442695, %v3314_v2 }
 0x449   : > { %3473 = vadd.xlane.f32.xlu0 %v12248_v56  ;;  %v3267_v16 = vpop.permute.xlu0 %3266 }
 0x44a   : > { %8076 = vpow2.f32 %v3371_v52  ;;  %v3316_v48 = vsub.f32 %v12249_v28, %v3267_v16  ;;  %v10894_v52 = vsub.f32 %v8075_v57, %v10889_v11  ;;  %v12253_v28 = vld [vmem:[#allocation38_spill] sm:$0xff] }
 0x44c   : > { %v3375_v25 = vmul.f32 1.442695, %v3316_v48  ;;  %v12255_v48 = vld [vmem:[#allocation89_spill] sm:$0xff]  ;;  %v10940_v37 = vpop.f32.mrf.mxu1 }
 0x44d   : > { %3477 = vadd.xlane.f32.xlu0 %v12250_v18  ;;  %v3277_v2 = vpop.permute.xlu0 %3276 }
 0x44e   : > { %8078 = vpow2.f32 %v3375_v25  ;;  %3449 = vadd.xlane.f32.xlu1 %v12251_v8  ;;  %v3318_v56 = vsub.f32 %v12254_v38, %v3277_v2  ;;  %v12257_v38 = vld [vmem:[#allocation36_spill] sm:$0xff] }
 0x450   : > { %v3379_v8 = vmul.f32 1.442695, %v3318_v56 }
 0x451   : > { %3481 = vadd.xlane.f32.xlu0 %v10672_v58  ;;  %v11913_v58 = vand.u32 4294901760, %v10894_v52  ;;  %v3287_v16 = vpop.permute.xlu0 %3286 }
 0x452   : > { %3455 = vadd.xlane.f32.xlu1 %v12252_v15  ;;  %v12256_v15 = vld [vmem:[#allocation67_spill] sm:$0xff]  ;;  %8080 = vpow2.f32 %v3379_v8  ;;  %v12260_v8 = vld [vmem:[#allocation74_spill] sm:$0xff] }
 0x453   : > { %v3320_v2 = vsub.f32 %v12256_v15, %v3287_v16 }
 0x455   : > { %3485 = vadd.xlane.f32.xlu0 %v10680_v44 }
 0x456   : > { %3459 = vadd.xlane.f32.xlu1 %v12253_v28  ;;  %v4852_v28 = vsub.f32 %v10894_v52, %v11913_v58  ;;  %v12258_v58 = vld [vmem:[#allocation96_spill] sm:$0xff] }
 0x457   : > { %v10897_v43 = vpop.eup %8076 }
 0x458   : > { %v10900_v40 = vand.u32 4294901760, %v10897_v43  ;;  %v4853_v15 = vand.u32 4294901760, %v4852_v28 }
 0x459   : > { %3489 = vadd.xlane.f32.xlu0 %v10714_v4 }
 0x45a   : > { %3463 = vadd.xlane.f32.xlu1 %v12255_v48  ;;  %7684 = vmatmul.mubr.f32.gmra.mxu1 %v10900_v40  ;;  %v10909_v44 = vsub.f32 %v10897_v43, %v10900_v40 }
 0x45b   : > { %v10911_v25 = vpop.eup %8078  ;;  %7686 = vmatprep.mubr.f32.mxu1 %v10889_v11 }
 0x45c   : > { %v10915_v18 = vand.u32 4294901760, %v10911_v25  ;;  %v11914_v4 = vand.u32 4294901760, %v10909_v44 }
 0x45d   : > { %3493 = vadd.xlane.f32.xlu0 %v10746_v30  ;;  %v3383_v30 = vmul.f32 1.442695, %v3320_v2 }
 0x45e   : > { %3467 = vadd.xlane.f32.xlu1 %v12257_v38  ;;  %7687 = vmatmul.mubr.f32.gmra.mxu1 %v10915_v18  ;;  %v4842_v48 = vsub.f32 %v10909_v44, %v11914_v4  ;;  %v10930_v55 = vsub.f32 %v10911_v25, %v10915_v18  ;;  %v10938_v4 = vpop.permute.xlu0 %5820 }
 0x45f   : > { %12259 = vst [vmem:[#allocation52_spill] sm:$0xff] %v10938_v4  ;;  %8082 = vpow2.f32 %v3383_v30 }
 0x460   : > { %v4843_v56 = vand.u32 4294901760, %v4842_v48  ;;  %v11917_v16 = vand.u32 4294901760, %v10930_v55 }
 0x461   : > { %3497 = vadd.xlane.f32.xlu0 %v10780_v51  ;;  %v12261_v51 = vld [vmem:[#allocation34_spill] sm:$0xff] }
 0x462   : > { %3471 = vadd.xlane.f32.xlu1 %v12258_v58  ;;  %7656 = vmatmul.mubr.f32.gmra.mxu0 %v4843_v56  ;;  %v4862_v38 = vsub.f32 %v10930_v55, %v11917_v16  ;;  %v10944_v58 = vpop.f32.mrf.mxu1  ;;  %v10946_v56 = vpop.permute.xlu0 %5835 }
 0x463   : > { %7658 = vmatprep.mubr.f32.mxu0 %v4853_v15  ;;  %12262 = vst [vmem:[#allocation86_spill] sm:$0xff] %v10946_v56 }
 0x464   : > { %v4863_v48 = vand.u32 4294901760, %v4862_v38  ;;  %v10950_v38 = vpop.f32.mrf.mxu0 }
 0x465   : > { %v3272_v14 = vpop.permute.xlu1 %3271  ;;  %3501 = vadd.xlane.f32.xlu0 %v8075_v57  ;;  %v10952_v57 = vpop.f32.mrf.mxu1 }
 0x466   : > { %v3317_v2 = vsub.f32 %v12260_v8, %v3272_v14  ;;  %3475 = vadd.xlane.f32.xlu1 %v12261_v51  ;;  %7659 = vmatmul.mubr.f32.gmra.mxu0 %v4863_v48  ;;  %v10954_v14 = vpop.eup %8080  ;;  %v10957_v48 = vpop.permute.xlu0 %5845 }
 0x467   : > { %12265 = vst [vmem:[#allocation68_spill] sm:$0xff] %v10957_v48  ;;  %v10959_v8 = vpop.f32.mrf.mxu0 }
 0x468   : > { %v3377_v28 = vmul.f32 1.442695, %v3317_v2  ;;  %v10961_v2 = vpop.f32.mrf.mxu1 }
 0x469   : > { %v3282_v16 = vpop.permute.xlu1 %3281  ;;  %v10971_v51 = vpop.f32.mrf.mxu0 }
 0x46a   : > { %8084 = vpow2.f32 %v3377_v28  ;;  %v3319_v15 = vsub.f32 %v12263_v6, %v3282_v16  ;;  %3479 = vadd.xlane.f32.xlu1 %v12264_v5  ;;  %v10964_v6 = vand.u32 4294901760, %v10954_v14  ;;  %v10969_v16 = vpop.f32.mrf.mxu1  ;;  %v10973_v28 = vpop.permute.xlu0 %5855 }
 0x46b   : > { %12267 = vst [vmem:[#allocation92_spill] sm:$0xff] %v10973_v28  ;;  %v10985_v35 = vpop.f32.mrf.mxu0 }
 0x46c   : > { %v3381_v30 = vmul.f32 1.442695, %v3319_v15  ;;  %12266 = vst [vmem:[#allocation69_spill] sm:$0xff] %v10964_v6  ;;  %v10966_v5 = vpop.eup %8082  ;;  %v10980_v15 = vsub.f32 %v10954_v14, %v10964_v6  ;;  %v10983_v42 = vpop.f32.mrf.mxu1 }
 0x46d   : > { %12269 = vst [vmem:[#allocation54_spill] sm:$0xff] %v10983_v42  ;;  %v10996_v28 = vpop.f32.mrf.mxu0 }
 0x46e   : > { %8086 = vpow2.f32 %v3381_v30  ;;  %3483 = vadd.xlane.f32.xlu1 %v10676_v24  ;;  %v10976_v24 = vand.u32 4294901760, %v10966_v5  ;;  %v10989_v46 = vpop.f32.mrf.mxu1  ;;  %v11003_v48 = vpop.permute.xlu0 %5865 }
 0x46f   : > { %12270 = vst [vmem:[#allocation90_spill] sm:$0xff] %v10989_v46  ;;  %12271 = vst [vmem:[#allocation93_spill] sm:$0xff] %v11003_v48  ;;  %v12274_v46 = vand.u32 4294901760, %v10980_v15 }
 0x470   : > { %12268 = vst [vmem:[#allocation57_spill] sm:$0xff] %v10976_v24  ;;  %v10994_v21 = vsub.f32 %v10966_v5, %v10976_v24  ;;  %v11009_v56 = vpop.f32.mrf.mxu1 }
 0x471   : > { %12273 = vst [vmem:[#allocation71_spill] sm:$0xff] %v11009_v56  ;;  %v11025_v56 = vpop.permute.xlu1 %5825 }
 0x472   : > { %3487 = vadd.xlane.f32.xlu1 %v10707_v41  ;;  %12276 = vst [vmem:[#allocation39_spill] sm:$0xff] %v11025_v56 }
 0x476   : > { %3491 = vadd.xlane.f32.xlu1 %v10740_v60 }
 0x477   : > { %v8085_v30 = vpop.eup %8084 }
 0x478   : > { %3505 = vadd.xlane.f32.xlu0 %v8085_v30  ;;  %v10987_v41 = vand.u32 4294901760, %v8085_v30 }
 0x47a   : > { %3495 = vadd.xlane.f32.xlu1 %v10768_v36  ;;  %7689 = vmatprep.mubr.f32.mxu1 %v10987_v41  ;;  %v11001_v60 = vsub.f32 %v8085_v30, %v10987_v41  ;;  %v4882_v36 = vsub.f32 %v10980_v15, %v12274_v46  ;;  %v11015_v30 = vpop.f32.mrf.mxu0  ;;  %v12278_v46 = vsub.f32 %v10418_v9, %v10436_v29 }
 0x47b   : > { %v8087_v26 = vpop.eup %8086  ;;  %7690 = vmatmul.mubr.f32.gmra.mxu1 %v10964_v6  ;;  %12275 = vst [vmem:[#allocation41_spill] sm:$0xff] %v11015_v30  ;;  %v12279_v30 = vand.u32 4294901760, %v10711_v12 }
 0x47c   : > { %3509 = vadd.xlane.f32.xlu0 %v8087_v26  ;;  %v11006_v34 = vand.u32 4294901760, %v8087_v26  ;;  %v11930_v17 = vand.u32 4294901760, %v11001_v60  ;;  %v3127_v45 = vmul.f32 1.442695, %v12278_v46  ;;  %v4883_v56 = vand.u32 4294901760, %v4882_v36 }
 0x47d   : > { %v12283_v36 = vand.u32 4294901760, %v10738_v19 }
 0x47e   : > { %12272 = vst [vmem:[#allocation70_spill] sm:$0xff] %v11006_v34  ;;  %3499 = vadd.xlane.f32.xlu1 %v10897_v43  ;;  %7692 = vmatprep.mubr.f32.mxu1 %v11006_v34  ;;  %v4872_v48 = vsub.f32 %v11001_v60, %v11930_v17  ;;  %v11023_v42 = vsub.f32 %v8087_v26, %v11006_v34  ;;  %v11033_v43 = vpop.f32.mrf.mxu0  ;;  %v11038_v26 = vpop.permute.xlu0 %5875  ;;  %8088 = vpow2.f32 %v3127_v45 }
 0x47f   : > { %v11027_v4 = vpop.f32.mrf.mxu1  ;;  %7693 = vmatmul.mubr.f32.gmra.mxu1 %v10976_v24  ;;  %12280 = vst [vmem:[#allocation76_spill] sm:$0xff] %v11038_v26 }
 0x480   : > { %12277 = vst [vmem:[#allocation73_spill] sm:$0xff] %v11027_v4  ;;  %7727 = vmatprep.mubr.f32.mxu1 %v12279_v30  ;;  %v4873_v6 = vand.u32 4294901760, %v4872_v48  ;;  %v11935_v17 = vand.u32 4294901760, %v11023_v42  ;;  %v12281_v4 = vand.u32 4294901760, %v10994_v21  ;;  %v12282_v48 = vand.u32 4294901760, %v10727_v0 }
 0x481   : > { %v11040_v34 = vpop.f32.mrf.mxu1 }
 0x482   : > { %v4902_v24 = vsub.f32 %v10994_v21, %v12281_v4  ;;  %3503 = vadd.xlane.f32.xlu1 %v10911_v25  ;;  %7661 = vmatprep.mubr.f32.mxu0 %v4873_v6  ;;  %v4892_v29 = vsub.f32 %v11023_v42, %v11935_v17  ;;  %v11056_v4 = vpop.f32.mrf.mxu0  ;;  %v11058_v25 = vpop.permute.xlu1 %5830 }
 0x483   : > { %v11049_v9 = vpop.f32.mrf.mxu1  ;;  %7662 = vmatmul.mubr.f32.gmra.mxu0 %v4883_v56  ;;  %7728 = vmatmul.mubr.f32.vlgmr.msra.gmra.mxu1 %v12282_v48  ;;  %v11064_v56 = vpop.permute.xlu0 %5885 }
 0x484   : > { %7730 = vmatprep.mubr.f32.mxu1 %v12283_v36  ;;  %v4893_v30 = vand.u32 4294901760, %v4892_v29  ;;  %7780 = vmatpush3.xpose.msra.mxu1 %v10351_v10  ;;  %v4903_v6 = vand.u32 4294901760, %v4902_v24  ;;  %12284 = vst [vmem:[#allocation97_spill] sm:$0xff] %v11064_v56  ;;  %v12285_v29 = vand.u32 4294901760, %v10766_v61  ;;  %v12286_v10 = vand.u32 4294901760, %v10778_v39 }
 0x485   : > { %7781 = vmatprep.subr.mxu1 %v10518_v7  ;;  %v11061_v46 = vpop.f32.mrf.mxu1  ;;  %v12287_v24 = vsub.f32 %v10534_v27, %v10550_v53  ;;  %v12289_v27 = vand.u32 4294901760, %v10815_v59 }
 0x486   : > { %3507 = vadd.xlane.f32.xlu1 %v10954_v14  ;;  %7664 = vmatprep.mubr.f32.mxu0 %v4893_v30  ;;  %v11082_v30 = vpop.permute.xlu1 %5840 }
 0x487   : > { %v11066_v45 = vpop.f32.mrf.mxu0  ;;  %7665 = vmatmul.mubr.f32.gmra.mxu0 %v4903_v6  ;;  %7731 = vmatmul.mubr.f32.gmra.mxu1 %v12285_v29  ;;  %v3125_v48 = vmul.f32 1.442695, %v12287_v24  ;;  %v12294_v29 = vand.u32 4294901760, %v10839_v33 }
 0x488   : > { %7699 = vmatprep.mubr.f32.mxu0 %v10711_v12  ;;  %7733 = vmatprep.mubr.f32.mxu1 %v12286_v10  ;;  %v11079_v14 = vpop.f32.mrf.mxu1  ;;  %v12288_v12 = vand.u32 4294901760, %v10806_v22 }
 0x489   : > { %v11076_v36 = vpop.f32.mrf.mxu0  ;;  %7782 = vmatpush3.xpose.msra.mxu1 %v10518_v7  ;;  %8090 = vpow2.f32 %v3125_v48  ;;  %v11092_v7 = vpop.permute.xlu0 %5895 }
 0x48a   : > { %3511 = vadd.xlane.f32.xlu1 %v10966_v5  ;;  %12290 = vst [vmem:[#allocation100_spill] sm:$0xff] %v11092_v7  ;;  %v11095_v53 = vpop.f32.mrf.mxu1 }
 0x48b   : > { %v11084_v6 = vpop.f32.mrf.mxu0  ;;  %7700 = vmatmul.mubr.f32.vlgmr.msra.gmra.mxu0 %v10727_v0  ;;  %7734 = vmatmul.mubr.f32.gmra.mxu1 %v12288_v12  ;;  %12291 = vst [vmem:[#allocation80_spill] sm:$0xff] %v11095_v53  ;;  %v12292_v0 = vand.u32 4294901760, %v10830_v49  ;;  %v11108_v10 = vpop.eup %8088 }
 0x48c   : > { %7702 = vmatprep.mubr.f32.mxu0 %v10738_v19  ;;  %7736 = vmatprep.mubr.f32.mxu1 %v12289_v27  ;;  %12295 = vst [vmem:[#allocation37_spill] sm:$0xff] %v11108_v10  ;;  %v12299_v27 = vand.u32 4294901760, %v10894_v52 }
 0x48d   : > { %7752 = vmatpush3.xpose.msra.mxu0 %v10407_v32  ;;  %v11097_v5 = vpop.f32.mrf.mxu0  ;;  %v11110_v32 = vpop.permute.xlu1 %5850 }
 0x48e   : > { %7753 = vmatprep.subr.mxu0 %v10570_v13 }
 0x48f   : > { %7703 = vmatmul.mubr.f32.gmra.mxu0 %v10766_v61  ;;  %7737 = vmatmul.mubr.f32.gmra.mxu1 %v12292_v0  ;;  %v11118_v61 = vpop.permute.xlu0 %5905 }
 0x490   : > { %v11103_v19 = vpop.f32.mrf.mxu1  ;;  %7705 = vmatprep.mubr.f32.mxu0 %v10778_v39  ;;  %7739 = vmatprep.mubr.f32.mxu1 %v12294_v29  ;;  %v11113_v24 = vpop.f32.mrf.mxu0  ;;  %12297 = vst [vmem:[#allocation81_spill] sm:$0xff] %v11118_v61  ;;  %v12298_v39 = vand.u32 4294901760, %v10909_v44 }
 0x491   : > { %12293 = vst [vmem:[#allocation82_spill] sm:$0xff] %v11103_v19  ;;  %7754 = vmatpush3.xpose.msra.mxu0 %v10570_v13  ;;  %v11132_v29 = vpop.permute.xlu1 %5860 }
 0x492   : > { %v11115_v48 = vpop.f32.mrf.mxu1  ;;  %5975 = vperm.xlu0 %7963, %v11108_v10   ;;  %v11128_v13 = vpop.f32.mrf.mxu0  ;;  %12301 = vst [vmem:[#allocation103_spill] sm:$0xff] %v11132_v29 }
 0x493   : > { %12296 = vst [vmem:[#allocation105_spill] sm:$0xff] %v11115_v48  ;;  %7706 = vmatmul.mubr.f32.gmra.mxu0 %v10806_v22  ;;  %7740 = vmatmul.mubr.f32.gmra.mxu1 %v12298_v39  ;;  %12300 = vst [vmem:[#allocation83_spill] sm:$0xff] %v11128_v13  ;;  %v12302_v22 = vand.u32 4294901760, %v10930_v55 }
 0x494   : > { %v11123_v12 = vpop.f32.mrf.mxu1  ;;  %7708 = vmatprep.mubr.f32.mxu0 %v10815_v59  ;;  %7742 = vmatprep.mubr.f32.mxu1 %v12299_v27  ;;  %v12304_v59 = vand.u32 4294901760, %v11001_v60  ;;  %v11144_v27 = vpop.permute.xlu0 %5915 }
 0x495   : > { %12305 = vst [vmem:[#allocation95_spill] sm:$0xff] %v11144_v27  ;;  %v12310_v27 = vand.u32 4294901760, %v11023_v42 }
 0x496   : > { %v11130_v0 = vpop.f32.mrf.mxu1  ;;  %v11146_v61 = vpop.eup %8090 }
 0x497   : > { %7709 = vmatmul.mubr.f32.gmra.mxu0 %v10830_v49  ;;  %7743 = vmatmul.mubr.f32.gmra.mxu1 %v12302_v22  ;;  %12306 = vst [vmem:[#allocation43_spill] sm:$0xff] %v11146_v61  ;;  %v12308_v49 = vand.u32 4294901760, %v10980_v15 }
 0x498   : > { %v11137_v17 = vpop.f32.mrf.mxu0  ;;  %v11139_v39 = vpop.f32.mrf.mxu1  ;;  %7711 = vmatprep.mubr.f32.mxu0 %v10839_v33  ;;  %7745 = vmatprep.mubr.f32.mxu1 %v12304_v59 }
 0x499   : > { %12303 = vst [vmem:[#allocation94_spill] sm:$0xff] %v11137_v17  ;;  %v11161_v59 = vpop.permute.xlu1 %5870 }
 0x49a   : > { %v11148_v10 = vpop.f32.mrf.mxu0  ;;  %v11150_v7 = vpop.f32.mrf.mxu1  ;;  %12309 = vst [vmem:[#allocation64_spill] sm:$0xff] %v11161_v59 }
 0x49b   : > { %12307 = vst [vmem:[#allocation47_spill] sm:$0xff] %v11148_v10  ;;  %5970 = vperm.xlu1 %7962, %v11146_v61   ;;  %7712 = vmatmul.mubr.f32.gmra.mxu0 %v10909_v44  ;;  %v11169_v61 = vpop.permute.xlu0 %5925  ;;  %v12312_v44 = vand.u32 4294901760, %v10994_v21 }
 0x49c   : > { %7746 = vmatmul.mubr.f32.gmra.mxu1 %v12308_v49  ;;  %v11156_v22 = vpop.f32.mrf.mxu0  ;;  %v11158_v33 = vpop.f32.mrf.mxu1  ;;  %7714 = vmatprep.mubr.f32.mxu0 %v10894_v52  ;;  %12311 = vst [vmem:[#allocation87_spill] sm:$0xff] %v11169_v61 }
 0x49d   : > { %7748 = vmatprep.mubr.f32.mxu1 %v12310_v27  ;;  %v11184_v59 = vpop.permute.xlu1 %5880 }
 0x49e   : > { %v11165_v56 = vpop.f32.mrf.mxu0  ;;  %v11167_v48 = vpop.f32.mrf.mxu1  ;;  %12313 = vst [vmem:[#allocation91_spill] sm:$0xff] %v11184_v59 }
 0x49f   : > { %7715 = vmatmul.mubr.f32.gmra.mxu0 %v10930_v55  ;;  %v11193_v61 = vpop.permute.xlu0 %5935 }
 0x4a0   : > { %7749 = vmatmul.mubr.f32.gmra.mxu1 %v12312_v44  ;;  %v11174_v49 = vpop.f32.mrf.mxu0  ;;  %v11176_v10 = vpop.f32.mrf.mxu1  ;;  %7717 = vmatprep.mubr.f32.mxu0 %v11001_v60  ;;  %12314 = vst [vmem:[#allocation40_spill] sm:$0xff] %v11193_v61 }
 0x4a1   : > { %7783 = vmatprep.mubr.f32.mxu1 %v10683_v50  ;;  %v11207_v19 = vpop.permute.xlu1 %5890 }
 0x4a2   : > { %v11180_v52 = vpop.f32.mrf.mxu0  ;;  %v11182_v27 = vpop.f32.mrf.mxu1  ;;  %12316 = vst [vmem:[#allocation55_spill] sm:$0xff] %v11207_v19 }
 0x4a3   : > { %7718 = vmatmul.mubr.f32.gmra.mxu0 %v10980_v15  ;;  %v11214_v17 = vpop.permute.xlu0 %5945 }
 0x4a4   : > { %7784 = vmatmul.mubr.f32.vlgmr.msra.gmra.mxu1 %v10698_v31  ;;  %v11188_v55 = vpop.f32.mrf.mxu0  ;;  %v11190_v44 = vpop.f32.mrf.mxu1  ;;  %7720 = vmatprep.mubr.f32.mxu0 %v11023_v42  ;;  %12318 = vst [vmem:[#allocation65_spill] sm:$0xff] %v11214_v17 }
 0x4a5   : > { %7786 = vmatprep.mubr.f32.mxu1 %v10705_v1 }
 0x4a6   : > { %v11196_v60 = vpop.f32.mrf.mxu0  ;;  %v11198_v26 = vpop.f32.mrf.mxu1 }
 0x4a7   : > { %7721 = vmatmul.mubr.f32.gmra.mxu0 %v10994_v21 }
 0x4a8   : > { %7787 = vmatmul.mubr.f32.gmra.mxu1 %v10734_v3  ;;  %v11202_v15 = vpop.f32.mrf.mxu0  ;;  %v11204_v59 = vpop.f32.mrf.mxu1  ;;  %7755 = vmatprep.mubr.f32.mxu0 %v10683_v50 }
 0x4a9   : > { %12315 = vst [vmem:[#allocation35_spill] sm:$0xff] %v11204_v59  ;;  %7789 = vmatprep.mubr.f32.mxu1 %v10744_v47  ;;  %v11228_v59 = vpop.permute.xlu1 %5900 }
 0x4aa   : > { %v11210_v42 = vpop.f32.mrf.mxu0  ;;  %v11212_v61 = vpop.f32.mrf.mxu1  ;;  %12321 = vst [vmem:[#allocation46_spill] sm:$0xff] %v11228_v59 }
 0x4ab   : > { %12317 = vst [vmem:[#allocation98_spill] sm:$0xff] %v11212_v61  ;;  %7756 = vmatmul.mubr.f32.vlgmr.msra.gmra.mxu0 %v10698_v31 }
 0x4ac   : > { %7790 = vmatmul.mubr.f32.gmra.mxu1 %v10761_v23  ;;  %v11218_v21 = vpop.f32.mrf.mxu0  ;;  %v11220_v29 = vpop.f32.mrf.mxu1  ;;  %7758 = vmatprep.mubr.f32.mxu0 %v10705_v1 }
 0x4ad   : > { %12319 = vst [vmem:[#allocation104_spill] sm:$0xff] %v11220_v29  ;;  %7792 = vmatprep.mubr.f32.mxu1 %v10774_v54  ;;  %v11237_v29 = vpop.permute.xlu0 %5955 }
 0x4ae   : > { %v11224_v50 = vpop.f32.mrf.mxu0  ;;  %v11226_v19 = vpop.f32.mrf.mxu1  ;;  %12323 = vst [vmem:[#allocation66_spill] sm:$0xff] %v11237_v29 }
 0x4af   : > { %12320 = vst [vmem:[#allocation45_spill] sm:$0xff] %v11226_v19  ;;  %7759 = vmatmul.mubr.f32.gmra.mxu0 %v10734_v3 }
 0x4b0   : > { %7793 = vmatmul.mubr.f32.gmra.mxu1 %v10802_v62  ;;  %v11232_v31 = vpop.f32.mrf.mxu0  ;;  %v11234_v17 = vpop.f32.mrf.mxu1  ;;  %7761 = vmatprep.mubr.f32.mxu0 %v10744_v47  ;;  %v3889_v47 = vadd.f32 %v10940_v37, %v10950_v38 }
 0x4b1   : > { %12322 = vst [vmem:[#allocation38_spill] sm:$0xff] %v11234_v17  ;;  %7795 = vmatprep.mubr.f32.mxu1 %v10811_v20  ;;  %v11251_v17 = vpop.permute.xlu1 %5910 }
 0x4b2   : > { %v11240_v1 = vpop.f32.mrf.mxu0  ;;  %v11242_v61 = vpop.f32.mrf.mxu1  ;;  %12327 = vst [vmem:[#allocation96_spill] sm:$0xff] %v11251_v17  ;;  %v3901_v17 = vadd.f32 %v10952_v57, %v10971_v51  ;;  %v3387_v51 = vld [vmem:[#allocation4 + $0x10] sm:$0xff] }
 0x4b3   : > { %12324 = vst [vmem:[#allocation89_spill] sm:$0xff] %v11240_v1  ;;  %12325 = vst [vmem:[#allocation67_spill] sm:$0xff] %v11242_v61  ;;  %7762 = vmatmul.mubr.f32.gmra.mxu0 %v10761_v23  ;;  %v3883_v23 = vadd.f32 %v10944_v58, %v10959_v8  ;;  %v11258_v61 = vpop.permute.xlu0 %5965 }
 0x4b4   : > { %7796 = vmatmul.mubr.f32.gmra.mxu1 %v10900_v40  ;;  %v11246_v3 = vpop.f32.mrf.mxu0  ;;  %v7617_v59 = vpop.f32.mrf.mxu1  ;;  %7764 = vmatprep.mubr.f32.mxu0 %v10774_v54  ;;  %12329 = vst [vmem:[#allocation34_spill] sm:$0xff] %v11258_v61  ;;  %v3386_v54 = vld [vmem:[#allocation4 + $0x8] sm:$0xff]  ;;  %v3895_v61 = vadd.f32 %v10961_v2, %v10985_v35  ;;  %v12334_v2 = vld [vmem:[#allocation70_spill] sm:$0xff] }
 0x4b5   : > { %12326 = vst [vmem:[#allocation36_spill] sm:$0xff] %v11246_v3  ;;  %7798 = vmatprep.mubr.f32.mxu1 %v10889_v11  ;;  %v4056_v3 = vadd.f32 %v11156_v22, %v3889_v47  ;;  %v4049_v58 = vadd.f32 %v11165_v56, %v3883_v23  ;;  %v5786_v47 = vld [vmem:[#allocation5] sm:$0xff]  ;;  %v3913_v56 = vadd.f32 %v10969_v16, %v10996_v28  ;;  %v5787_v23 = vld [vmem:[#allocation5 + $0x8] sm:$0xff] }
 0x4b6   : > { %v11254_v29 = vpop.f32.mrf.mxu0  ;;  %v4588_v19 = vpop.f32.mrf.mxu1  ;;  %v12337_v16 = vld [vmem:[#allocation54_spill] sm:$0xff] }
 0x4b7   : > { %12328 = vst [vmem:[#allocation74_spill] sm:$0xff] %v11254_v29  ;;  %7765 = vmatmul.mubr.f32.gmra.mxu0 %v10802_v62  ;;  %v3418_v62 = vmul.f32 %v10572_v63, %v3386_v54  ;;  %v4237_v57 = vadd.f32 %v11123_v12, %v4056_v3  ;;  %v12333_v63 = vld [vmem:[#allocation69_spill] sm:$0xff]  ;;  %v12335_v12 = vld [vmem:[#allocation52_spill] sm:$0xff] }
 0x4b8   : > { %7799 = vmatmul.mubr.f32.gmra.mxu1 %v10915_v18  ;;  %v11263_v37 = vpop.f32.mrf.mxu0  ;;  %v11265_v38 = vpop.f32.mrf.mxu1  ;;  %7767 = vmatprep.mubr.f32.mxu0 %v10811_v20  ;;  %v4070_v20 = vadd.f32 %v11174_v49, %v3901_v17  ;;  %v4063_v17 = vadd.f32 %v11180_v52, %v3895_v61  ;;  %v5978_v49 = vmul.f32 %v12335_v12, %v5786_v47  ;;  %v12336_v3 = vld [vmem:[#allocation41_spill] sm:$0xff]  ;;  %v12339_v52 = vld [vmem:[#allocation39_spill] sm:$0xff]  ;;  %v3389_v47 = vld [vmem:[#allocation4 + $0x20] sm:$0xff] }
 0x4b9   : > { %12330 = vst [vmem:[#allocation78_spill] sm:$0xff] %v11263_v37  ;;  %7801 = vmatprep.mubr.f32.mxu1 %v10987_v41  ;;  %v11279_v37 = vpop.permute.xlu1 %5920  ;;  %v3907_v28 = vadd.f32 %v12337_v16, %v12336_v3  ;;  %v5789_v61 = vld [vmem:[#allocation5 + $0x18] sm:$0xff] }
 0x4ba   : > { %v11272_v8 = vpop.f32.mrf.mxu0  ;;  %v11274_v22 = vpop.f32.mrf.mxu1  ;;  %12332 = vst [vmem:[#allocation112_spill] sm:$0xff] %v11279_v37  ;;  %v12341_v3 = vld [vmem:[#allocation57_spill] sm:$0xff] }
 0x4bb   : > { %12331 = vst [vmem:[#allocation101_spill] sm:$0xff] %v11272_v8  ;;  %v3452_v29 = vpop.xlane.xlu0 %3451  ;;  %7768 = vmatmul.mubr.f32.gmra.mxu0 %v10900_v40  ;;  %v4229_v40 = vadd.f32 %v11130_v0, %v4049_v58  ;;  %v4253_v58 = vadd.f32 %v11139_v39, %v4070_v20  ;;  %v4245_v20 = vadd.f32 %v11150_v7, %v4063_v17 }
 0x4bc   : > { %v3514_v8 = vadd.f32 %v3452_v29, %v3418_v62  ;;  %7802 = vmatmul.mubr.f32.gmra.mxu1 %v12333_v63  ;;  %v7589_v54 = vpop.f32.mrf.mxu0  ;;  %v11287_v53 = vpop.f32.mrf.mxu1  ;;  %7770 = vmatprep.mubr.f32.mxu0 %v10889_v11  ;;  %v4084_v29 = vadd.f32 %v11188_v55, %v3913_v56  ;;  %v12338_v11 = vld [vmem:[#allocation75_spill] sm:$0xff]  ;;  %v12340_v55 = vld [vmem:[#allocation90_spill] sm:$0xff] }
 0x4bd   : > { %v4432_v35 = vadd.f32 %v7589_v54, %v4237_v57  ;;  %7804 = vmatprep.mubr.f32.mxu1 %v12334_v2  ;;  %v3419_v13 = vmul.f32 %v12338_v11, %v3387_v51  ;;  %v5979_v57 = vmul.f32 %v12339_v52, %v5787_v23  ;;  %v3925_v56 = vadd.f32 %v12340_v55, %v11033_v43  ;;  %v11311_v23 = vpop.permute.xlu1 %5930  ;;  %v12344_v11 = vld [vmem:[#allocation84_spill] sm:$0xff] }
 0x4be   : > { %3547 = vst.msk [vmem:[#allocation4 + $0x8] sm:$0xff] %vm3545_vm3, %v3514_v8  ;;  %v4425_v62 = vpop.f32.mrf.mxu0  ;;  %v11298_v37 = vpop.f32.mrf.mxu1  ;;  %v4077_v8 = vadd.f32 %v11196_v60, %v3907_v28  ;;  %v12343_v60 = vld [vmem:[#allocation71_spill] sm:$0xff]  ;;  %v4269_v52 = vadd.f32 %v11158_v33, %v4084_v29 }
 0x4bf   : > { %v4595_v54 = vadd.f32 %v7617_v59, %v4432_v35  ;;  %v4426_v1 = vadd.f32 %v4425_v62, %v4229_v40  ;;  %v3454_v0 = vpop.xlane.xlu0 %3453  ;;  %7771 = vmatmul.mubr.f32.gmra.mxu0 %v10915_v18  ;;  %v5788_v59 = vld [vmem:[#allocation5 + $0x10] sm:$0xff]  ;;  %v12342_v40 = vld [vmem:[#allocation86_spill] sm:$0xff] }
 0x4c0   : > { %v3515_v12 = vadd.f32 %v3454_v0, %v3419_v13  ;;  %7805 = vmatmul.mubr.f32.gmra.mxu1 %v12341_v3  ;;  %v7592_v51 = vpop.f32.mrf.mxu0  ;;  %v11308_v16 = vpop.f32.mrf.mxu1  ;;  %7773 = vmatprep.mubr.f32.mxu0 %v10987_v41  ;;  %v5981_v43 = vmul.f32 %v12342_v40, %v5789_v61  ;;  %v3919_v13 = vadd.f32 %v12343_v60, %v11056_v4  ;;  %v5791_v0 = vld [vmem:[#allocation5 + $0x28] sm:$0xff]  ;;  %v3391_v4 = vld [vmem:[#allocation4 + $0x30] sm:$0xff] }
 0x4c1   : > { %v6011_v18 = vadd.f32 %v5979_v57, %v4595_v54  ;;  %v4589_v35 = vadd.f32 %v4588_v19, %v4426_v1  ;;  %v4444_v39 = vadd.f32 %v7592_v51, %v4253_v58  ;;  %v3421_v41 = vmul.f32 %v12344_v11, %v3389_v47  ;;  %v12345_v54 = vld [vmem:[#allocation73_spill] sm:$0xff]  ;;  %v5792_v11 = vld [vmem:[#allocation5 + $0x30] sm:$0xff] }
 0x4c2   : > { %3548 = vst.msk [vmem:[#allocation4 + $0x10] sm:$0xff] %vm3545_vm3, %v3515_v12  ;;  %v4437_v28 = vpop.f32.mrf.mxu0  ;;  %v11318_v62 = vpop.f32.mrf.mxu1  ;;  %v4098_v19 = vadd.f32 %v11202_v15, %v3925_v56  ;;  %v5980_v57 = vmul.f32 %v11058_v25, %v5788_v59  ;;  %v3937_v58 = vadd.f32 %v12345_v54, %v11066_v45  ;;  %v4261_v15 = vadd.f32 %v11167_v48, %v4077_v8  ;;  %v12346_v56 = vld [vmem:[#allocation68_spill] sm:$0xff]  ;;  %v12347_v8 = vld [vmem:[#allocation59_spill] sm:$0xff]  ;;  %v5793_v59 = vld [vmem:[#allocation5 + $0x38] sm:$0xff] }
 0x4c3   : > { %6043 = vst.msk [vmem:[#allocation5 + $0x8] sm:$0xff] %vm600_vm2, %v6011_v18  ;;  %v6010_v7 = vadd.f32 %v5978_v49, %v4589_v35  ;;  %v4607_v1 = vadd.f32 %v11265_v38, %v4444_v39  ;;  %v4438_v17 = vadd.f32 %v4437_v28, %v4245_v20  ;;  %v3458_v61 = vpop.xlane.xlu0 %3457  ;;  %7774 = vmatmul.mubr.f32.gmra.mxu0 %v12333_v63  ;;  %v5790_v49 = vld [vmem:[#allocation5 + $0x20] sm:$0xff]  ;;  %v11344_v18 = vpop.permute.xlu1 %5940 }
 0x4c4   : > { %v3517_v47 = vadd.f32 %v3458_v61, %v3421_v41  ;;  %v7595_v33 = vpop.f32.mrf.mxu0  ;;  %v11329_v29 = vpop.f32.mrf.mxu1  ;;  %7776 = vmatprep.mubr.f32.mxu0 %v12334_v2  ;;  %v4091_v38 = vadd.f32 %v11210_v42, %v3919_v13  ;;  %v5983_v12 = vmul.f32 %v12346_v56, %v5791_v0  ;;  %v3931_v45 = vadd.f32 %v11040_v34, %v11076_v36  ;;  %v3393_v36 = vld [vmem:[#allocation4 + $0x40] sm:$0xff] }
 0x4c5   : > { %6042 = vst.msk [vmem:[#allocation5] sm:$0xff] %vm600_vm2, %v6010_v7  ;;  %v6013_v63 = vadd.f32 %v5981_v43, %v4607_v1  ;;  %v4601_v55 = vadd.f32 %v11274_v22, %v4438_v17  ;;  %v4456_v25 = vadd.f32 %v7595_v33, %v4269_v52  ;;  %v4112_v51 = vadd.f32 %v11218_v21, %v3937_v58  ;;  %v12349_v52 = vld [vmem:[#allocation92_spill] sm:$0xff]  ;;  %v5795_v7 = vld [vmem:[#allocation5 + $0x48] sm:$0xff]  ;;  %v12352_v33 = vld [vmem:[#allocation89_spill] sm:$0xff] }
 0x4c6   : > { %3550 = vst.msk [vmem:[#allocation4 + $0x20] sm:$0xff] %vm3545_vm3, %v3517_v47  ;;  %v4449_v2 = vpop.f32.mrf.mxu0  ;;  %v11341_v48 = vpop.f32.mrf.mxu1  ;;  %v3423_v42 = vmul.f32 %v12347_v8, %v3391_v4  ;;  %12348 = vst [vmem:[#allocation69_spill] sm:$0xff] %v11344_v18  ;;  %v4285_v34 = vadd.f32 %v11176_v10, %v4098_v19  ;;  %v5982_v21 = vmul.f32 %v11082_v30, %v5790_v49  ;;  %v3395_v4 = vld [vmem:[#allocation4 + $0x50] sm:$0xff]  ;;  %v5794_v47 = vld [vmem:[#allocation5 + $0x40] sm:$0xff] }
 0x4c7   : > { %6045 = vst.msk [vmem:[#allocation5 + $0x18] sm:$0xff] %vm600_vm2, %v6013_v63  ;;  %v6012_v22 = vadd.f32 %v5980_v57, %v4601_v55  ;;  %v4619_v35 = vadd.f32 %v11287_v53, %v4456_v25  ;;  %v4450_v39 = vadd.f32 %v4449_v2, %v4261_v15  ;;  %v3462_v20 = vpop.xlane.xlu0 %3461  ;;  %7777 = vmatmul.mubr.f32.gmra.mxu0 %v12341_v3  ;;  %v12354_v55 = vld [vmem:[#allocation83_spill] sm:$0xff]  ;;  %v12356_v25 = vld [vmem:[#allocation36_spill] sm:$0xff] }
 0x4c8   : > { %v3949_v40 = vadd.f32 %v11049_v9, %v11084_v6  ;;  %v4105_v43 = vadd.f32 %v11224_v50, %v3931_v45  ;;  %v3519_v60 = vadd.f32 %v3462_v20, %v3423_v42  ;;  %v7598_v13 = vpop.f32.mrf.mxu0  ;;  %v11354_v28 = vpop.f32.mrf.mxu1  ;;  %v4277_v10 = vadd.f32 %v11182_v27, %v4091_v38  ;;  %v12350_v50 = vld [vmem:[#allocation77_spill] sm:$0xff] }
 0x4c9   : > { %6044 = vst.msk [vmem:[#allocation5 + $0x10] sm:$0xff] %vm600_vm2, %v6012_v22  ;;  %v6015_v53 = vadd.f32 %v5983_v12, %v4619_v35  ;;  %v4613_v3 = vadd.f32 %v11298_v37, %v4450_v39  ;;  %v4468_v41 = vadd.f32 %v7598_v13, %v4285_v34  ;;  %v5985_v30 = vmul.f32 %v12349_v52, %v5793_v59  ;;  %v12357_v12 = vld [vmem:[#allocation102_spill] sm:$0xff]  ;;  %v12358_v59 = vld [vmem:[#allocation35_spill] sm:$0xff] }
 0x4ca   : > { %v3943_v9 = vadd.f32 %v11061_v46, %v11097_v5  ;;  %3552 = vst.msk [vmem:[#allocation4 + $0x30] sm:$0xff] %vm3545_vm3, %v3519_v60  ;;  %v4461_v6 = vpop.f32.mrf.mxu0  ;;  %v3425_v0 = vmul.f32 %v12350_v50, %v3393_v36  ;;  %v4301_v19 = vadd.f32 %v11190_v44, %v4112_v51  ;;  %v4126_v1 = vadd.f32 %v11232_v31, %v3949_v40  ;;  %v4648_v57 = vpop.f32.mrf.mxu1  ;;  %v5797_v51 = vld [vmem:[#allocation5 + $0x58] sm:$0xff]  ;;  %v3397_v35 = vld [vmem:[#allocation4 + $0x60] sm:$0xff]  ;;  %v12359_v39 = vld [vmem:[#allocation103_spill] sm:$0xff] }
 0x4cb   : > { %6047 = vst.msk [vmem:[#allocation5 + $0x28] sm:$0xff] %vm600_vm2, %v6015_v53  ;;  %v6014_v37 = vadd.f32 %v5982_v21, %v4613_v3  ;;  %v4631_v27 = vadd.f32 %v11308_v16, %v4468_v41  ;;  %v4462_v17 = vadd.f32 %v4461_v6, %v4277_v10  ;;  %v3466_v61 = vpop.xlane.xlu0 %3465  ;;  %v5984_v46 = vmul.f32 %v11110_v32, %v5792_v11  ;;  %v11372_v31 = vpop.permute.xlu1 %5950  ;;  %v12353_v32 = vld [vmem:[#allocation93_spill] sm:$0xff]  ;;  %v12360_v34 = vld [vmem:[#allocation94_spill] sm:$0xff]  ;;  %v5796_v53 = vld [vmem:[#allocation5 + $0x50] sm:$0xff] }
 0x4cc   : > { %v3961_v5 = vadd.f32 %v11079_v14, %v11113_v24  ;;  %v3521_v54 = vadd.f32 %v3466_v61, %v3425_v0  ;;  %v7601_v58 = vpop.f32.mrf.mxu0  ;;  %v4293_v44 = vadd.f32 %v11198_v26, %v4105_v43  ;;  %12351 = vst [vmem:[#allocation70_spill] sm:$0xff] %v11372_v31  ;;  %v4119_v15 = vadd.f32 %v12352_v33, %v3943_v9  ;;  %v12355_v14 = vld [vmem:[#allocation80_spill] sm:$0xff]  ;;  %v12361_v36 = vld [vmem:[#allocation82_spill] sm:$0xff]  ;;  %v7635_v60 = vpop.f32.mrf.mxu1  ;;  %v12365_v6 = vld [vmem:[#allocation47_spill] sm:$0xff] }
 0x4cd   : > { %6046 = vst.msk [vmem:[#allocation5 + $0x20] sm:$0xff] %vm600_vm2, %v6014_v37  ;;  %v6017_v16 = vadd.f32 %v5985_v30, %v4631_v27  ;;  %v4625_v49 = vadd.f32 %v11318_v62, %v4462_v17  ;;  %v4480_v38 = vadd.f32 %v7601_v58, %v4301_v19  ;;  %v5987_v63 = vmul.f32 %v12353_v32, %v5795_v7  ;;  %v12362_v40 = vld [vmem:[#allocation74_spill] sm:$0xff]  ;;  %v12364_v30 = vld [vmem:[#allocation76_spill] sm:$0xff]  ;;  %v12366_v50 = vld [vmem:[#allocation105_spill] sm:$0xff] }
 0x4ce   : > { %v3955_v24 = vadd.f32 %v12355_v14, %v12354_v55  ;;  %v4140_v56 = vadd.f32 %v12356_v25, %v3961_v5  ;;  %3554 = vst.msk [vmem:[#allocation4 + $0x40] sm:$0xff] %vm3545_vm3, %v3521_v54  ;;  %v4473_v26 = vpop.f32.mrf.mxu0  ;;  %v3427_v45 = vmul.f32 %v12357_v12, %v3395_v4  ;;  %v4317_v22 = vadd.f32 %v12358_v59, %v4126_v1  ;;  %v12363_v10 = vld [vmem:[#allocation98_spill] sm:$0xff]  ;;  %v12367_v7 = vld [vmem:[#allocation49_spill] sm:$0xff]  ;;  %v12368_v37 = vld [vmem:[#allocation104_spill] sm:$0xff] }
 0x4cf   : > { %6049 = vst.msk [vmem:[#allocation5 + $0x38] sm:$0xff] %vm600_vm2, %v6017_v16  ;;  %v6016_v2 = vadd.f32 %v5984_v46, %v4625_v49  ;;  %v4643_v8 = vadd.f32 %v11329_v29, %v4480_v38  ;;  %v4474_v62 = vadd.f32 %v4473_v26, %v4293_v44  ;;  %v3470_v42 = vpop.xlane.xlu0 %3469  ;;  %v5986_v20 = vmul.f32 %v12359_v39, %v5794_v47  ;;  %v5799_v17 = vld [vmem:[#allocation5 + $0x68] sm:$0xff]  ;;  %v11399_v61 = vpop.permute.xlu1 %5960  ;;  %v12370_v4 = vld [vmem:[#allocation78_spill] sm:$0xff]  ;;  %v3399_v44 = vld [vmem:[#allocation4 + $0x70] sm:$0xff] }
 0x4d0   : > { %v3973_v21 = vadd.f32 %v12361_v36, %v12360_v34  ;;  %v4133_v43 = vadd.f32 %v12362_v40, %v3955_v24  ;;  %v3523_v13 = vadd.f32 %v3470_v42, %v3427_v45  ;;  %v7604_v11 = vpop.f32.mrf.mxu0  ;;  %v4309_v52 = vadd.f32 %v12363_v10, %v4119_v15  ;;  %12369 = vst [vmem:[#allocation52_spill] sm:$0xff] %v11399_v61  ;;  %v3385_v47 = vld [vmem:[#allocation4] sm:$0xff]  ;;  %v12371_v33 = vld [vmem:[#allocation64_spill] sm:$0xff]  ;;  %v4660_v16 = vpop.f32.mrf.mxu1  ;;  %v12372_v32 = vld [vmem:[#allocation45_spill] sm:$0xff] }
 0x4d1   : > { %6048 = vst.msk [vmem:[#allocation5 + $0x30] sm:$0xff] %vm600_vm2, %v6016_v2  ;;  %v6019_v3 = vadd.f32 %v5987_v63, %v4643_v8  ;;  %v4637_v29 = vadd.f32 %v11341_v48, %v4474_v62  ;;  %v4492_v41 = vadd.f32 %v7604_v11, %v4317_v22  ;;  %v5989_v9 = vmul.f32 %v12364_v30, %v5797_v51  ;;  %v5798_v55 = vld [vmem:[#allocation5 + $0x60] sm:$0xff]  ;;  %v12373_v14 = vld [vmem:[#allocation101_spill] sm:$0xff]  ;;  %v12378_v40 = vld [vmem:[#allocation91_spill] sm:$0xff] }
 0x4d2   : > { %v3967_v0 = vadd.f32 %v12366_v50, %v12365_v6  ;;  %3556 = vst.msk [vmem:[#allocation4 + $0x50] sm:$0xff] %vm3545_vm3, %v3523_v13  ;;  %v4485_v19 = vpop.f32.mrf.mxu0  ;;  %v3429_v1 = vmul.f32 %v12367_v7, %v3397_v35  ;;  %v4333_v27 = vadd.f32 %v12368_v37, %v4140_v56  ;;  %v4154_v48 = vadd.f32 %v12370_v4, %v3973_v21  ;;  %v12375_v51 = vld [vmem:[#allocation85_spill] sm:$0xff]  ;;  %v12376_v8 = vld [vmem:[#allocation106_spill] sm:$0xff]  ;;  %v7638_v13 = vpop.f32.mrf.mxu1  ;;  %v5800_v30 = vld [vmem:[#allocation5 + $0x70] sm:$0xff] }
 0x4d3   : > { %6051 = vst.msk [vmem:[#allocation5 + $0x48] sm:$0xff] %vm600_vm2, %v6019_v3  ;;  %v6018_v46 = vadd.f32 %v5986_v20, %v4637_v29  ;;  %v4655_v5 = vadd.f32 %v11354_v28, %v4492_v41  ;;  %v4486_v54 = vadd.f32 %v4485_v19, %v4309_v52  ;;  %v3474_v58 = vpop.xlane.xlu0 %3473  ;;  %v5988_v15 = vmul.f32 %v12371_v33, %v5796_v53  ;;  %v12374_v28 = vld [vmem:[#allocation97_spill] sm:$0xff]  ;;  %v12377_v20 = vld [vmem:[#allocation38_spill] sm:$0xff]  ;;  %v12382_v7 = vld [vmem:[#allocation100_spill] sm:$0xff] }
 0x4d4   : > { %v3525_v49 = vadd.f32 %v3474_v58, %v3429_v1  ;;  %v7607_v38 = vpop.f32.mrf.mxu0  ;;  %v4325_v63 = vadd.f32 %v12372_v32, %v4133_v43  ;;  %v4147_v24 = vadd.f32 %v12373_v14, %v3967_v0  ;;  %v5991_v12 = vmul.f32 %v12374_v28, %v5799_v17  ;;  %v3388_v36 = vld [vmem:[#allocation4 + $0x18] sm:$0xff]  ;;  %v12381_v0 = vld [vmem:[#allocation107_spill] sm:$0xff]  ;;  %v12385_v32 = vld [vmem:[#allocation108_spill] sm:$0xff] }
 0x4d5   : > { %6050 = vst.msk [vmem:[#allocation5 + $0x40] sm:$0xff] %vm600_vm2, %v6018_v46  ;;  %v6021_v25 = vadd.f32 %v5989_v9, %v4655_v5  ;;  %v4649_v56 = vadd.f32 %v4648_v57, %v4486_v54  ;;  %v4504_v26 = vadd.f32 %v7607_v38, %v4333_v27  ;;  %v3431_v2 = vmul.f32 %v12375_v51, %v3399_v44  ;;  %v3401_v57 = vld [vmem:[#allocation4 + $0x80] sm:$0xff]  ;;  %v5801_v21 = vld [vmem:[#allocation5 + $0x78] sm:$0xff]  ;;  %v3403_v46 = vld [vmem:[#allocation4 + $0x90] sm:$0xff]  ;;  %v4672_v54 = vpop.f32.mrf.mxu1 }
 0x4d6   : > { %3558 = vst.msk [vmem:[#allocation4 + $0x60] sm:$0xff] %vm3545_vm3, %v3525_v49  ;;  %v4497_v45 = vpop.f32.mrf.mxu0  ;;  %v3417_v62 = vmul.f32 %v12376_v8, %v3385_v47  ;;  %v4349_v34 = vadd.f32 %v12377_v20, %v4154_v48  ;;  %v5990_v43 = vmul.f32 %v12378_v40, %v5798_v55  ;;  %v12380_v6 = vld [vmem:[#allocation61_spill] sm:$0xff]  ;;  %v3420_v19 = vmul.f32 %v12381_v0, %v3388_v36  ;;  %v3390_v5 = vld [vmem:[#allocation4 + $0x28] sm:$0xff]  ;;  %v12384_v49 = vld [vmem:[#allocation50_spill] sm:$0xff] }
 0x4d7   : > { %6053 = vst.msk [vmem:[#allocation5 + $0x58] sm:$0xff] %vm600_vm2, %v6021_v25  ;;  %v6020_v42 = vadd.f32 %v5988_v15, %v4649_v56  ;;  %v4667_v59 = vadd.f32 %v7635_v60, %v4504_v26  ;;  %v4498_v22 = vadd.f32 %v4497_v45, %v4325_v63  ;;  %v3478_v35 = vpop.xlane.xlu0 %3477  ;;  %v3450_v39 = vpop.xlane.xlu1 %3449  ;;  %v12379_v60 = vld [vmem:[#allocation67_spill] sm:$0xff]  ;;  %v3433_v50 = vmul.f32 %v12380_v6, %v3401_v57  ;;  %v3405_v25 = vld [vmem:[#allocation4 + $0xa0] sm:$0xff]  ;;  %v3392_v56 = vld [vmem:[#allocation4 + $0x38] sm:$0xff] }
 0x4d8   : > { %v3527_v11 = vadd.f32 %v3478_v35, %v3431_v2  ;;  %v3513_v53 = vadd.f32 %v3450_v39, %v3417_v62  ;;  %v7610_v3 = vpop.f32.mrf.mxu0  ;;  %v4341_v52 = vadd.f32 %v12379_v60, %v4147_v24  ;;  %v5993_v1 = vmul.f32 %v12382_v7, %v5801_v21  ;;  %v12383_v47 = vld [vmem:[#allocation55_spill] sm:$0xff]  ;;  %v12387_v51 = vld [vmem:[#allocation109_spill] sm:$0xff]  ;;  %v12388_v39 = vld [vmem:[#allocation62_spill] sm:$0xff] }
 0x4d9   : > { %6052 = vst.msk [vmem:[#allocation5 + $0x50] sm:$0xff] %vm600_vm2, %v6020_v42  ;;  %v6023_v29 = vadd.f32 %v5991_v12, %v4667_v59  ;;  %v4661_v41 = vadd.f32 %v4660_v16, %v4498_v22  ;;  %v4516_v10 = vadd.f32 %v7610_v3, %v4349_v34  ;;  %v5992_v33 = vmul.f32 %v12383_v47, %v5800_v30  ;;  %v12386_v12 = vld [vmem:[#allocation48_spill] sm:$0xff]  ;;  %v3394_v59 = vld [vmem:[#allocation4 + $0x48] sm:$0xff]  ;;  %v12389_v34 = vld [vmem:[#allocation110_spill] sm:$0xff] }
 0x4da   : > { %3560 = vst.msk [vmem:[#allocation4 + $0x70] sm:$0xff] %vm3545_vm3, %v3527_v11  ;;  %3546 = vst.msk [vmem:[#allocation4] sm:$0xff] %vm3545_vm3, %v3513_v53  ;;  %v4509_v9 = vpop.f32.mrf.mxu0  ;;  %v3435_v38 = vmul.f32 %v12384_v49, %v3403_v46  ;;  %v3422_v63 = vmul.f32 %v12385_v32, %v3390_v5  ;;  %v3437_v45 = vmul.f32 %v12386_v12, %v3405_v25  ;;  %v3407_v42 = vld [vmem:[#allocation4 + $0xb0] sm:$0xff]  ;;  %v3409_v40 = vld [vmem:[#allocation4 + $0xc0] sm:$0xff] }
 0x4db   : > { %6055 = vst.msk [vmem:[#allocation5 + $0x68] sm:$0xff] %vm600_vm2, %v6023_v29  ;;  %v6022_v37 = vadd.f32 %v5990_v43, %v4661_v41  ;;  %v4679_v27 = vadd.f32 %v7638_v13, %v4516_v10  ;;  %v4510_v17 = vadd.f32 %v4509_v9, %v4341_v52  ;;  %v3482_v4 = vpop.xlane.xlu0 %3481  ;;  %v3456_v48 = vpop.xlane.xlu1 %3455  ;;  %v3424_v2 = vmul.f32 %v12387_v51, %v3392_v56  ;;  %v3396_v43 = vld [vmem:[#allocation4 + $0x58] sm:$0xff]  ;;  %v12390_v53 = vld [vmem:[#allocation63_spill] sm:$0xff]  ;;  %v3411_v52 = vld [vmem:[#allocation4 + $0xd0] sm:$0xff] }
 0x4dc   : > { %v3529_v58 = vadd.f32 %v3482_v4, %v3433_v50  ;;  %v3516_v44 = vadd.f32 %v3456_v48, %v3420_v19  ;;  %v3439_v20 = vmul.f32 %v12388_v39, %v3407_v42  ;;  %v3426_v57 = vmul.f32 %v12389_v34, %v3394_v59  ;;  %v12391_v29 = vld [vmem:[#allocation111_spill] sm:$0xff]  ;;  %v12392_v50 = vld [vmem:[#allocation88_spill] sm:$0xff]  ;;  %v12394_v48 = vld [vmem:[#allocation42_spill] sm:$0xff] }
 0x4dd   : > { %6054 = vst.msk [vmem:[#allocation5 + $0x60] sm:$0xff] %vm600_vm2, %v6022_v37  ;;  %v6025_v15 = vadd.f32 %v5993_v1, %v4679_v27  ;;  %v4673_v16 = vadd.f32 %v4672_v54, %v4510_v17  ;;  %v3441_v3 = vmul.f32 %v12390_v53, %v3409_v40  ;;  %v3428_v41 = vmul.f32 %v12391_v29, %v3396_v43  ;;  %v3398_v30 = vld [vmem:[#allocation4 + $0x68] sm:$0xff]  ;;  %v12393_v19 = vld [vmem:[#allocation72_spill] sm:$0xff]  ;;  %v3400_v27 = vld [vmem:[#allocation4 + $0x78] sm:$0xff] }
 0x4de   : > { %3562 = vst.msk [vmem:[#allocation4 + $0x80] sm:$0xff] %vm3545_vm3, %v3529_v58  ;;  %3549 = vst.msk [vmem:[#allocation4 + $0x18] sm:$0xff] %vm3545_vm3, %v3516_v44  ;;  %v3443_v0 = vmul.f32 %v12392_v50, %v3411_v52  ;;  %v3430_v7 = vmul.f32 %v12393_v19, %v3398_v30  ;;  %v3432_v46 = vmul.f32 %v12394_v48, %v3400_v27  ;;  %v3402_v54 = vld [vmem:[#allocation4 + $0x88] sm:$0xff]  ;;  %v12395_v44 = vld [vmem:[#allocation58_spill] sm:$0xff]  ;;  %v11468_v52 = vpop.f32.mrf.mxu1  ;;  %v7645_v27 = vpop.f32.mrf.mxu0 }
 0x4df   : > { %6057 = vst.msk [vmem:[#allocation5 + $0x78] sm:$0xff] %vm600_vm2, %v6025_v15  ;;  %v6024_v55 = vadd.f32 %v5992_v33, %v4673_v16  ;;  %v3486_v14 = vpop.xlane.xlu0 %3485  ;;  %v3460_v24 = vpop.xlane.xlu1 %3459  ;;  %v3434_v47 = vmul.f32 %v12395_v44, %v3402_v54  ;;  %v3404_v15 = vld [vmem:[#allocation4 + $0x98] sm:$0xff]  ;;  %v12396_v49 = vld [vmem:[#allocation51_spill] sm:$0xff]  ;;  %v12398_v12 = vld [vmem:[#allocation56_spill] sm:$0xff]  ;;  %v4993_v31 = vadd.f32 %v11468_v52, %v7645_v27 }
 0x4e0   : > { %v3531_v26 = vadd.f32 %v3486_v14, %v3435_v38  ;;  %v3518_v28 = vadd.f32 %v3460_v24, %v3422_v63  ;;  %v3436_v38 = vmul.f32 %v12396_v49, %v3404_v15  ;;  %v3406_v63 = vld [vmem:[#allocation4 + $0xa8] sm:$0xff]  ;;  %v3413_v14 = vld [vmem:[#allocation4 + $0xe0] sm:$0xff]  ;;  %v3412_v43 = vld [vmem:[#allocation4 + $0xd8] sm:$0xff]  ;;  %v11472_v19 = vpop.f32.mrf.mxu1 }
 0x4e1   : > { %6056 = vst.msk [vmem:[#allocation5 + $0x70] sm:$0xff] %vm600_vm2, %v6024_v55  ;;  %v12397_v24 = vld [vmem:[#allocation79_spill] sm:$0xff]  ;;  %v12404_v50 = vld [vmem:[#allocation37_spill] sm:$0xff] }
 0x4e2   : > { %3564 = vst.msk [vmem:[#allocation4 + $0x90] sm:$0xff] %vm3545_vm3, %v3531_v26  ;;  %3551 = vst.msk [vmem:[#allocation4 + $0x28] sm:$0xff] %vm3545_vm3, %v3518_v28  ;;  %v3438_v25 = vmul.f32 %v12397_v24, %v3406_v63  ;;  %v3408_v26 = vld [vmem:[#allocation4 + $0xb8] sm:$0xff]  ;;  %v12400_v39 = vld [vmem:[#allocation43_spill] sm:$0xff] }
 0x4e3   : > { %v3490_v8 = vpop.xlane.xlu0 %3489  ;;  %v3464_v62 = vpop.xlane.xlu1 %3463  ;;  %v3414_v29 = vld [vmem:[#allocation4 + $0xe8] sm:$0xff] }
 0x4e4   : > { %v3533_v22 = vadd.f32 %v3490_v8, %v3437_v45  ;;  %v3520_v35 = vadd.f32 %v3464_v62, %v3424_v2  ;;  %v3445_v45 = vmul.f32 %v12398_v12, %v3413_v14  ;;  %v3415_v2 = vld [vmem:[#allocation4 + $0xf0] sm:$0xff]  ;;  %v12399_v62 = vld [vmem:[#allocation99_spill] sm:$0xff] }
 0x4e5   : > { %v3440_v42 = vmul.f32 %v12399_v62, %v3408_v26 }
 0x4e6   : > { %3566 = vst.msk [vmem:[#allocation4 + $0xa0] sm:$0xff] %vm3545_vm3, %v3533_v22  ;;  %3553 = vst.msk [vmem:[#allocation4 + $0x38] sm:$0xff] %vm3545_vm3, %v3520_v35  ;;  %v3410_v22 = vld [vmem:[#allocation4 + $0xc8] sm:$0xff] }
 0x4e7   : > { %v3494_v36 = vpop.xlane.xlu0 %3493  ;;  %v3468_v21 = vpop.xlane.xlu1 %3467 }
 0x4e8   : > { %v3535_v13 = vadd.f32 %v3494_v36, %v3439_v20  ;;  %v3522_v11 = vadd.f32 %v3468_v21, %v3426_v57  ;;  %v3447_v20 = vmul.f32 %v12400_v39, %v3415_v2  ;;  %v12401_v36 = vld [vmem:[#allocation44_spill] sm:$0xff] }
 0x4e9   : > { %v3442_v21 = vmul.f32 %v12401_v36, %v3410_v22 }
 0x4ea   : > { %3568 = vst.msk [vmem:[#allocation4 + $0xb0] sm:$0xff] %vm3545_vm3, %v3535_v13  ;;  %3555 = vst.msk [vmem:[#allocation4 + $0x48] sm:$0xff] %vm3545_vm3, %v3522_v11  ;;  %v12402_v11 = vld [vmem:[#allocation60_spill] sm:$0xff] }
 0x4eb   : > { %v3498_v10 = vpop.xlane.xlu0 %3497  ;;  %v3472_v60 = vpop.xlane.xlu1 %3471  ;;  %v3444_v53 = vmul.f32 %v12402_v11, %v3412_v43 }
 0x4ec   : > { %v3537_v9 = vadd.f32 %v3498_v10, %v3441_v3  ;;  %v3524_v6 = vadd.f32 %v3472_v60, %v3428_v41  ;;  %v12403_v10 = vld [vmem:[#allocation53_spill] sm:$0xff] }
 0x4ed   : > { %v3446_v60 = vmul.f32 %v12403_v10, %v3414_v29 }
 0x4ee   : > { %3570 = vst.msk [vmem:[#allocation4 + $0xc0] sm:$0xff] %vm3545_vm3, %v3537_v9  ;;  %3557 = vst.msk [vmem:[#allocation4 + $0x58] sm:$0xff] %vm3545_vm3, %v3524_v6  ;;  %v3416_v9 = vld [vmem:[#allocation4 + $0xf8] sm:$0xff] }
 0x4ef   : > { %v3502_v1 = vpop.xlane.xlu0 %3501  ;;  %v3476_v37 = vpop.xlane.xlu1 %3475 }
 0x4f0   : > { %v3539_v17 = vadd.f32 %v3502_v1, %v3443_v0  ;;  %v3526_v4 = vadd.f32 %v3476_v37, %v3430_v7  ;;  %v3448_v0 = vmul.f32 %v12404_v50, %v3416_v9  ;;  %v11475_v37 = vpop.f32.mrf.mxu1 }
 0x4f2   : > { %3572 = vst.msk [vmem:[#allocation4 + $0xd0] sm:$0xff] %vm3545_vm3, %v3539_v17  ;;  %3559 = vst.msk [vmem:[#allocation4 + $0x68] sm:$0xff] %vm3545_vm3, %v3526_v4  ;;  %v11477_v17 = vpop.f32.mrf.mxu1  ;;  %v4755_v4 = vpop.f32.mrf.mxu0 }
 0x4f3   : > { %v3480_v5 = vpop.xlane.xlu1 %3479 }
 0x4f4   : > { %v3528_v58 = vadd.f32 %v3480_v5, %v3432_v46  ;;  %v11479_v48 = vpop.f32.mrf.mxu1  ;;  %v7648_v46 = vpop.f32.mrf.mxu0 }
 0x4f6   : > { %3561 = vst.msk [vmem:[#allocation4 + $0x78] sm:$0xff] %vm3545_vm3, %v3528_v58  ;;  %v11481_v5 = vpop.f32.mrf.mxu1  ;;  %v11483_v54 = vpop.f32.mrf.mxu0 }
 0x4f7   : > { %v3484_v33 = vpop.xlane.xlu1 %3483 }
 0x4f8   : > { %v3530_v16 = vadd.f32 %v3484_v33, %v3434_v47  ;;  %v11485_v58 = vpop.f32.mrf.mxu1  ;;  %v11487_v44 = vpop.f32.mrf.mxu0 }
 0x4fa   : > { %3563 = vst.msk [vmem:[#allocation4 + $0x88] sm:$0xff] %vm3545_vm3, %v3530_v16  ;;  %v11489_v47 = vpop.f32.mrf.mxu1  ;;  %v11491_v33 = vpop.f32.mrf.mxu0 }
 0x4fb   : > { %v3488_v32 = vpop.xlane.xlu1 %3487 }
 0x4fc   : > { %v3532_v55 = vadd.f32 %v3488_v32, %v3436_v38  ;;  %v11495_v16 = vpop.f32.mrf.mxu0 }
 0x4fe   : > { %3565 = vst.msk [vmem:[#allocation4 + $0x98] sm:$0xff] %vm3545_vm3, %v3532_v55  ;;  %v11499_v38 = vpop.f32.mrf.mxu0 }
 0x4ff   : > { %v3492_v56 = vpop.xlane.xlu1 %3491 }
 0x500   : > { %v3534_v28 = vadd.f32 %v3492_v56, %v3438_v25 }
 0x501   : > { %v3506_v51 = vpop.xlane.xlu0 %3505 }
 0x502   : > { %3567 = vst.msk [vmem:[#allocation4 + $0xa8] sm:$0xff] %vm3545_vm3, %v3534_v28  ;;  %v3541_v8 = vadd.f32 %v3506_v51, %v3445_v45 }
 0x503   : > { %v3496_v59 = vpop.xlane.xlu1 %3495 }
 0x504   : > { %3574 = vst.msk [vmem:[#allocation4 + $0xe0] sm:$0xff] %vm3545_vm3, %v3541_v8  ;;  %v3536_v35 = vadd.f32 %v3496_v59, %v3440_v42 }
 0x505   : > { %v3510_v34 = vpop.xlane.xlu0 %3509 }
 0x506   : > { %3569 = vst.msk [vmem:[#allocation4 + $0xb8] sm:$0xff] %vm3545_vm3, %v3536_v35  ;;  %v3543_v57 = vadd.f32 %v3510_v34, %v3447_v20 }
 0x507   : > { %v3500_v40 = vpop.xlane.xlu1 %3499 }
 0x508   : > { %3576 = vst.msk [vmem:[#allocation4 + $0xf0] sm:$0xff] %vm3545_vm3, %v3543_v57  ;;  %v3538_v13 = vadd.f32 %v3500_v40, %v3442_v21 }
 0x50a   : > { %3571 = vst.msk [vmem:[#allocation4 + $0xc8] sm:$0xff] %vm3545_vm3, %v3538_v13 }
 0x50b   : > { %v3504_v3 = vpop.xlane.xlu1 %3503 }
 0x50c   : > { %v3540_v41 = vadd.f32 %v3504_v3, %v3444_v53 }
 0x50e   : > { %3573 = vst.msk [vmem:[#allocation4 + $0xd8] sm:$0xff] %vm3545_vm3, %v3540_v41 }
 0x50f   : > { %v3508_v30 = vpop.xlane.xlu1 %3507 }
 0x510   : > { %v3542_v6 = vadd.f32 %v3508_v30, %v3446_v60 }
 0x512   : > { %3575 = vst.msk [vmem:[#allocation4 + $0xe8] sm:$0xff] %vm3545_vm3, %v3542_v6 }
 0x513   : > { %v3512_v7 = vpop.xlane.xlu1 %3511 }
 0x514   : > { %v3544_v1 = vadd.f32 %v3512_v7, %v3448_v0 }
 0x516   : > { %3577 = vst.msk [vmem:[#allocation4 + $0xf8] sm:$0xff] %vm3545_vm3, %v3544_v1 }
 0x51a   : > { %v11493_v15 = vpop.f32.mrf.mxu1 }
 0x51c   : > { %v11497_v49 = vpop.f32.mrf.mxu1 }
 0x51e   : > { %v11501_v32 = vpop.f32.mrf.mxu1 }
 0x520   : > { %v11505_v55 = vpop.f32.mrf.mxu1 }
 0x522   : > { %v11503_v63 = vpop.f32.mrf.mxu0 }
 0x524   : > { %v11507_v14 = vpop.f32.mrf.mxu0 }
 0x526   : > { %v11511_v25 = vpop.f32.mrf.mxu0 }
 0x528   : > { %v11517_v28 = vpop.f32.mrf.mxu0 }
 0x53b   : > { %v11509_v24 = vpop.f32.mrf.mxu1 }
 0x53d   : > { %v11513_v56 = vpop.f32.mrf.mxu1 }
 0x53e   : > { %12405 = vst [vmem:[#allocation41_spill] sm:$0xff] %v11513_v56  ;;  %v5803_v56 = vld [vmem:[#allocation5 + $0x88] sm:$0xff] }
 0x53f   : > { %v11515_v26 = vpop.f32.mrf.mxu1 }
 0x540   : > { %12406 = vst [vmem:[#allocation54_spill] sm:$0xff] %v11515_v26 }
 0x541   : > { %v11519_v12 = vpop.f32.mrf.mxu1 }
 0x542   : > { %12407 = vst [vmem:[#allocation75_spill] sm:$0xff] %v11519_v12 }
 0x543   : > { %v11521_v45 = vpop.f32.mrf.mxu0  ;;  %v7729_v51 = vpop.f32.mrf.mxu1 }
 0x545   : > { %v11523_v2 = vpop.f32.mrf.mxu0  ;;  %v5332_v8 = vpop.f32.mrf.mxu1 }
 0x546   : > { %12408 = vst [vmem:[#allocation39_spill] sm:$0xff] %v11523_v2  ;;  %v12422_v2 = vld [vmem:[#allocation46_spill] sm:$0xff] }
 0x547   : > { %v11525_v62 = vpop.f32.mrf.mxu0  ;;  %v7732_v42 = vpop.f32.mrf.mxu1 }
 0x548   : > { %12409 = vst [vmem:[#allocation90_spill] sm:$0xff] %v11525_v62  ;;  %v5005_v62 = vadd.f32 %v11475_v37, %v7648_v46  ;;  %v5011_v46 = vadd.f32 %v11481_v5, %v11491_v33 }
 0x549   : > { %v11527_v59 = vpop.f32.mrf.mxu0  ;;  %v11529_v22 = vpop.f32.mrf.mxu1 }
 0x54a   : > { %12410 = vst [vmem:[#allocation57_spill] sm:$0xff] %v11527_v59 }
 0x54b   : > { %v7701_v35 = vpop.f32.mrf.mxu0  ;;  %v11531_v39 = vpop.f32.mrf.mxu1 }
 0x54d   : > { %v5152_v20 = vpop.f32.mrf.mxu0  ;;  %v11533_v34 = vpop.f32.mrf.mxu1 }
 0x54f   : > { %v7704_v57 = vpop.f32.mrf.mxu0  ;;  %v11535_v36 = vpop.f32.mrf.mxu1 }
 0x551   : > { %v5166_v21 = vpop.f32.mrf.mxu0  ;;  %v11537_v40 = vpop.f32.mrf.mxu1 }
 0x553   : > { %v7707_v43 = vpop.f32.mrf.mxu0  ;;  %v11539_v13 = vpop.f32.mrf.mxu1 }
 0x555   : > { %v5180_v11 = vpop.f32.mrf.mxu0  ;;  %v11541_v53 = vpop.f32.mrf.mxu1 }
 0x557   : > { %v7710_v3 = vpop.f32.mrf.mxu0  ;;  %v11543_v29 = vpop.f32.mrf.mxu1 }
 0x558   : > { %12411 = vst [vmem:[#allocation86_spill] sm:$0xff] %v11543_v29 }
 0x559   : > { %v11545_v41 = vpop.f32.mrf.mxu0  ;;  %v11547_v10 = vpop.f32.mrf.mxu1 }
 0x55a   : > { %12412 = vst [vmem:[#allocation71_spill] sm:$0xff] %v11547_v10  ;;  %v5160_v10 = vadd.f32 %v7701_v35, %v4993_v31 }
 0x55b   : > { %v11549_v60 = vpop.f32.mrf.mxu0 }
 0x55c   : > { %v11551_v30 = vpop.f32.mrf.mxu1  ;;  %v5341_v27 = vadd.f32 %v7729_v51, %v5160_v10 }
 0x55d   : > { %12413 = vst [vmem:[#allocation84_spill] sm:$0xff] %v11551_v30  ;;  %v11553_v9 = vpop.f32.mrf.mxu0  ;;  %v4987_v30 = vadd.f32 %v11472_v19, %v4755_v4  ;;  %v5017_v19 = vadd.f32 %v11479_v48, %v11487_v44  ;;  %v5802_v4 = vld [vmem:[#allocation5 + $0x80] sm:$0xff]  ;;  %v5029_v44 = vadd.f32 %v11485_v58, %v11495_v16 }
 0x55e   : > { %v11555_v6 = vpop.f32.mrf.mxu1  ;;  %v5994_v48 = vmul.f32 %v12422_v2, %v5802_v4 }
 0x55f   : > { %12414 = vst [vmem:[#allocation73_spill] sm:$0xff] %v11555_v6  ;;  %v11557_v50 = vpop.f32.mrf.mxu0 }
 0x560   : > { %v11559_v0 = vpop.f32.mrf.mxu1 }
 0x561   : > { %12415 = vst [vmem:[#allocation68_spill] sm:$0xff] %v11559_v0  ;;  %v11561_v7 = vpop.f32.mrf.mxu0  ;;  %v5153_v0 = vadd.f32 %v5152_v20, %v4987_v30  ;;  %v5188_v20 = vadd.f32 %v7707_v43, %v5017_v19  ;;  %v12424_v19 = vld [vmem:[#allocation96_spill] sm:$0xff] }
 0x562   : > { %v11563_v1 = vpop.f32.mrf.mxu1 }
 0x563   : > { %12416 = vst [vmem:[#allocation59_spill] sm:$0xff] %v11563_v1  ;;  %v11565_v61 = vpop.f32.mrf.mxu0  ;;  %v4999_v1 = vadd.f32 %v11477_v17, %v11483_v54  ;;  %v5333_v37 = vadd.f32 %v5332_v8, %v5153_v0  ;;  %v5805_v54 = vld [vmem:[#allocation5 + $0x98] sm:$0xff]  ;;  %v5804_v8 = vld [vmem:[#allocation5 + $0x90] sm:$0xff]  ;;  %v5373_v2 = vadd.f32 %v11531_v39, %v5188_v20 }
 0x564   : > { %12417 = vst [vmem:[#allocation92_spill] sm:$0xff] %v11565_v61  ;;  %v7785_v12 = vpop.f32.mrf.mxu1  ;;  %v5174_v61 = vadd.f32 %v7704_v57, %v5005_v62 }
 0x565   : > { %v11568_v59 = vpop.f32.mrf.mxu0  ;;  %v5167_v35 = vadd.f32 %v5166_v21, %v4999_v1  ;;  %v5181_v21 = vadd.f32 %v5180_v11, %v5011_v46 }
 0x566   : > { %12418 = vst [vmem:[#allocation77_spill] sm:$0xff] %v11568_v59  ;;  %v5692_v26 = vpop.f32.mrf.mxu1  ;;  %v5357_v10 = vadd.f32 %v7732_v42, %v5174_v61  ;;  %v5807_v42 = vld [vmem:[#allocation5 + $0xa8] sm:$0xff] }
 0x567   : > { %v11571_v6 = vpop.f32.mrf.mxu0  ;;  %v5349_v43 = vadd.f32 %v11529_v22, %v5167_v35  ;;  %v5041_v22 = vadd.f32 %v11493_v15, %v11503_v63  ;;  %v5365_v35 = vadd.f32 %v11533_v34, %v5181_v21  ;;  %v5809_v63 = vld [vmem:[#allocation5 + $0xb8] sm:$0xff] }
 0x568   : > { %12419 = vst [vmem:[#allocation89_spill] sm:$0xff] %v11571_v6  ;;  %v7788_v18 = vpop.f32.mrf.mxu1 }
 0x569   : > { %v11574_v29 = vpop.f32.mrf.mxu0 }
 0x56a   : > { %12420 = vst [vmem:[#allocation93_spill] sm:$0xff] %v11574_v29  ;;  %v5704_v52 = vpop.f32.mrf.mxu1  ;;  %v12421_v29 = vld [vmem:[#allocation81_spill] sm:$0xff] }
 0x56b   : > { %v7757_v31 = vpop.f32.mrf.mxu0  ;;  %v5995_v17 = vmul.f32 %v12421_v29, %v5803_v56  ;;  %v12423_v56 = vld [vmem:[#allocation95_spill] sm:$0xff] }
 0x56c   : > { %v5536_v6 = vadd.f32 %v7757_v31, %v5341_v27  ;;  %v7791_v59 = vpop.f32.mrf.mxu1  ;;  %v5997_v29 = vmul.f32 %v12423_v56, %v5805_v54  ;;  %v5996_v31 = vmul.f32 %v12424_v19, %v5804_v8 }
 0x56d   : > { %v5529_v30 = vpop.f32.mrf.mxu0 }
 0x56e   : > { %v5699_v62 = vadd.f32 %v7785_v12, %v5536_v6  ;;  %v5530_v51 = vadd.f32 %v5529_v30, %v5333_v37  ;;  %v5716_v57 = vpop.f32.mrf.mxu1  ;;  %v5023_v12 = vadd.f32 %v11489_v47, %v11499_v38  ;;  %v5202_v6 = vadd.f32 %v7710_v3, %v5029_v44  ;;  %v5806_v47 = vld [vmem:[#allocation5 + $0xa0] sm:$0xff] }
 0x56f   : > { %v7760_v1 = vpop.f32.mrf.mxu0  ;;  %v5035_v30 = vadd.f32 %v11497_v49, %v11507_v14  ;;  %v5808_v14 = vld [vmem:[#allocation5 + $0xb0] sm:$0xff] }
 0x570   : > { %v6027_v0 = vadd.f32 %v5995_v17, %v5699_v62  ;;  %v5693_v27 = vadd.f32 %v5692_v26, %v5530_v51  ;;  %v5548_v5 = vadd.f32 %v7760_v1, %v5357_v10  ;;  %v7794_v33 = vpop.f32.mrf.mxu1  ;;  %v5195_v38 = vadd.f32 %v11545_v41, %v5023_v12 }
 0x571   : > { %v5541_v61 = vpop.f32.mrf.mxu0  ;;  %v5216_v17 = vadd.f32 %v11549_v60, %v5041_v22  ;;  %v5389_v51 = vadd.f32 %v11535_v36, %v5202_v6  ;;  %v5209_v44 = vadd.f32 %v11553_v9, %v5035_v30  ;;  %v5047_v36 = vadd.f32 %v11505_v55, %v11517_v28  ;;  %v5810_v28 = vld [vmem:[#allocation5 + $0xc0] sm:$0xff]  ;;  %v12428_v6 = vld [vmem:[#allocation65_spill] sm:$0xff]  ;;  %v5812_v30 = vld [vmem:[#allocation5 + $0xd0] sm:$0xff] }
 0x572   : > { %6059 = vst.msk [vmem:[#allocation5 + $0x88] sm:$0xff] %vm600_vm2, %v6027_v0  ;;  %v6026_v58 = vadd.f32 %v5994_v48, %v5693_v27  ;;  %v5711_v16 = vadd.f32 %v7788_v18, %v5548_v5  ;;  %v5542_v11 = vadd.f32 %v5541_v61, %v5349_v43  ;;  %v5728_v26 = vpop.f32.mrf.mxu1  ;;  %v12425_v18 = vld [vmem:[#allocation87_spill] sm:$0xff]  ;;  %v5053_v48 = vadd.f32 %v11501_v32, %v11511_v25  ;;  %v12427_v0 = vld [vmem:[#allocation40_spill] sm:$0xff] }
 0x573   : > { %v7763_v4 = vpop.f32.mrf.mxu0  ;;  %v5999_v20 = vmul.f32 %v12425_v18, %v5807_v42  ;;  %v6001_v27 = vmul.f32 %v12427_v0, %v5809_v63  ;;  %v5405_v32 = vadd.f32 %v11539_v13, %v5216_v17  ;;  %v5811_v25 = vld [vmem:[#allocation5 + $0xc8] sm:$0xff]  ;;  %v5397_v55 = vadd.f32 %v11541_v53, %v5209_v44  ;;  %v12441_v44 = vld [vmem:[#allocation84_spill] sm:$0xff] }
 0x574   : > { %6058 = vst.msk [vmem:[#allocation5 + $0x80] sm:$0xff] %vm600_vm2, %v6026_v58  ;;  %v6029_v39 = vadd.f32 %v5997_v29, %v5711_v16  ;;  %v5705_v3 = vadd.f32 %v5704_v52, %v5542_v11  ;;  %v5560_v37 = vadd.f32 %v7763_v4, %v5373_v2  ;;  %v7797_v46 = vpop.f32.mrf.mxu1  ;;  %v12426_v52 = vld [vmem:[#allocation112_spill] sm:$0xff]  ;;  %v5230_v9 = vadd.f32 %v11557_v50, %v5053_v48  ;;  %v12429_v58 = vld [vmem:[#allocation39_spill] sm:$0xff]  ;;  %v12430_v16 = vld [vmem:[#allocation41_spill] sm:$0xff] }
 0x575   : > { %v5553_v15 = vpop.f32.mrf.mxu0  ;;  %v5998_v10 = vmul.f32 %v12426_v52, %v5806_v47  ;;  %v6000_v29 = vmul.f32 %v11311_v23, %v5808_v14  ;;  %v5223_v13 = vadd.f32 %v11561_v7, %v5047_v36  ;;  %v5059_v23 = vadd.f32 %v12430_v16, %v12429_v58  ;;  %v12431_v11 = vld [vmem:[#allocation92_spill] sm:$0xff]  ;;  %v12432_v7 = vld [vmem:[#allocation86_spill] sm:$0xff]  ;;  %v12440_v52 = vld [vmem:[#allocation75_spill] sm:$0xff] }
 0x576   : > { %6061 = vst.msk [vmem:[#allocation5 + $0x98] sm:$0xff] %vm600_vm2, %v6029_v39  ;;  %v6028_v34 = vadd.f32 %v5996_v31, %v5705_v3  ;;  %v5723_v54 = vadd.f32 %v7791_v59, %v5560_v37  ;;  %v5554_v41 = vadd.f32 %v5553_v15, %v5365_v35  ;;  %v5740_v62 = vpop.f32.mrf.mxu1  ;;  %v5381_v59 = vadd.f32 %v11537_v40, %v5195_v38  ;;  %v12433_v35 = vld [vmem:[#allocation69_spill] sm:$0xff]  ;;  %v12435_v38 = vld [vmem:[#allocation54_spill] sm:$0xff]  ;;  %v5815_v14 = vld [vmem:[#allocation5 + $0xe8] sm:$0xff] }
 0x577   : > { %v7766_v49 = vpop.f32.mrf.mxu0  ;;  %v5065_v40 = vadd.f32 %v11509_v24, %v11521_v45  ;;  %v5813_v45 = vld [vmem:[#allocation5 + $0xd8] sm:$0xff]  ;;  %v5421_v4 = vadd.f32 %v12432_v7, %v5230_v9  ;;  %v6002_v47 = vmul.f32 %v12433_v35, %v5810_v28  ;;  %v5814_v9 = vld [vmem:[#allocation5 + $0xe0] sm:$0xff] }
 0x578   : > { %6060 = vst.msk [vmem:[#allocation5 + $0x90] sm:$0xff] %vm600_vm2, %v6028_v34  ;;  %v6031_v60 = vadd.f32 %v5999_v20, %v5723_v54  ;;  %v5717_v21 = vadd.f32 %v5716_v57, %v5554_v41  ;;  %v5572_v1 = vadd.f32 %v7766_v49, %v5389_v51  ;;  %v7800_v8 = vpop.f32.mrf.mxu1  ;;  %v12436_v3 = vld [vmem:[#allocation77_spill] sm:$0xff]  ;;  %v12437_v34 = vld [vmem:[#allocation71_spill] sm:$0xff]  ;;  %v12438_v54 = vld [vmem:[#allocation66_spill] sm:$0xff] }
 0x579   : > { %v5565_v5 = vpop.f32.mrf.mxu0  ;;  %v5244_v19 = vadd.f32 %v12431_v11, %v5065_v40  ;;  %v5237_v37 = vadd.f32 %v12436_v3, %v5059_v23  ;;  %v6005_v41 = vmul.f32 %v12438_v54, %v5813_v45  ;;  %v12439_v51 = vld [vmem:[#allocation57_spill] sm:$0xff]  ;;  %v12449_v45 = vld [vmem:[#allocation59_spill] sm:$0xff] }
 0x57a   : > { %6063 = vst.msk [vmem:[#allocation5 + $0xa8] sm:$0xff] %vm600_vm2, %v6031_v60  ;;  %v6030_v43 = vadd.f32 %v5998_v10, %v5717_v21  ;;  %v5735_v56 = vadd.f32 %v7794_v33, %v5572_v1  ;;  %v5566_v57 = vadd.f32 %v5565_v5, %v5381_v59  ;;  %v5752_v12 = vpop.f32.mrf.mxu1  ;;  %v6003_v33 = vmul.f32 %v12428_v6, %v5811_v25  ;;  %v12442_v60 = vld [vmem:[#allocation89_spill] sm:$0xff] }
 0x57b   : > { %v7769_v61 = vpop.f32.mrf.mxu0  ;;  %v5071_v10 = vadd.f32 %v12440_v52, %v12439_v51  ;;  %v5437_v49 = vadd.f32 %v12441_v44, %v5244_v19  ;;  %v5817_v16 = vld [vmem:[#allocation5 + $0xf8] sm:$0xff] }
 0x57c   : > { %6062 = vst.msk [vmem:[#allocation5 + $0xa0] sm:$0xff] %vm600_vm2, %v6030_v43  ;;  %v6033_v50 = vadd.f32 %v6001_v27, %v5735_v56  ;;  %v5729_v2 = vadd.f32 %v5728_v26, %v5566_v57  ;;  %v5584_v42 = vadd.f32 %v7769_v61, %v5405_v32  ;;  %v12434_v26 = vld [vmem:[#allocation90_spill] sm:$0xff]  ;;  %v7803_v18 = vpop.f32.mrf.mxu1  ;;  %v12444_v32 = vld [vmem:[#allocation73_spill] sm:$0xff] }
 0x57d   : > { %v5577_v24 = vpop.f32.mrf.mxu0  ;;  %v5077_v39 = vadd.f32 %v12435_v38, %v12434_v26  ;;  %v5429_v25 = vadd.f32 %v12444_v32, %v5237_v37  ;;  %v12445_v43 = vld [vmem:[#allocation93_spill] sm:$0xff]  ;;  %v12446_v61 = vld [vmem:[#allocation34_spill] sm:$0xff] }
 0x57e   : > { %6065 = vst.msk [vmem:[#allocation5 + $0xb8] sm:$0xff] %vm600_vm2, %v6033_v50  ;;  %v6032_v53 = vadd.f32 %v6000_v29, %v5729_v2  ;;  %v5747_v31 = vadd.f32 %v7797_v46, %v5584_v42  ;;  %v5578_v22 = vadd.f32 %v5577_v24, %v5397_v55  ;;  %v5413_v46 = vadd.f32 %v12437_v34, %v5223_v13  ;;  %v5764_v36 = vpop.f32.mrf.mxu1  ;;  %v5976_v13 = vpop.permute.xlu0 %5975  ;;  %v12447_v42 = vld [vmem:[#allocation68_spill] sm:$0xff] }
 0x57f   : > { %v7772_v20 = vpop.f32.mrf.mxu0  ;;  %v5258_v21 = vadd.f32 %v12442_v60, %v5077_v39  ;;  %v5251_v56 = vadd.f32 %v12445_v43, %v5071_v10  ;;  %v6007_v55 = vmul.f32 %v12446_v61, %v5815_v14 }
 0x580   : > { %6064 = vst.msk [vmem:[#allocation5 + $0xb0] sm:$0xff] %vm600_vm2, %v6032_v53  ;;  %v6035_v17 = vadd.f32 %v6003_v33, %v5747_v31  ;;  %v5741_v15 = vadd.f32 %v5740_v62, %v5578_v22  ;;  %v5596_v63 = vadd.f32 %v7772_v20, %v5421_v4  ;;  %v12443_v62 = vld [vmem:[#allocation70_spill] sm:$0xff]  ;;  %v12448_v33 = vld [vmem:[#allocation52_spill] sm:$0xff]  ;;  %v7806_v23 = vpop.f32.mrf.mxu1  ;;  %v5971_v22 = vpop.permute.xlu1 %5970  ;;  %v6009_v4 = vmul.f32 %v5976_v13, %v5817_v16 }
 0x581   : > { %v5589_v48 = vpop.f32.mrf.mxu0  ;;  %v6004_v27 = vmul.f32 %v12443_v62, %v5812_v30  ;;  %v5453_v6 = vadd.f32 %v12447_v42, %v5258_v21  ;;  %v6006_v58 = vmul.f32 %v12448_v33, %v5814_v9  ;;  %v5445_v53 = vadd.f32 %v12449_v45, %v5251_v56  ;;  %v5816_v31 = vld [vmem:[#allocation5 + $0xf0] sm:$0xff] }
 0x582   : > { %6067 = vst.msk [vmem:[#allocation5 + $0xc8] sm:$0xff] %vm600_vm2, %v6035_v17  ;;  %v6034_v1 = vadd.f32 %v6002_v47, %v5741_v15  ;;  %v5759_v59 = vadd.f32 %v7800_v8, %v5596_v63  ;;  %v5590_v0 = vadd.f32 %v5589_v48, %v5413_v46  ;;  %v5776_v38 = vpop.f32.mrf.mxu1  ;;  %v6008_v39 = vmul.f32 %v5971_v22, %v5816_v31 }
 0x583   : > { %v7775_v5 = vpop.f32.mrf.mxu0 }
 0x584   : > { %6066 = vst.msk [vmem:[#allocation5 + $0xc0] sm:$0xff] %vm600_vm2, %v6034_v1  ;;  %v6037_v57 = vadd.f32 %v6005_v41, %v5759_v59  ;;  %v5753_v29 = vadd.f32 %v5752_v12, %v5590_v0  ;;  %v5608_v40 = vadd.f32 %v7775_v5, %v5437_v49 }
 0x585   : > { %v5601_v28 = vpop.f32.mrf.mxu0 }
 0x586   : > { %6069 = vst.msk [vmem:[#allocation5 + $0xd8] sm:$0xff] %vm600_vm2, %v6037_v57  ;;  %v6036_v8 = vadd.f32 %v6004_v27, %v5753_v29  ;;  %v5771_v50 = vadd.f32 %v7803_v18, %v5608_v40  ;;  %v5602_v2 = vadd.f32 %v5601_v28, %v5429_v25 }
 0x587   : > { %v7778_v11 = vpop.f32.mrf.mxu0 }
 0x588   : > { %6068 = vst.msk [vmem:[#allocation5 + $0xd0] sm:$0xff] %vm600_vm2, %v6036_v8  ;;  %v6039_v12 = vadd.f32 %v6007_v55, %v5771_v50  ;;  %v5765_v19 = vadd.f32 %v5764_v36, %v5602_v2  ;;  %v5620_v24 = vadd.f32 %v7778_v11, %v5453_v6 }
 0x589   : > { %v5613_v7 = vpop.f32.mrf.mxu0 }
 0x58a   : > { %6071 = vst.msk [vmem:[#allocation5 + $0xe8] sm:$0xff] %vm600_vm2, %v6039_v12  ;;  %v6038_v35 = vadd.f32 %v6006_v58, %v5765_v19  ;;  %v5783_v47 = vadd.f32 %v7806_v23, %v5620_v24  ;;  %v5614_v26 = vadd.f32 %v5613_v7, %v5445_v53 }
 0x58c   : > { %6070 = vst.msk [vmem:[#allocation5 + $0xe0] sm:$0xff] %vm600_vm2, %v6038_v35  ;;  %v6041_v3 = vadd.f32 %v6009_v4, %v5783_v47  ;;  %v5777_v37 = vadd.f32 %v5776_v38, %v5614_v26  ;;  %6109 = sbr.rel (%p6693_p7) target bundleno = 1729 (0x6c1), region = 52 }
 0x58e   : > { %6073 = vst.msk [vmem:[#allocation5 + $0xf8] sm:$0xff] %vm600_vm2, %v6041_v3  ;;  %v6040_v18 = vadd.f32 %v6008_v39, %v5777_v37 }
 0x590   : > { %6072 = vst.msk [vmem:[#allocation5 + $0xf0] sm:$0xff] %vm600_vm2, %v6040_v18 }
 0x591   : > { %v6112_v20 = vld [vmem:[#allocation4 + $0x10] sm:$0xff]  ;;  %v6110_v30 = vld [vmem:[#allocation4] sm:$0xff]  ;;  %v6113_v17 = vld [vmem:[#allocation4 + $0x18] sm:$0xff]  ;;  %v8411_v15 = vmov 0  }
 0x592   : > { %8093 = vset.pattern.permute.xlu1 %v8411_v15  ;;  %8092 = vset.pattern.permute.xlu0 %v8411_v15  ;;  %8094 = vrcp.f32 %v6112_v20  ;;  %v6111_v63 = vld [vmem:[#allocation4 + $0x8] sm:$0xff]  ;;  %v6114_v46 = vld [vmem:[#allocation4 + $0x20] sm:$0xff]  ;;  %v6117_v54 = vld [vmem:[#allocation4 + $0x38] sm:$0xff] }
 0x593   : > { %8096 = vrcp.f32 %v6110_v30  ;;  %v6115_v34 = vld [vmem:[#allocation4 + $0x28] sm:$0xff]  ;;  %v6116_v41 = vld [vmem:[#allocation4 + $0x30] sm:$0xff]  ;;  %v6118_v52 = vld [vmem:[#allocation4 + $0x40] sm:$0xff] }
 0x594   : > { %8098 = vrcp.f32 %v6113_v17  ;;  %v6119_v51 = vld [vmem:[#allocation4 + $0x48] sm:$0xff]  ;;  %v6121_v49 = vld [vmem:[#allocation4 + $0x58] sm:$0xff]  ;;  %v6120_v60 = vld [vmem:[#allocation4 + $0x50] sm:$0xff] }
 0x595   : > { %8100 = vrcp.f32 %v6111_v63  ;;  %v6123_v1 = vld [vmem:[#allocation4 + $0x68] sm:$0xff]  ;;  %v6122_v0 = vld [vmem:[#allocation4 + $0x60] sm:$0xff]  ;;  %v6125_v27 = vld [vmem:[#allocation4 + $0x78] sm:$0xff] }
 0x596   : > { %8102 = vrcp.f32 %v6115_v34  ;;  %v6124_v5 = vld [vmem:[#allocation4 + $0x70] sm:$0xff]  ;;  %v6127_v25 = vld [vmem:[#allocation4 + $0x88] sm:$0xff]  ;;  %v6126_v43 = vld [vmem:[#allocation4 + $0x80] sm:$0xff] }
 0x597   : > { %8104 = vrcp.f32 %v6114_v46  ;;  %v6129_v57 = vld [vmem:[#allocation4 + $0x98] sm:$0xff]  ;;  %v6128_v40 = vld [vmem:[#allocation4 + $0x90] sm:$0xff]  ;;  %v6131_v55 = vld [vmem:[#allocation4 + $0xa8] sm:$0xff] }
 0x598   : > { %8106 = vrcp.f32 %v6117_v54  ;;  %v6130_v13 = vld [vmem:[#allocation4 + $0xa0] sm:$0xff]  ;;  %v6133_v50 = vld [vmem:[#allocation4 + $0xb8] sm:$0xff]  ;;  %v6132_v42 = vld [vmem:[#allocation4 + $0xb0] sm:$0xff] }
 0x599   : > { %8108 = vrcp.f32 %v6116_v41  ;;  %v6135_v33 = vld [vmem:[#allocation4 + $0xc8] sm:$0xff]  ;;  %v6134_v16 = vld [vmem:[#allocation4 + $0xc0] sm:$0xff]  ;;  %v6137_v11 = vld [vmem:[#allocation4 + $0xd8] sm:$0xff] }
 0x59a   : > { %8110 = vrcp.f32 %v6119_v51  ;;  %v6136_v19 = vld [vmem:[#allocation4 + $0xd0] sm:$0xff]  ;;  %v6139_v45 = vld [vmem:[#allocation4 + $0xe8] sm:$0xff]  ;;  %v6138_v31 = vld [vmem:[#allocation4 + $0xe0] sm:$0xff] }
 0x59b   : > { %8112 = vrcp.f32 %v6118_v52  ;;  %v6141_v7 = vld [vmem:[#allocation4 + $0xf8] sm:$0xff]  ;;  %v6140_v35 = vld [vmem:[#allocation4 + $0xf0] sm:$0xff]  ;;  %v6206_v30 = vld [vmem:[#allocation5] sm:$0xff] }
 0x59c   : > { %8114 = vrcp.f32 %v6121_v49  ;;  %v6207_v34 = vld [vmem:[#allocation5 + $0x8] sm:$0xff]  ;;  %v6208_v51 = vld [vmem:[#allocation5 + $0x10] sm:$0xff] }
 0x59d   : > { %8116 = vrcp.f32 %v6120_v60 }
 0x59e   : > { %8118 = vrcp.f32 %v6123_v1 }
 0x59f   : > { %v8095_v10 = vpop.eup %8094  ;;  %8120 = vrcp.f32 %v6122_v0 }
 0x5a0   : > { %v8097_v48 = vpop.eup %8096  ;;  %6250 = vperm.xlu1 %8093, %v8095_v10   ;;  %8122 = vrcp.f32 %v6125_v27 }
 0x5a1   : > { %v8099_v44 = vpop.eup %8098  ;;  %6240 = vperm.xlu0 %8092, %v8097_v48   ;;  %8124 = vrcp.f32 %v6124_v5 }
 0x5a2   : > { %v8101_v14 = vpop.eup %8100  ;;  %8126 = vrcp.f32 %v6127_v25 }
 0x5a3   : > { %v8103_v21 = vpop.eup %8102  ;;  %8128 = vrcp.f32 %v6126_v43 }
 0x5a4   : > { %6255 = vperm.xlu1 %8093, %v8099_v44   ;;  %v8105_v59 = vpop.eup %8104  ;;  %8130 = vrcp.f32 %v6129_v57  ;;  %v6209_v44 = vld [vmem:[#allocation5 + $0x18] sm:$0xff] }
 0x5a5   : > { %6245 = vperm.xlu0 %8092, %v8101_v14   ;;  %v8107_v62 = vpop.eup %8106  ;;  %8132 = vrcp.f32 %v6128_v40 }
 0x5a6   : > { %v8109_v36 = vpop.eup %8108  ;;  %8134 = vrcp.f32 %v6131_v55  ;;  %v6222_v55 = vld [vmem:[#allocation5 + $0x80] sm:$0xff] }
 0x5a7   : > { %v8111_v32 = vpop.eup %8110  ;;  %8136 = vrcp.f32 %v6130_v13 }
 0x5a8   : > { %6265 = vperm.xlu1 %8093, %v8103_v21   ;;  %v8113_v9 = vpop.eup %8112  ;;  %8138 = vrcp.f32 %v6133_v50  ;;  %v6210_v21 = vld [vmem:[#allocation5 + $0x20] sm:$0xff]  ;;  %v6215_v50 = vld [vmem:[#allocation5 + $0x48] sm:$0xff] }
 0x5a9   : > { %6260 = vperm.xlu0 %8092, %v8105_v59   ;;  %v8115_v56 = vpop.eup %8114  ;;  %8140 = vrcp.f32 %v6132_v42 }
 0x5aa   : > { %v8117_v29 = vpop.eup %8116  ;;  %8142 = vrcp.f32 %v6135_v33 }
 0x5ab   : > { %v8119_v61 = vpop.eup %8118  ;;  %8144 = vrcp.f32 %v6134_v16  ;;  %v6224_v16 = vld [vmem:[#allocation5 + $0x90] sm:$0xff] }
 0x5ac   : > { %6275 = vperm.xlu1 %8093, %v8107_v62   ;;  %v8121_v28 = vpop.eup %8120  ;;  %8146 = vrcp.f32 %v6137_v11  ;;  %v6211_v62 = vld [vmem:[#allocation5 + $0x28] sm:$0xff] }
 0x5ad   : > { %6270 = vperm.xlu0 %8092, %v8109_v36   ;;  %v8123_v8 = vpop.eup %8122  ;;  %8148 = vrcp.f32 %v6136_v19  ;;  %v6217_v19 = vld [vmem:[#allocation5 + $0x58] sm:$0xff] }
 0x5ae   : > { %v8125_v2 = vpop.eup %8124  ;;  %8150 = vrcp.f32 %v6139_v45 }
 0x5af   : > { %v8127_v6 = vpop.eup %8126  ;;  %8152 = vrcp.f32 %v6138_v31 }
 0x5b0   : > { %6285 = vperm.xlu1 %8093, %v8111_v32   ;;  %v8129_v58 = vpop.eup %8128  ;;  %8154 = vrcp.f32 %v6141_v7  ;;  %v6212_v32 = vld [vmem:[#allocation5 + $0x30] sm:$0xff]  ;;  %v6226_v7 = vld [vmem:[#allocation5 + $0xa0] sm:$0xff] }
 0x5b1   : > { %6280 = vperm.xlu0 %8092, %v8113_v9   ;;  %v8131_v23 = vpop.eup %8130  ;;  %8156 = vrcp.f32 %v6140_v35 }
 0x5b2   : > { %v8133_v12 = vpop.eup %8132 }
 0x5b3   : > { %v8135_v24 = vpop.eup %8134 }
 0x5b4   : > { %6295 = vperm.xlu1 %8093, %v8115_v56   ;;  %v8137_v53 = vpop.eup %8136  ;;  %v6213_v56 = vld [vmem:[#allocation5 + $0x38] sm:$0xff] }
 0x5b5   : > { %6290 = vperm.xlu0 %8092, %v8117_v29   ;;  %v8139_v22 = vpop.eup %8138 }
 0x5b6   : > { %v8141_v4 = vpop.eup %8140 }
 0x5b7   : > { %v8143_v47 = vpop.eup %8142 }
 0x5b8   : > { %6305 = vperm.xlu1 %8093, %v8119_v61   ;;  %v8145_v26 = vpop.eup %8144  ;;  %v6214_v61 = vld [vmem:[#allocation5 + $0x40] sm:$0xff] }
 0x5b9   : > { %6300 = vperm.xlu0 %8092, %v8121_v28   ;;  %v8147_v38 = vpop.eup %8146 }
 0x5ba   : > { %v8149_v39 = vpop.eup %8148 }
 0x5bb   : > { %v8151_v3 = vpop.eup %8150 }
 0x5bc   : > { %6315 = vperm.xlu1 %8093, %v8123_v8   ;;  %v8153_v37 = vpop.eup %8152 }
 0x5bd   : > { %6310 = vperm.xlu0 %8092, %v8125_v2   ;;  %v8155_v18 = vpop.eup %8154  ;;  %v6223_v2 = vld [vmem:[#allocation5 + $0x88] sm:$0xff] }
 0x5be   : > { %v8157_v20 = vpop.eup %8156 }
 0x5c0   : > { %6325 = vperm.xlu1 %8093, %v8127_v6  }
 0x5c1   : > { %6320 = vperm.xlu0 %8092, %v8129_v58   ;;  %v6216_v58 = vld [vmem:[#allocation5 + $0x50] sm:$0xff] }
 0x5c4   : > { %6335 = vperm.xlu1 %8093, %v8131_v23  }
 0x5c5   : > { %6330 = vperm.xlu0 %8092, %v8133_v12  }
 0x5c8   : > { %6345 = vperm.xlu1 %8093, %v8135_v24   ;;  %v6225_v24 = vld [vmem:[#allocation5 + $0x98] sm:$0xff] }
 0x5c9   : > { %6340 = vperm.xlu0 %8092, %v8137_v53  }
 0x5cc   : > { %6355 = vperm.xlu1 %8093, %v8139_v22   ;;  %v6218_v22 = vld [vmem:[#allocation5 + $0x60] sm:$0xff] }
 0x5cd   : > { %6350 = vperm.xlu0 %8092, %v8141_v4  }
 0x5d0   : > { %6365 = vperm.xlu1 %8093, %v8143_v47  }
 0x5d1   : > { %6360 = vperm.xlu0 %8092, %v8145_v26   ;;  %v6219_v26 = vld [vmem:[#allocation5 + $0x68] sm:$0xff] }
 0x5d4   : > { %6375 = vperm.xlu1 %8093, %v8147_v38   ;;  %v6227_v38 = vld [vmem:[#allocation5 + $0xa8] sm:$0xff] }
 0x5d5   : > { %6370 = vperm.xlu0 %8092, %v8149_v39  }
 0x5d8   : > { %6385 = vperm.xlu1 %8093, %v8151_v3  }
 0x5d9   : > { %6380 = vperm.xlu0 %8092, %v8153_v37  }
 0x5dc   : > { %6395 = vperm.xlu1 %8093, %v8155_v18   ;;  %v6220_v18 = vld [vmem:[#allocation5 + $0x70] sm:$0xff] }
 0x5dd   : > { %6390 = vperm.xlu0 %8092, %v8157_v20   ;;  %v6228_v20 = vld [vmem:[#allocation5 + $0xb0] sm:$0xff] }
 0x61b   : > { %v6251_v17 = vpop.permute.xlu1 %6250 }
 0x61c   : > { %v6241_v15 = vpop.permute.xlu0 %6240  ;;  %v6400_v48 = vmul.f32 %v6251_v17, %v6208_v51  ;;  %v6230_v51 = vld [vmem:[#allocation5 + $0xc0] sm:$0xff] }
 0x61d   : > { %v6398_v63 = vmul.f32 %v6241_v15, %v6206_v30 }
 0x61f   : > { %6430 = vxpose.xlu0.b32.start [1/16] (narrow) %v6398_v63, 16  ;;  %v6256_v46 = vpop.permute.xlu1 %6255  ;;  %v6221_v63 = vld [vmem:[#allocation5 + $0x78] sm:$0xff] }
 0x620   : > { %v6246_v54 = vpop.permute.xlu0 %6245  ;;  %v6401_v60 = vmul.f32 %v6256_v46, %v6209_v44 }
 0x621   : > { %v6399_v41 = vmul.f32 %v6246_v54, %v6207_v34  ;;  %v6229_v34 = vld [vmem:[#allocation5 + $0xb8] sm:$0xff] }
 0x623   : > { %6431 = vxpose.xlu0.b32.cont [2/16] (narrow) %v6399_v41, 16  ;;  %v6266_v52 = vpop.permute.xlu1 %6265 }
 0x624   : > { %v6261_v10 = vpop.permute.xlu0 %6260  ;;  %v6403_v5 = vmul.f32 %v6266_v52, %v6211_v62  ;;  %v6234_v62 = vld [vmem:[#allocation5 + $0xe0] sm:$0xff] }
 0x625   : > { %v6402_v0 = vmul.f32 %v6261_v10, %v6210_v21 }
 0x627   : > { %6432 = vxpose.xlu0.b32.cont [3/16] (narrow) %v6400_v48, 16  ;;  %v6276_v49 = vpop.permute.xlu1 %6275  ;;  %v6231_v48 = vld [vmem:[#allocation5 + $0xc8] sm:$0xff] }
 0x628   : > { %v6271_v14 = vpop.permute.xlu0 %6270  ;;  %v6405_v40 = vmul.f32 %v6276_v49, %v6213_v56 }
 0x629   : > { %v6404_v43 = vmul.f32 %v6271_v14, %v6212_v32  ;;  %v6232_v14 = vld [vmem:[#allocation5 + $0xd0] sm:$0xff] }
 0x62b   : > { %6433 = vxpose.xlu0.b32.cont [4/16] (narrow) %v6401_v60, 16  ;;  %v6286_v1 = vpop.permute.xlu1 %6285 }
 0x62c   : > { %v6281_v59 = vpop.permute.xlu0 %6280  ;;  %v6407_v6 = vmul.f32 %v6286_v1, %v6215_v50  ;;  %v6233_v1 = vld [vmem:[#allocation5 + $0xd8] sm:$0xff] }
 0x62d   : > { %v6406_v13 = vmul.f32 %v6281_v59, %v6214_v61 }
 0x62f   : > { %6434 = vxpose.xlu0.b32.cont [5/16] (narrow) %v6402_v0, 16  ;;  %v6296_v27 = vpop.permute.xlu1 %6295 }
 0x630   : > { %v6291_v36 = vpop.permute.xlu0 %6290  ;;  %v6409_v53 = vmul.f32 %v6296_v27, %v6217_v19 }
 0x631   : > { %v6408_v11 = vmul.f32 %v6291_v36, %v6216_v58 }
 0x633   : > { %6435 = vxpose.xlu0.b32.cont [6/16] (narrow) %v6403_v5, 16  ;;  %v6306_v25 = vpop.permute.xlu1 %6305  ;;  %v6235_v5 = vld [vmem:[#allocation5 + $0xe8] sm:$0xff] }
 0x634   : > { %v6301_v9 = vpop.permute.xlu0 %6300  ;;  %v6411_v3 = vmul.f32 %v6306_v25, %v6219_v26 }
 0x635   : > { %v6410_v35 = vmul.f32 %v6301_v9, %v6218_v22  ;;  %v6236_v9 = vld [vmem:[#allocation5 + $0xf0] sm:$0xff] }
 0x637   : > { %6436 = vxpose.xlu0.b32.cont [7/16] (narrow) %v6404_v43, 16  ;;  %v6316_v57 = vpop.permute.xlu1 %6315 }
 0x638   : > { %v6311_v29 = vpop.permute.xlu0 %6310  ;;  %v6413_v54 = vmul.f32 %v6316_v57, %v6221_v63  ;;  %v6237_v57 = vld [vmem:[#allocation5 + $0xf8] sm:$0xff] }
 0x639   : > { %v6412_v17 = vmul.f32 %v6311_v29, %v6220_v18 }
 0x63b   : > { %6437 = vxpose.xlu0.b32.cont [8/16] (narrow) %v6405_v40, 16  ;;  %v6326_v42 = vpop.permute.xlu1 %6325 }
 0x63c   : > { %v6321_v28 = vpop.permute.xlu0 %6320  ;;  %v6415_v33 = vmul.f32 %v6326_v42, %v6223_v2 }
 0x63d   : > { %v6414_v8 = vmul.f32 %v6321_v28, %v6222_v55 }
 0x63f   : > { %6438 = vxpose.xlu0.b32.cont [9/16] (narrow) %v6406_v13, 16  ;;  %6462 = vxpose.xlu1.b32.start [1/16] (narrow) %v6414_v8, 16  ;;  %v6336_v45 = vpop.permute.xlu1 %6335 }
 0x640   : > { %v6331_v23 = vpop.permute.xlu0 %6330  ;;  %v6417_v31 = vmul.f32 %v6336_v45, %v6225_v24 }
 0x641   : > { %v6416_v12 = vmul.f32 %v6331_v23, %v6224_v16 }
 0x643   : > { %6439 = vxpose.xlu0.b32.cont [10/16] (narrow) %v6407_v6, 16  ;;  %6463 = vxpose.xlu1.b32.cont [2/16] (narrow) %v6415_v33, 16  ;;  %v6346_v39 = vpop.permute.xlu1 %6345 }
 0x644   : > { %v6341_v4 = vpop.permute.xlu0 %6340  ;;  %v6419_v37 = vmul.f32 %v6346_v39, %v6227_v38 }
 0x645   : > { %v6418_v47 = vmul.f32 %v6341_v4, %v6226_v7 }
 0x647   : > { %6440 = vxpose.xlu0.b32.cont [11/16] (narrow) %v6408_v11, 16  ;;  %6464 = vxpose.xlu1.b32.cont [3/16] (narrow) %v6416_v12, 16  ;;  %v6356_v46 = vpop.permute.xlu1 %6355 }
 0x648   : > { %v6351_v30 = vpop.permute.xlu0 %6350  ;;  %v6421_v41 = vmul.f32 %v6356_v46, %v6229_v34 }
 0x649   : > { %v6420_v15 = vmul.f32 %v6351_v30, %v6228_v20 }
 0x64b   : > { %6441 = vxpose.xlu0.b32.cont [12/16] (narrow) %v6409_v53, 16  ;;  %6465 = vxpose.xlu1.b32.cont [4/16] (narrow) %v6417_v31, 16  ;;  %v6366_v44 = vpop.permute.xlu1 %6365 }
 0x64c   : > { %v6361_v52 = vpop.permute.xlu0 %6360  ;;  %v6423_v49 = vmul.f32 %v6366_v44, %v6231_v48 }
 0x64d   : > { %v6422_v10 = vmul.f32 %v6361_v52, %v6230_v51 }
 0x64f   : > { %6442 = vxpose.xlu0.b32.cont [13/16] (narrow) %v6410_v35, 16  ;;  %6466 = vxpose.xlu1.b32.cont [5/16] (narrow) %v6418_v47, 16  ;;  %v6376_v59 = vpop.permute.xlu1 %6375 }
 0x650   : > { %v6371_v60 = vpop.permute.xlu0 %6370  ;;  %v6425_v0 = vmul.f32 %v6376_v59, %v6233_v1 }
 0x651   : > { %v6424_v21 = vmul.f32 %v6371_v60, %v6232_v14 }
 0x653   : > { %6443 = vxpose.xlu0.b32.cont [14/16] (narrow) %v6411_v3, 16  ;;  %6467 = vxpose.xlu1.b32.cont [6/16] (narrow) %v6419_v37, 16  ;;  %v6386_v32 = vpop.permute.xlu1 %6385 }
 0x654   : > { %v6381_v27 = vpop.permute.xlu0 %6380  ;;  %v6427_v25 = vmul.f32 %v6386_v32, %v6235_v5 }
 0x655   : > { %v6426_v36 = vmul.f32 %v6381_v27, %v6234_v62 }
 0x657   : > { %6444 = vxpose.xlu0.b32.cont [15/16] (narrow) %v6412_v17, 16  ;;  %6468 = vxpose.xlu1.b32.cont [7/16] (narrow) %v6420_v15, 16  ;;  %v6396_v29 = vpop.permute.xlu1 %6395 }
 0x658   : > { %v6391_v43 = vpop.permute.xlu0 %6390  ;;  %v6429_v40 = vmul.f32 %v6396_v29, %v6237_v57 }
 0x659   : > { %v6428_v56 = vmul.f32 %v6391_v43, %v6236_v9 }
 0x65b   : > { %6445 = vxpose.xlu0.b32.end [16/16] (narrow) %v6413_v54, 16  ;;  %6469 = vxpose.xlu1.b32.cont [8/16] (narrow) %v6421_v41, 16 }
 0x65f   : > { %6470 = vxpose.xlu1.b32.cont [9/16] (narrow) %v6422_v10, 16 }
 0x663   : > { %6471 = vxpose.xlu1.b32.cont [10/16] (narrow) %v6423_v49, 16 }
 0x667   : > { %6472 = vxpose.xlu1.b32.cont [11/16] (narrow) %v6424_v21, 16 }
 0x66b   : > { %6473 = vxpose.xlu1.b32.cont [12/16] (narrow) %v6425_v0, 16 }
 0x66f   : > { %6474 = vxpose.xlu1.b32.cont [13/16] (narrow) %v6426_v36, 16 }
 0x673   : > { %6475 = vxpose.xlu1.b32.cont [14/16] (narrow) %v6427_v25, 16 }
 0x677   : > { %6476 = vxpose.xlu1.b32.cont [15/16] (narrow) %v6428_v56, 16 }
 0x67b   : > { %6477 = vxpose.xlu1.b32.end [16/16] (narrow) %v6429_v40, 16 }
 0x69b   : > { %v6446_v61 = vpop.trf.xlu0 }
 0x69c   : > { %6494 = vst [vmem:[%s8726_s5] sm:$0xff] %v6446_v61 }
 0x69f   : > { %v6447_v55 = vpop.trf.xlu0 }
 0x6a0   : > { %6495 = vst [vmem:[%s8726_s5 + $0x8] sm:$0xff] %v6447_v55 }
 0x6bb   : > { %v6478_v28 = vpop.trf.xlu1 }
 0x6bc   : > { %6496 = vst [vmem:[%s8726_s5 + $0x10] sm:$0xff] %v6478_v28 }
 0x6bf   : > { %v6479_v13 = vpop.trf.xlu1 }
 0x6c0   : > { %6497 = vst [vmem:[%s8726_s5 + $0x18] sm:$0xff] %v6479_v13 }
 0x6c1 PF: > { %s12451_s23 = sld [smem:[#allocation21_spill]]  ;;  %s6516_s24 = sshll.u32 %s8726_s5, 4  ;;  %s11663_s24 = int_to_ptr.vmem [resolvable:$true] %s6516_s24 }
 0x6c2   : > { %s12452_s11 = sld [smem:[#allocation20_spill]]  ;;  %s6499_s3 = scalar_lea.sflag [#allocation8], %s8708_s27 }
 0x6c3   : > { %s12453_s4 = sld [smem:[#allocation22_spill]]  ;;  %s8244_s13 = scalar_lea.vmem %s11663_s24, 512 }
 0x6c4   : > { %s12454_s10 = sld [smem:[#allocation31_spill]]  ;;  %p8245_p12 = scmp.ne.s32.totalorder %s11663_s24, %s8244_s13 }
 0x6c5   : > { %s12455_s9 = sld [smem:[#allocation115_spill]]  ;;  %s8412_s6 = smov [#allocation12]  }
 0x6c6   : > { %s8248_s29 = sshll.u32 %s8412_s6, 4  ;;  %s8249_s29 = int_to_ptr.vmem [resolvable:$false] %s8248_s29 }
 0x6c7   : > { %s6702_s1 = sshll.u32 %s12451_s23, 3  ;;  %s8250_s5 = scalar_lea.vmem %s8249_s29, 1024 }
 0x6c8   : > { %s6511_s21 = sadd.s32 %s12452_s11, %s6702_s1  ;;  %p8251_p3 = scmp.lt.s32.totalorder %s11663_s24, %s8249_s29 }
 0x6c9   : > { %s6697_s16 = sshll.u32 %s12453_s4, 4  ;;  %p8252_p10 = scmp.lt.s32.totalorder %s8250_s5, %s8244_s13 }
 0x6ca   : > { %s6513_s8 = sadd.s32 %s6697_s16, %s6511_s21  ;;  %p12456_p0 = scmp.ne.s32.totalorder %s12454_s10, 0 }
 0x6cb   : > { %s6698_s12 = sshll.u32 %s6513_s8, 7  ;;  %p8253_p1 = por %p8252_p10, %p8251_p3 }
 0x6cc   : > { %s11668_s20 = scalar_lea.hbm %s12455_s9, %s6698_s12  ;;  %p8246_p4 = pnand %p8245_p12, %p12456_p0 }
 0x6ce   : > { %p8247_p9 = pneg %p8246_p4 }
 0x6d0   : > { %p8254_p13 = pnand %p8253_p1, %p8247_p9 }
 0x6d2   : > { %8257 = shalt.err (!%p8254_p13)
}
 0x6d3   : > { %s8258_s7 = scalar_lea.hbm %s11668_s20, 512  ;;  %s8262_s4 = scalar_lea.hbm %s12455_s9, 4096 }
 0x6d4   : > { %p8259_p11 = scmp.ne.s32.totalorder %s11668_s20, %s8258_s7  ;;  %p8263_p5 = scmp.lt.s32.totalorder %s11668_s20, %s12455_s9 }
 0x6d5   : > { %p8264_p8 = scmp.lt.s32.totalorder %s8262_s4, %s8258_s7 }
 0x6d6   : > { %p8260_p2 = pnand %p8259_p11, %p12456_p0 }
 0x6d7   : > { %p8265_p7 = por %p8264_p8, %p8263_p5 }
 0x6d8   : > { %p8261_p6 = pneg %p8260_p2 }
 0x6da   : > { %p8266_p12 = pnand %p8265_p7, %p8261_p6 }
 0x6dc   : > { %8269 = shalt.err (!%p8266_p12)
}
 0x6dd   : > { %s8413_s16 = smov 128   ;;  %s8414_s8 = smov 256  }
 0x6de   : > { %s8415_s12 = smov 8  }
 0x6df   : > { %7814 = dma.vmem_to_hbm [thread:$0]  (%p12456_p0), %s11663_s24, 512, %s11668_s20, %s6499_s3, %s8413_s16, %s8414_s8, %s8415_s12  }
 0x6e0 PF: > { %s12457_s30 = sld [smem:[#allocation17_spill]]  ;;  %p7831_p4 = scmp.ge.s32.totalorder %s8400_s26, 2 }
 0x6e1   : > { %s12458_s19 = sld [smem:[#allocation33_spill]] }
 0x6e6   : > { %s6531_s13 = sand.u32 1, %s12457_s30  }
 0x6e7   : > { %p12459_p9 = scmp.ne.s32.totalorder %s12458_s19, 0  ;;  %s6532_s6 = scalar_lea.sflag [#allocation8], %s6531_s13 }
 0x6e9   : > { %p7827_p3 = pnand %p7831_p4, %p12459_p9 }
 0x6eb   : > { %p7828_p10 = pneg %p7827_p3 }
 0x6ed   : > { %8339 = dma.done.wait (%p7828_p10), %s6532_s6, 512  }
 0x6ee   : > { %8341 = vsyncadd (%p7828_p10), %s6532_s6, 4294966784  ;;  %s22_s26 = sadd.s32 1, %s8400_s26   ;;  %s12461_s12 = sld [smem:[#allocation16_spill]] }
 0x6ef   : > { %p11698_p1 = scmp.ge.s32.totalorder %s22_s26, 18   ;;  %s12462_s27 = sld [smem:[#allocation18_spill]] }
 0x6f0   : > { %s12463_s19 = sld [smem:[#allocation23_spill]]  ;;  %s12467_s10 = smov %s12490_s18 }
 0x6f1   : > { %s12464_s20 = sld [smem:[#allocation24_spill]]  ;;  %s12468_s13 = smov %s8352_s14 }
 0x6f2   : > { %s12465_s23 = sld [smem:[#allocation29_spill]]  ;;  %s12469_s14 = smov %s8680_s15 }
 0x6f3   : > { %s12466_s24 = sld [smem:[#allocation32_spill]]  ;;  %s12471_s16 = smov %s8364_s17 }
 0x6f4   : > { %s12472_s17 = smov %s8675_s2  ;;  %s12473_s18 = smov %s8384_s22 }
 0x6f5   : > { %s12470_s15 = smov %s12462_s27  ;;  %s12474_s21 = smov %s8396_s25 }
 0x6f6   : > { %s12475_s22 = smov %s12478_s28  ;;  %s12476_s25 = smov %s12467_s10 }
 0x6f7   :  { %21 = sbr.rel (!%p11698_p1) target bundleno = 17 (0x11), region = 109 }
 0x6fc   :  { %6537 = vsyncpa [#allocation7], 1 }
 0x6fd   :  { %6539 = vsyncpa [#allocation7 + $0x1], 1 }
 0x6fe   :  { %6540 = vsyncpa [#allocation10], 1 }
 0x6ff   :  { %6542 = vsyncpa [#allocation10 + $0x1], 1 }
 0x700   :  { %6543 = vsyncpa [#allocation8], 1 }
 0x701   :  { %6545 = vsyncpa [#allocation8 + $0x1], 1 }

</bundles_post_ra>
